<compile_context>
chip_gen: v7x
topology: tpu7x:2x2x1
jax: 0.10.0
libtpu: 0.0.40
codegen_flags: <defaults>
</compile_context>

<pallas_src>
import functools

import jax
import jax.numpy as jnp
from jax.experimental import pallas as pl
from jax.experimental.pallas import tpu as pltpu

ACT_DTYPE = jnp.bfloat16          # matmul operand / intermediate activation dtype
_SUBLANE = 16 if ACT_DTYPE == jnp.bfloat16 else 8
_VMEM_TILE_BUDGET = 10 * 1024 * 1024   # per-call pair in+out double-buffer budget


def _round_up(x, m):
    return ((x + m - 1) // m) * m


def _block_diag(a, b):
    r1, c1 = a.shape
    r2, c2 = b.shape
    top = jnp.concatenate([a, jnp.zeros((r1, c2), a.dtype)], axis=1)
    bot = jnp.concatenate([jnp.zeros((r2, c1), b.dtype), b], axis=1)
    return jnp.concatenate([top, bot], axis=0)


def _wspec(arr):
    idx = (0,) * arr.ndim
    return pl.BlockSpec(arr.shape, lambda b, i, _idx=idx: _idx)


def _choose_tile_i(batch, n_padded, bytes_per_i_row, budget=_VMEM_TILE_BUDGET):
    """Largest sublane-multiple tile_i dividing Np that fits the VMEM budget,
    preferring >= 2 total grid blocks (megacore / v7x dual TensorCore)."""
    cands = [t for t in range(_SUBLANE, n_padded + 1, _SUBLANE)
             if n_padded % t == 0 and t * bytes_per_i_row <= budget]
    if not cands:
        cands = [_SUBLANE if n_padded % _SUBLANE == 0 else n_padded]
    par = [t for t in cands if batch * (n_padded // t) >= 2]
    return max(par) if par else max(cands)


# ---------------------------------------------------------------------------
# Pallas kernels
# ---------------------------------------------------------------------------
def _weave_layer_kernel(node_i_ref, node_all_ref, pair_ref,
                        waa_ref, baa_ref, wpapp_ref, bpapp_ref, wa_ref, ba_ref,
                        wapt_ref, wapb_ref, bap_ref, wp_ref, bp_ref,
                        node_out_ref, pair_out_ref, *, n_valid):
    """Fused node+pair weave update for one (batch, i-tile) block; j = full row."""
    ti, np_, fp = pair_ref.shape
    hn = baa_ref.shape[-1]
    hp = bap_ref.shape[-1]

    # --- shared pair matmul: PA|PP in one stacked (Fp, Hn+Hp) dot ------------
    p2d = pair_ref[...].astype(ACT_DTYPE).reshape(ti * np_, fp)
    papp = jnp.dot(p2d, wpapp_ref[...], preferred_element_type=jnp.float32)
    papp = jnp.maximum(papp + bpapp_ref[...], 0.0)            # (ti*Np, Hn+Hp) f32
    papp3 = papp.reshape(ti, np_, hn + hp)

    # Neighbor sum over j (mask padded neighbor columns; runs once per block).
    pa3 = papp3[..., :hn]
    if n_valid < np_:
        j_ids = jax.lax.broadcasted_iota(jnp.int32, (np_, hn), 0)
        pa3 = jnp.where((j_ids < n_valid)[None], pa3, 0.0)
    pa_sum = pa3.sum(axis=1)                                  # (ti, Hn) f32

    # --- node path -----------------------------------------------------------
    x_i = node_i_ref[...].astype(ACT_DTYPE)
    aa = jnp.dot(x_i, waa_ref[...], preferred_element_type=jnp.float32)
    aa = jnp.maximum(aa + baa_ref[...], 0.0)                  # (ti, Hn)
    node_cat = jnp.concatenate([aa, pa_sum], axis=-1).astype(ACT_DTYPE)  # (ti, 2Hn)
    y_node = (jnp.dot(node_cat, wa_ref[...], preferred_element_type=jnp.float32)
              + ba_ref[...])
    node_out_ref[...] = jnp.maximum(y_node, 0.0).astype(node_out_ref.dtype)

    # --- pair path -----------------------------------------------------------
    x_all = node_all_ref[...].astype(ACT_DTYPE)
    ap_i = jnp.dot(x_i, wapt_ref[...], preferred_element_type=jnp.float32)   # (ti, Hp)
    ap_j = jnp.dot(x_all, wapb_ref[...], preferred_element_type=jnp.float32)  # (Np, Hp)
    ap = jnp.maximum(ap_i[:, None, :] + ap_j[None, :, :] + bap_ref[...][None],
                     0.0)                                     # (ti, Np, Hp)
    pair_cat = jnp.concatenate([ap, papp3[..., hn:]],
                               axis=-1).astype(ACT_DTYPE)     # (ti, Np, 2Hp)
    y_pair = (jnp.dot(pair_cat.reshape(ti * np_, 2 * hp), wp_ref[...],
                      preferred_element_type=jnp.float32) + bp_ref[...])
    pair_out_ref[...] = (jnp.maximum(y_pair, 0.0)
                         .astype(pair_out_ref.dtype).reshape(ti, np_, hp))


def _final_node_head_kernel(node_i_ref, pair_ref,
                            waa_ref, baa_ref, wpa_ref, bpa_ref, wa_ref, ba_ref,
                            w1_ref, b1_ref, w2_ref, b2_ref, w3_ref, b3_ref,
                            out_ref, *, n_valid):
    """Last weave layer (no pair update) fused with both head MLPs.

    Output slab is [z_mean | z_log_std] (2*n_latent lanes) per node row.
    """
    ti, np_, fp = pair_ref.shape
    hn = baa_ref.shape[-1]

    # node update (PA half only)
    p2d = pair_ref[...].astype(ACT_DTYPE).reshape(ti * np_, fp)
    pa = jnp.dot(p2d, wpa_ref[...], preferred_element_type=jnp.float32)
    pa = jnp.maximum(pa + bpa_ref[...], 0.0).reshape(ti, np_, hn)
    if n_valid < np_:
        j_ids = jax.lax.broadcasted_iota(jnp.int32, (np_, hn), 0)
        pa = jnp.where((j_ids < n_valid)[None], pa, 0.0)
    pa_sum = pa.sum(axis=1)                                   # (ti, Hn) f32

    x_i = node_i_ref[...].astype(ACT_DTYPE)
    aa = jnp.maximum(jnp.dot(x_i, waa_ref[...],
                             preferred_element_type=jnp.float32) + baa_ref[...], 0.0)
    node_cat = jnp.concatenate([aa, pa_sum], axis=-1).astype(ACT_DTYPE)
    node_new = jnp.maximum(
        jnp.dot(node_cat, wa_ref[...], preferred_element_type=jnp.float32)
        + ba_ref[...], 0.0).astype(ACT_DTYPE)                 # (ti, Hn)

    # fused mean/logstd heads: 3 dots with packed / block-diagonal weights
    h = jnp.maximum(jnp.dot(node_new, w1_ref[...],
                            preferred_element_type=jnp.float32) + b1_ref[...], 0.0)
    h = jnp.maximum(jnp.dot(h.astype(ACT_DTYPE), w2_ref[...],
                            preferred_element_type=jnp.float32) + b2_ref[...], 0.0)
    z = (jnp.dot(h.astype(ACT_DTYPE), w3_ref[...],
                 preferred_element_type=jnp.float32) + b3_ref[...])
    out_ref[...] = z.astype(out_ref.dtype)                    # (ti, 2*L)


# ---------------------------------------------------------------------------
# pallas_call wrappers
# ---------------------------------------------------------------------------
def weave_layer_fused(node, pair, layer, n_valid, tile_i):
    B, Np, Fn = node.shape
    Fp = pair.shape[-1]
    Hn = layer["baa"].shape[-1]
    Hp = layer["bap"].shape[-1]

    weights = (layer["waa"], layer["baa"], layer["wpapp"], layer["bpapp"],
               layer["wa"], layer["ba"], layer["wapt"], layer["wapb"],
               layer["bap"], layer["wp"], layer["bp"])
    kernel = functools.partial(_weave_layer_kernel, n_valid=n_valid)

    node_new, pair_new = pl.pallas_call(
        kernel,
        out_shape=(jax.ShapeDtypeStruct((B, Np, Hn), ACT_DTYPE),
                   jax.ShapeDtypeStruct((B, Np, Np, Hp), ACT_DTYPE)),
        grid_spec=pltpu.PrefetchScalarGridSpec(
            num_scalar_prefetch=0,
            grid=(B, Np // tile_i),
            in_specs=[
                pl.BlockSpec((None, tile_i, Fn), lambda b, i: (b, i, 0)),      # node_i
                pl.BlockSpec((None, Np, Fn), lambda b, i: (b, 0, 0)),          # node_all
                pl.BlockSpec((None, tile_i, Np, Fp), lambda b, i: (b, i, 0, 0)),
            ] + [_wspec(w) for w in weights],
            out_specs=[
                pl.BlockSpec((None, tile_i, Hn), lambda b, i: (b, i, 0)),
                pl.BlockSpec((None, tile_i, Np, Hp), lambda b, i: (b, i, 0, 0)),
            ],
        ),
        compiler_params=pltpu.CompilerParams(
            dimension_semantics=("parallel", "parallel")),
    )(node, node, pair, *weights)
    return node_new, pair_new


def final_layer_and_heads(node, pair, layer, head, n_valid, tile_i):
    B, Np, Fn = node.shape
    Fp = pair.shape[-1]
    L2 = head["b3"].shape[-1]   # 2 * n_latent

    weights = (layer["waa"], layer["baa"], layer["wpa"], layer["bpa"],
               layer["wa"], layer["ba"],
               head["w1"], head["b1"], head["w2"], head["b2"],
               head["w3"], head["b3"])
    kernel = functools.partial(_final_node_head_kernel, n_valid=n_valid)

    return pl.pallas_call(
        kernel,
        out_shape=jax.ShapeDtypeStruct((B, Np, L2), jnp.float32),
        grid_spec=pltpu.PrefetchScalarGridSpec(
            num_scalar_prefetch=0,
            grid=(B, Np // tile_i),
            in_specs=[
                pl.BlockSpec((None, tile_i, Fn), lambda b, i: (b, i, 0)),
                pl.BlockSpec((None, tile_i, Np, Fp), lambda b, i: (b, i, 0, 0)),
            ] + [_wspec(w) for w in weights],
            out_specs=pl.BlockSpec((None, tile_i, L2), lambda b, i: (b, i, 0)),
        ),
        compiler_params=pltpu.CompilerParams(
            dimension_semantics=("parallel", "parallel")),
    )(node, pair, *weights)


# ---------------------------------------------------------------------------
# Parameter construction (deterministic, PyTorch-Linear-like uniform init)
# ---------------------------------------------------------------------------
def init_linear(key, fan_in, fan_out):
    k1, k2 = jax.random.split(key)
    scale = 1.0 / jnp.sqrt(jnp.float32(fan_in))
    w = jax.random.uniform(k1, (fan_in, fan_out), jnp.float32, -scale, scale)
    b = jax.random.uniform(k2, (fan_out,), jnp.float32, -scale, scale)
    return w, b


def init_weave_enc(key, n_node_feat, n_pair_feat, n_node_hidden,
                   n_pair_hidden, n_latent_feat, n_weave_layers):
    layers = []
    in_node, in_pair = n_node_feat, n_pair_feat
    for i in range(n_weave_layers):
        update_pair = (i != n_weave_layers - 1)
        key, *ks = jax.random.split(key, 7)
        waa, baa = init_linear(ks[0], in_node, n_node_hidden)
        wpa, bpa = init_linear(ks[1], in_pair, n_node_hidden)
        wa, ba = init_linear(ks[2], 2 * n_node_hidden, n_node_hidden)
        layer = {"update_pair": update_pair,
                 "waa": waa.astype(ACT_DTYPE), "baa": baa.reshape(1, -1),
                 "wa": wa.astype(ACT_DTYPE), "ba": ba.reshape(1, -1)}
        if update_pair:
            wap, bap = init_linear(ks[3], 2 * in_node, n_pair_hidden)
            wpp, bpp = init_linear(ks[4], in_pair, n_pair_hidden)
            wp, bp = init_linear(ks[5], 2 * n_pair_hidden, n_pair_hidden)
            # stacked PA|PP weight so one pair-tile read feeds a single matmul
            layer["wpapp"] = jnp.concatenate([wpa, wpp], axis=1).astype(ACT_DTYPE)
            layer["bpapp"] = jnp.concatenate([bpa, bpp], axis=-1).reshape(1, -1)
            layer["wapt"] = wap[:in_node].astype(ACT_DTYPE)
            layer["wapb"] = wap[in_node:].astype(ACT_DTYPE)
            layer["bap"] = bap.reshape(1, -1)
            layer["wp"] = wp.astype(ACT_DTYPE)      # stacked [W_P_top; W_P_bot]
            layer["bp"] = bp.reshape(1, -1)
        else:
            layer["wpa"] = wpa.astype(ACT_DTYPE)
            layer["bpa"] = bpa.reshape(1, -1)
        layers.append(layer)
        in_node, in_pair = n_node_hidden, n_pair_hidden

    # fused mean / logstd heads
    def head_linears(k):
        k1, k2, k3 = jax.random.split(k, 3)
        return (init_linear(k1, n_node_hidden, n_node_hidden),
                init_linear(k2, n_node_hidden, n_node_hidden),
                init_linear(k3, n_node_hidden, n_latent_feat))

    key, km, kl = jax.random.split(key, 3)
    (w1m, b1m), (w2m, b2m), (w3m, b3m) = head_linears(km)
    (w1l, b1l), (w2l, b2l), (w3l, b3l) = head_linears(kl)
    head = {
        "w1": jnp.concatenate([w1m, w1l], axis=1).astype(ACT_DTYPE),
        "b1": jnp.concatenate([b1m, b1l]).reshape(1, -1),
        "w2": _block_diag(w2m, w2l).astype(ACT_DTYPE),
        "b2": jnp.concatenate([b2m, b2l]).reshape(1, -1),
        "w3": _block_diag(w3m, w3l).astype(ACT_DTYPE),
        "b3": jnp.concatenate([b3m, b3l]).reshape(1, -1),
    }
    return {"weave": layers, "head": head,
            "dims": {"hn": n_node_hidden, "hp": n_pair_hidden,
                     "latent": n_latent_feat}}


# ---------------------------------------------------------------------------
# Forward pass
# ---------------------------------------------------------------------------
def weave_enc_forward(params, node_feats, pair_feats, A):
    # `A` (adjacency) is accepted for signature parity but unused, exactly as
    # in the reference forward().
    del A
    B, N, _ = node_feats.shape
    hp = params["dims"]["hp"]
    L = params["dims"]["latent"]

    # Pad the node axis to a sublane multiple (dtype preserved; cast happens
    # inside the kernels so the big pair tensor gets no extra HBM round trip).
    Np = _round_up(N, _SUBLANE)
    node = node_feats
    pair = pair_feats
    if Np != N:
        node = jnp.pad(node, ((0, 0), (0, Np - N), (0, 0)))
        pair = jnp.pad(pair, ((0, 0), (0, Np - N), (0, Np - N), (0, 0)))

    act_bytes = jnp.dtype(ACT_DTYPE).itemsize
    for layer in params["weave"][:-1]:
        # double-buffered pair-in + pair-out bytes per i-row
        per_row = Np * (pair.shape[-1] * pair.dtype.itemsize + hp * act_bytes) * 2
        tile_i = _choose_tile_i(B, Np, per_row)
        node, pair = weave_layer_fused(node, pair, layer, n_valid=N, tile_i=tile_i)

    per_row = Np * pair.shape[-1] * pair.dtype.itemsize * 2
    tile_i = _choose_tile_i(B, Np, per_row)
    out = final_layer_and_heads(node, pair, params["weave"][-1], params["head"],
                                n_valid=N, tile_i=tile_i)
    z_mean = out[:, :N, :L]
    z_log_std = out[:, :N, L:]
    return z_mean, z_log_std


# ---------------------------------------------------------------------------
if __name__ == "__main__":
    # small shapes, module-default feature sizes
    B, N = 2, 8
    n_node_feat, n_pair_feat = 23, 15
    n_node_hidden, n_pair_hidden = 64, 64
    n_latent_feat, n_weave_layers = 128, 3

    key = jax.random.PRNGKey(0)
    kp, kn, kpair, ka = jax.random.split(key, 4)

    params = init_weave_enc(kp, n_node_feat, n_pair_feat, n_node_hidden,
                            n_pair_hidden, n_latent_feat, n_weave_layers)

    node_feats = jax.random.normal(kn, (B, N, n_node_feat), jnp.float32)
    pair_feats = jax.random.normal(kpair, (B, N, N, n_pair_feat), jnp.float32)
    A = (jax.random.uniform(ka, (B, N, N)) > 0.5).astype(jnp.float32)  # unused

    fwd = jax.jit(functools.partial(weave_enc_forward, params))
    z_mean, z_log_std = fwd(node_feats, pair_feats, A)
    jax.block_until_ready((z_mean, z_log_std))

    assert z_mean.shape == (B, N, n_latent_feat)
    assert z_log_std.shape == (B, N, n_latent_feat)
    assert bool(jnp.all(jnp.isfinite(z_mean)))
    assert bool(jnp.all(jnp.isfinite(z_log_std)))
    print("KERNEL_OK")
</pallas_src>

<mosaic_0001>
module attributes {stable_mosaic.version = 11 : i64} {
  func.func @_weave_layer_kernel(%arg0: i32, %arg1: i32, %arg2: memref<1x16x64xbf16, #tpu.memory_space<vmem>>, %arg3: memref<1x16x64xbf16, #tpu.memory_space<vmem>>, %arg4: memref<1x16x16x64xbf16, #tpu.memory_space<vmem>>, %arg5: memref<64x64xbf16, #tpu.memory_space<vmem>>, %arg6: memref<1x64xf32, #tpu.memory_space<vmem>>, %arg7: memref<64x128xbf16, #tpu.memory_space<vmem>>, %arg8: memref<1x128xf32, #tpu.memory_space<vmem>>, %arg9: memref<128x64xbf16, #tpu.memory_space<vmem>>, %arg10: memref<1x64xf32, #tpu.memory_space<vmem>>, %arg11: memref<64x64xbf16, #tpu.memory_space<vmem>>, %arg12: memref<64x64xbf16, #tpu.memory_space<vmem>>, %arg13: memref<1x64xf32, #tpu.memory_space<vmem>>, %arg14: memref<128x64xbf16, #tpu.memory_space<vmem>>, %arg15: memref<1x64xf32, #tpu.memory_space<vmem>>, %arg16: memref<1x16x64xbf16, #tpu.memory_space<vmem>>, %arg17: memref<1x16x16x64xbf16, #tpu.memory_space<vmem>>) attributes {dimension_semantics = [#tpu.dimension_semantics<parallel>, #tpu.dimension_semantics<parallel>], iteration_bounds = array<i64: 2, 1>, scalar_prefetch = 0 : i64, scratch_operands = 0 : i64, tpu.core_type = #tpu.core_type<tc>, window_params = [{transform_indices = @transform_0, window_bounds = array<i64: 1, 16, 64>}, {transform_indices = @transform_1, window_bounds = array<i64: 1, 16, 64>}, {transform_indices = @transform_2, window_bounds = array<i64: 1, 16, 16, 64>}, {pipeline_mode = #tpu.pipeline_mode<synchronous>, transform_indices = @transform_3, window_bounds = array<i64: 64, 64>}, {pipeline_mode = #tpu.pipeline_mode<synchronous>, transform_indices = @transform_4, window_bounds = array<i64: 1, 64>}, {pipeline_mode = #tpu.pipeline_mode<synchronous>, transform_indices = @transform_5, window_bounds = array<i64: 64, 128>}, {pipeline_mode = #tpu.pipeline_mode<synchronous>, transform_indices = @transform_6, window_bounds = array<i64: 1, 128>}, {pipeline_mode = #tpu.pipeline_mode<synchronous>, transform_indices = @transform_7, window_bounds = array<i64: 128, 64>}, {pipeline_mode = #tpu.pipeline_mode<synchronous>, transform_indices = @transform_8, window_bounds = array<i64: 1, 64>}, {pipeline_mode = #tpu.pipeline_mode<synchronous>, transform_indices = @transform_9, window_bounds = array<i64: 64, 64>}, {pipeline_mode = #tpu.pipeline_mode<synchronous>, transform_indices = @transform_10, window_bounds = array<i64: 64, 64>}, {pipeline_mode = #tpu.pipeline_mode<synchronous>, transform_indices = @transform_11, window_bounds = array<i64: 1, 64>}, {pipeline_mode = #tpu.pipeline_mode<synchronous>, transform_indices = @transform_12, window_bounds = array<i64: 128, 64>}, {pipeline_mode = #tpu.pipeline_mode<synchronous>, transform_indices = @transform_13, window_bounds = array<i64: 1, 64>}, {transform_indices = @transform_14, window_bounds = array<i64: 1, 16, 64>}, {transform_indices = @transform_15, window_bounds = array<i64: 1, 16, 16, 64>}]} {
    %c0 = arith.constant 0 : index
    %c0_0 = arith.constant 0 : index
    %c0_1 = arith.constant 0 : index
    %c0_2 = arith.constant 0 : index
    %0 = vector.load %arg4[%c0, %c0_0, %c0_1, %c0_2] : memref<1x16x16x64xbf16, #tpu.memory_space<vmem>>, vector<1x16x16x64xbf16>
    %1 = vector.shape_cast %0 : vector<1x16x16x64xbf16> to vector<16x16x64xbf16>
    %2 = vector.shape_cast %1 : vector<16x16x64xbf16> to vector<256x64xbf16>
    %c0_3 = arith.constant 0 : index
    %c0_4 = arith.constant 0 : index
    %3 = vector.load %arg7[%c0_3, %c0_4] : memref<64x128xbf16, #tpu.memory_space<vmem>>, vector<64x128xbf16>
    %cst = arith.constant dense<0.000000e+00> : vector<256x128xf32>
    %4 = tpu.matmul %2, %3, %cst {dimension_numbers = #tpu.dot_dimension_numbers<[1], [0], [0], [1], [0, 0, 1, 1], [], []>} : vector<256x64xbf16>, vector<64x128xbf16>, vector<256x128xf32> -> vector<256x128xf32>
    %c0_5 = arith.constant 0 : index
    %c0_6 = arith.constant 0 : index
    %5 = vector.load %arg8[%c0_5, %c0_6] : memref<1x128xf32, #tpu.memory_space<vmem>>, vector<1x128xf32>
    %6 = vector.broadcast %5 : vector<1x128xf32> to vector<256x128xf32>
    %7 = arith.addf %4, %6 : vector<256x128xf32>
    %cst_7 = arith.constant 0.000000e+00 : f32
    %8 = vector.broadcast %cst_7 : f32 to vector<256x128xf32>
    %9 = arith.maximumf %7, %8 : vector<256x128xf32>
    %10 = vector.shape_cast %9 : vector<256x128xf32> to vector<16x16x128xf32>
    %11 = vector.extract_strided_slice %10 {offsets = [0, 0, 0], sizes = [16, 16, 64], strides = [1, 1, 1]} : vector<16x16x128xf32> to vector<16x16x64xf32>
    %12 = tpu.iota {dimensions = array<i32: 0>} : vector<16x64xi32>
    %c8_i32 = arith.constant 8 : i32
    %13 = vector.broadcast %c8_i32 : i32 to vector<16x64xi32>
    %14 = arith.cmpi slt, %12, %13 : vector<16x64xi32>
    %15 = vector.shape_cast %14 : vector<16x64xi1> to vector<1x16x64xi1>
    %cst_8 = arith.constant 0.000000e+00 : f32
    %16 = vector.shape_cast %15 : vector<1x16x64xi1> to vector<1x16x64xi1>
    %17 = vector.broadcast %16 : vector<1x16x64xi1> to vector<16x16x64xi1>
    %18 = vector.broadcast %cst_8 : f32 to vector<16x16x64xf32>
    %19 = arith.select %17, %11, %18 : vector<16x16x64xi1>, vector<16x16x64xf32>
    %cst_9 = arith.constant dense<0.000000e+00> : vector<16x64xf32>
    %20 = vector.multi_reduction <add>, %19, %cst_9 [1] : vector<16x16x64xf32> to vector<16x64xf32>
    %c0_10 = arith.constant 0 : index
    %c0_11 = arith.constant 0 : index
    %c0_12 = arith.constant 0 : index
    %21 = vector.load %arg2[%c0_10, %c0_11, %c0_12] : memref<1x16x64xbf16, #tpu.memory_space<vmem>>, vector<1x16x64xbf16>
    %22 = vector.shape_cast %21 : vector<1x16x64xbf16> to vector<16x64xbf16>
    %c0_13 = arith.constant 0 : index
    %c0_14 = arith.constant 0 : index
    %23 = vector.load %arg5[%c0_13, %c0_14] : memref<64x64xbf16, #tpu.memory_space<vmem>>, vector<64x64xbf16>
    %cst_15 = arith.constant dense<0.000000e+00> : vector<16x64xf32>
    %24 = tpu.matmul %22, %23, %cst_15 {dimension_numbers = #tpu.dot_dimension_numbers<[1], [0], [0], [1], [0, 0, 1, 1], [], []>} : vector<16x64xbf16>, vector<64x64xbf16>, vector<16x64xf32> -> vector<16x64xf32>
    %c0_16 = arith.constant 0 : index
    %c0_17 = arith.constant 0 : index
    %25 = vector.load %arg6[%c0_16, %c0_17] : memref<1x64xf32, #tpu.memory_space<vmem>>, vector<1x64xf32>
    %26 = vector.broadcast %25 : vector<1x64xf32> to vector<16x64xf32>
    %27 = arith.addf %24, %26 : vector<16x64xf32>
    %cst_18 = arith.constant 0.000000e+00 : f32
    %28 = vector.broadcast %cst_18 : f32 to vector<16x64xf32>
    %29 = arith.maximumf %27, %28 : vector<16x64xf32>
    %30 = tpu.concatenate %29, %20 in 1 : vector<16x64xf32>, vector<16x64xf32> -> vector<16x128xf32>
    %31 = arith.truncf %30 : vector<16x128xf32> to vector<16x128xbf16>
    %c0_19 = arith.constant 0 : index
    %c0_20 = arith.constant 0 : index
    %32 = vector.load %arg9[%c0_19, %c0_20] : memref<128x64xbf16, #tpu.memory_space<vmem>>, vector<128x64xbf16>
    %cst_21 = arith.constant dense<0.000000e+00> : vector<16x64xf32>
    %33 = tpu.matmul %31, %32, %cst_21 {dimension_numbers = #tpu.dot_dimension_numbers<[1], [0], [0], [1], [0, 0, 1, 1], [], []>} : vector<16x128xbf16>, vector<128x64xbf16>, vector<16x64xf32> -> vector<16x64xf32>
    %c0_22 = arith.constant 0 : index
    %c0_23 = arith.constant 0 : index
    %34 = vector.load %arg10[%c0_22, %c0_23] : memref<1x64xf32, #tpu.memory_space<vmem>>, vector<1x64xf32>
    %35 = vector.broadcast %34 : vector<1x64xf32> to vector<16x64xf32>
    %36 = arith.addf %33, %35 : vector<16x64xf32>
    %cst_24 = arith.constant 0.000000e+00 : f32
    %37 = vector.broadcast %cst_24 : f32 to vector<16x64xf32>
    %38 = arith.maximumf %36, %37 : vector<16x64xf32>
    %39 = arith.truncf %38 : vector<16x64xf32> to vector<16x64xbf16>
    %c0_25 = arith.constant 0 : index
    %c0_26 = arith.constant 0 : index
    %c0_27 = arith.constant 0 : index
    %40 = vector.load %arg16[%c0_25, %c0_26, %c0_27] : memref<1x16x64xbf16, #tpu.memory_space<vmem>>, vector<1x16x64xbf16>
    %41 = vector.shape_cast %40 : vector<1x16x64xbf16> to vector<16x64xbf16>
    %42 = vector.shape_cast %39 : vector<16x64xbf16> to vector<1x16x64xbf16>
    tpu.vector_store %arg16[%c0_25, %c0_26, %c0_27], %42 {strides = array<i32>} : memref<1x16x64xbf16, #tpu.memory_space<vmem>>, vector<1x16x64xbf16>,
    %c0_28 = arith.constant 0 : index
    %c0_29 = arith.constant 0 : index
    %c0_30 = arith.constant 0 : index
    %43 = vector.load %arg3[%c0_28, %c0_29, %c0_30] : memref<1x16x64xbf16, #tpu.memory_space<vmem>>, vector<1x16x64xbf16>
    %44 = vector.shape_cast %43 : vector<1x16x64xbf16> to vector<16x64xbf16>
    %c0_31 = arith.constant 0 : index
    %c0_32 = arith.constant 0 : index
    %45 = vector.load %arg11[%c0_31, %c0_32] : memref<64x64xbf16, #tpu.memory_space<vmem>>, vector<64x64xbf16>
    %cst_33 = arith.constant dense<0.000000e+00> : vector<16x64xf32>
    %46 = tpu.matmul %22, %45, %cst_33 {dimension_numbers = #tpu.dot_dimension_numbers<[1], [0], [0], [1], [0, 0, 1, 1], [], []>} : vector<16x64xbf16>, vector<64x64xbf16>, vector<16x64xf32> -> vector<16x64xf32>
    %c0_34 = arith.constant 0 : index
    %c0_35 = arith.constant 0 : index
    %47 = vector.load %arg12[%c0_34, %c0_35] : memref<64x64xbf16, #tpu.memory_space<vmem>>, vector<64x64xbf16>
    %cst_36 = arith.constant dense<0.000000e+00> : vector<16x64xf32>
    %48 = tpu.matmul %44, %47, %cst_36 {dimension_numbers = #tpu.dot_dimension_numbers<[1], [0], [0], [1], [0, 0, 1, 1], [], []>} : vector<16x64xbf16>, vector<64x64xbf16>, vector<16x64xf32> -> vector<16x64xf32>
    %49 = vector.shape_cast %46 : vector<16x64xf32> to vector<16x1x64xf32>
    %50 = vector.shape_cast %48 : vector<16x64xf32> to vector<1x16x64xf32>
    %51 = vector.broadcast %49 : vector<16x1x64xf32> to vector<16x16x64xf32>
    %52 = vector.broadcast %50 : vector<1x16x64xf32> to vector<16x16x64xf32>
    %53 = arith.addf %51, %52 : vector<16x16x64xf32>
    %c0_37 = arith.constant 0 : index
    %c0_38 = arith.constant 0 : index
    %54 = vector.load %arg13[%c0_37, %c0_38] : memref<1x64xf32, #tpu.memory_space<vmem>>, vector<1x64xf32>
    %55 = vector.shape_cast %54 : vector<1x64xf32> to vector<1x1x64xf32>
    %56 = vector.broadcast %55 : vector<1x1x64xf32> to vector<16x16x64xf32>
    %57 = arith.addf %53, %56 : vector<16x16x64xf32>
    %cst_39 = arith.constant 0.000000e+00 : f32
    %58 = vector.broadcast %cst_39 : f32 to vector<16x16x64xf32>
    %59 = arith.maximumf %57, %58 : vector<16x16x64xf32>
    %60 = vector.extract_strided_slice %10 {offsets = [0, 0, 64], sizes = [16, 16, 64], strides = [1, 1, 1]} : vector<16x16x128xf32> to vector<16x16x64xf32>
    %61 = tpu.concatenate %59, %60 in 2 : vector<16x16x64xf32>, vector<16x16x64xf32> -> vector<16x16x128xf32>
    %62 = arith.truncf %61 : vector<16x16x128xf32> to vector<16x16x128xbf16>
    %63 = vector.shape_cast %62 : vector<16x16x128xbf16> to vector<256x128xbf16>
    %c0_40 = arith.constant 0 : index
    %c0_41 = arith.constant 0 : index
    %64 = vector.load %arg14[%c0_40, %c0_41] : memref<128x64xbf16, #tpu.memory_space<vmem>>, vector<128x64xbf16>
    %cst_42 = arith.constant dense<0.000000e+00> : vector<256x64xf32>
    %65 = tpu.matmul %63, %64, %cst_42 {dimension_numbers = #tpu.dot_dimension_numbers<[1], [0], [0], [1], [0, 0, 1, 1], [], []>} : vector<256x128xbf16>, vector<128x64xbf16>, vector<256x64xf32> -> vector<256x64xf32>
    %c0_43 = arith.constant 0 : index
    %c0_44 = arith.constant 0 : index
    %66 = vector.load %arg15[%c0_43, %c0_44] : memref<1x64xf32, #tpu.memory_space<vmem>>, vector<1x64xf32>
    %67 = vector.broadcast %66 : vector<1x64xf32> to vector<256x64xf32>
    %68 = arith.addf %65, %67 : vector<256x64xf32>
    %cst_45 = arith.constant 0.000000e+00 : f32
    %69 = vector.broadcast %cst_45 : f32 to vector<256x64xf32>
    %70 = arith.maximumf %68, %69 : vector<256x64xf32>
    %71 = arith.truncf %70 : vector<256x64xf32> to vector<256x64xbf16>
    %72 = vector.shape_cast %71 : vector<256x64xbf16> to vector<16x16x64xbf16>
    %c0_46 = arith.constant 0 : index
    %c0_47 = arith.constant 0 : index
    %c0_48 = arith.constant 0 : index
    %c0_49 = arith.constant 0 : index
    %73 = vector.load %arg17[%c0_46, %c0_47, %c0_48, %c0_49] : memref<1x16x16x64xbf16, #tpu.memory_space<vmem>>, vector<1x16x16x64xbf16>
    %74 = vector.shape_cast %73 : vector<1x16x16x64xbf16> to vector<16x16x64xbf16>
    %75 = vector.shape_cast %72 : vector<16x16x64xbf16> to vector<1x16x16x64xbf16>
    tpu.vector_store %arg17[%c0_46, %c0_47, %c0_48, %c0_49], %75 {strides = array<i32>} : memref<1x16x16x64xbf16, #tpu.memory_space<vmem>>, vector<1x16x16x64xbf16>,
    return
  }
  func.func @transform_0(%arg0: i32, %arg1: i32) -> (i32, i32, i32) {
    %c0_i32 = arith.constant 0 : i32
    %c0_i32_0 = arith.constant 0 : i32
    return %arg0, %arg1, %c0_i32 : i32, i32, i32
  }
  func.func @transform_1(%arg0: i32, %arg1: i32) -> (i32, i32, i32) {
    %c0_i32 = arith.constant 0 : i32
    %c0_i32_0 = arith.constant 0 : i32
    %c0_i32_1 = arith.constant 0 : i32
    return %arg0, %c0_i32, %c0_i32_0 : i32, i32, i32
  }
  func.func @transform_2(%arg0: i32, %arg1: i32) -> (i32, i32, i32, i32) {
    %c0_i32 = arith.constant 0 : i32
    %c0_i32_0 = arith.constant 0 : i32
    %c0_i32_1 = arith.constant 0 : i32
    return %arg0, %arg1, %c0_i32, %c0_i32_0 : i32, i32, i32, i32
  }
  func.func @transform_3(%arg0: i32, %arg1: i32) -> (i32, i32) {
    %c0_i32 = arith.constant 0 : i32
    %c0_i32_0 = arith.constant 0 : i32
    %c0_i32_1 = arith.constant 0 : i32
    return %c0_i32, %c0_i32_0 : i32, i32
  }
  func.func @transform_4(%arg0: i32, %arg1: i32) -> (i32, i32) {
    %c0_i32 = arith.constant 0 : i32
    %c0_i32_0 = arith.constant 0 : i32
    %c0_i32_1 = arith.constant 0 : i32
    return %c0_i32, %c0_i32_0 : i32, i32
  }
  func.func @transform_5(%arg0: i32, %arg1: i32) -> (i32, i32) {
    %c0_i32 = arith.constant 0 : i32
    %c0_i32_0 = arith.constant 0 : i32
    %c0_i32_1 = arith.constant 0 : i32
    return %c0_i32, %c0_i32_0 : i32, i32
  }
  func.func @transform_6(%arg0: i32, %arg1: i32) -> (i32, i32) {
    %c0_i32 = arith.constant 0 : i32
    %c0_i32_0 = arith.constant 0 : i32
    %c0_i32_1 = arith.constant 0 : i32
    return %c0_i32, %c0_i32_0 : i32, i32
  }
  func.func @transform_7(%arg0: i32, %arg1: i32) -> (i32, i32) {
    %c0_i32 = arith.constant 0 : i32
    %c0_i32_0 = arith.constant 0 : i32
    %c0_i32_1 = arith.constant 0 : i32
    return %c0_i32, %c0_i32_0 : i32, i32
  }
  func.func @transform_8(%arg0: i32, %arg1: i32) -> (i32, i32) {
    %c0_i32 = arith.constant 0 : i32
    %c0_i32_0 = arith.constant 0 : i32
    %c0_i32_1 = arith.constant 0 : i32
    return %c0_i32, %c0_i32_0 : i32, i32
  }
  func.func @transform_9(%arg0: i32, %arg1: i32) -> (i32, i32) {
    %c0_i32 = arith.constant 0 : i32
    %c0_i32_0 = arith.constant 0 : i32
    %c0_i32_1 = arith.constant 0 : i32
    return %c0_i32, %c0_i32_0 : i32, i32
  }
  func.func @transform_10(%arg0: i32, %arg1: i32) -> (i32, i32) {
    %c0_i32 = arith.constant 0 : i32
    %c0_i32_0 = arith.constant 0 : i32
    %c0_i32_1 = arith.constant 0 : i32
    return %c0_i32, %c0_i32_0 : i32, i32
  }
  func.func @transform_11(%arg0: i32, %arg1: i32) -> (i32, i32) {
    %c0_i32 = arith.constant 0 : i32
    %c0_i32_0 = arith.constant 0 : i32
    %c0_i32_1 = arith.constant 0 : i32
    return %c0_i32, %c0_i32_0 : i32, i32
  }
  func.func @transform_12(%arg0: i32, %arg1: i32) -> (i32, i32) {
    %c0_i32 = arith.constant 0 : i32
    %c0_i32_0 = arith.constant 0 : i32
    %c0_i32_1 = arith.constant 0 : i32
    return %c0_i32, %c0_i32_0 : i32, i32
  }
  func.func @transform_13(%arg0: i32, %arg1: i32) -> (i32, i32) {
    %c0_i32 = arith.constant 0 : i32
    %c0_i32_0 = arith.constant 0 : i32
    %c0_i32_1 = arith.constant 0 : i32
    return %c0_i32, %c0_i32_0 : i32, i32
  }
  func.func @transform_14(%arg0: i32, %arg1: i32) -> (i32, i32, i32) {
    %c0_i32 = arith.constant 0 : i32
    %c0_i32_0 = arith.constant 0 : i32
    return %arg0, %arg1, %c0_i32 : i32, i32, i32
  }
  func.func @transform_15(%arg0: i32, %arg1: i32) -> (i32, i32, i32, i32) {
    %c0_i32 = arith.constant 0 : i32
    %c0_i32_0 = arith.constant 0 : i32
    %c0_i32_1 = arith.constant 0 : i32
    return %arg0, %arg1, %c0_i32, %c0_i32_0 : i32, i32, i32, i32
  }
}

module attributes {stable_mosaic.version = 11 : i64} {
  func.func @_weave_layer_kernel(%arg0: i32, %arg1: i32, %arg2: memref<1x16x23xf32, #tpu.memory_space<vmem>>, %arg3: memref<1x16x23xf32, #tpu.memory_space<vmem>>, %arg4: memref<1x16x16x15xf32, #tpu.memory_space<vmem>>, %arg5: memref<23x64xbf16, #tpu.memory_space<vmem>>, %arg6: memref<1x64xf32, #tpu.memory_space<vmem>>, %arg7: memref<15x128xbf16, #tpu.memory_space<vmem>>, %arg8: memref<1x128xf32, #tpu.memory_space<vmem>>, %arg9: memref<128x64xbf16, #tpu.memory_space<vmem>>, %arg10: memref<1x64xf32, #tpu.memory_space<vmem>>, %arg11: memref<23x64xbf16, #tpu.memory_space<vmem>>, %arg12: memref<23x64xbf16, #tpu.memory_space<vmem>>, %arg13: memref<1x64xf32, #tpu.memory_space<vmem>>, %arg14: memref<128x64xbf16, #tpu.memory_space<vmem>>, %arg15: memref<1x64xf32, #tpu.memory_space<vmem>>, %arg16: memref<1x16x64xbf16, #tpu.memory_space<vmem>>, %arg17: memref<1x16x16x64xbf16, #tpu.memory_space<vmem>>) attributes {dimension_semantics = [#tpu.dimension_semantics<parallel>, #tpu.dimension_semantics<parallel>], iteration_bounds = array<i64: 2, 1>, scalar_prefetch = 0 : i64, scratch_operands = 0 : i64, tpu.core_type = #tpu.core_type<tc>, window_params = [{transform_indices = @transform_0, window_bounds = array<i64: 1, 16, 23>}, {transform_indices = @transform_1, window_bounds = array<i64: 1, 16, 23>}, {transform_indices = @transform_2, window_bounds = array<i64: 1, 16, 16, 15>}, {pipeline_mode = #tpu.pipeline_mode<synchronous>, transform_indices = @transform_3, window_bounds = array<i64: 23, 64>}, {pipeline_mode = #tpu.pipeline_mode<synchronous>, transform_indices = @transform_4, window_bounds = array<i64: 1, 64>}, {pipeline_mode = #tpu.pipeline_mode<synchronous>, transform_indices = @transform_5, window_bounds = array<i64: 15, 128>}, {pipeline_mode = #tpu.pipeline_mode<synchronous>, transform_indices = @transform_6, window_bounds = array<i64: 1, 128>}, {pipeline_mode = #tpu.pipeline_mode<synchronous>, transform_indices = @transform_7, window_bounds = array<i64: 128, 64>}, {pipeline_mode = #tpu.pipeline_mode<synchronous>, transform_indices = @transform_8, window_bounds = array<i64: 1, 64>}, {pipeline_mode = #tpu.pipeline_mode<synchronous>, transform_indices = @transform_9, window_bounds = array<i64: 23, 64>}, {pipeline_mode = #tpu.pipeline_mode<synchronous>, transform_indices = @transform_10, window_bounds = array<i64: 23, 64>}, {pipeline_mode = #tpu.pipeline_mode<synchronous>, transform_indices = @transform_11, window_bounds = array<i64: 1, 64>}, {pipeline_mode = #tpu.pipeline_mode<synchronous>, transform_indices = @transform_12, window_bounds = array<i64: 128, 64>}, {pipeline_mode = #tpu.pipeline_mode<synchronous>, transform_indices = @transform_13, window_bounds = array<i64: 1, 64>}, {transform_indices = @transform_14, window_bounds = array<i64: 1, 16, 64>}, {transform_indices = @transform_15, window_bounds = array<i64: 1, 16, 16, 64>}]} {
    %c0 = arith.constant 0 : index
    %c0_0 = arith.constant 0 : index
    %c0_1 = arith.constant 0 : index
    %c0_2 = arith.constant 0 : index
    %0 = vector.load %arg4[%c0, %c0_0, %c0_1, %c0_2] : memref<1x16x16x15xf32, #tpu.memory_space<vmem>>, vector<1x16x16x15xf32>
    %1 = vector.shape_cast %0 : vector<1x16x16x15xf32> to vector<16x16x15xf32>
    %2 = arith.truncf %1 : vector<16x16x15xf32> to vector<16x16x15xbf16>
    %3 = vector.shape_cast %2 : vector<16x16x15xbf16> to vector<256x15xbf16>
    %c0_3 = arith.constant 0 : index
    %c0_4 = arith.constant 0 : index
    %4 = vector.load %arg7[%c0_3, %c0_4] : memref<15x128xbf16, #tpu.memory_space<vmem>>, vector<15x128xbf16>
    %cst = arith.constant dense<0.000000e+00> : vector<256x128xf32>
    %5 = tpu.matmul %3, %4, %cst {dimension_numbers = #tpu.dot_dimension_numbers<[1], [0], [0], [1], [0, 0, 1, 1], [], []>} : vector<256x15xbf16>, vector<15x128xbf16>, vector<256x128xf32> -> vector<256x128xf32>
    %c0_5 = arith.constant 0 : index
    %c0_6 = arith.constant 0 : index
    %6 = vector.load %arg8[%c0_5, %c0_6] : memref<1x128xf32, #tpu.memory_space<vmem>>, vector<1x128xf32>
    %7 = vector.broadcast %6 : vector<1x128xf32> to vector<256x128xf32>
    %8 = arith.addf %5, %7 : vector<256x128xf32>
    %cst_7 = arith.constant 0.000000e+00 : f32
    %9 = vector.broadcast %cst_7 : f32 to vector<256x128xf32>
    %10 = arith.maximumf %8, %9 : vector<256x128xf32>
    %11 = vector.shape_cast %10 : vector<256x128xf32> to vector<16x16x128xf32>
    %12 = vector.extract_strided_slice %11 {offsets = [0, 0, 0], sizes = [16, 16, 64], strides = [1, 1, 1]} : vector<16x16x128xf32> to vector<16x16x64xf32>
    %13 = tpu.iota {dimensions = array<i32: 0>} : vector<16x64xi32>
    %c8_i32 = arith.constant 8 : i32
    %14 = vector.broadcast %c8_i32 : i32 to vector<16x64xi32>
    %15 = arith.cmpi slt, %13, %14 : vector<16x64xi32>
    %16 = vector.shape_cast %15 : vector<16x64xi1> to vector<1x16x64xi1>
    %cst_8 = arith.constant 0.000000e+00 : f32
    %17 = vector.shape_cast %16 : vector<1x16x64xi1> to vector<1x16x64xi1>
    %18 = vector.broadcast %17 : vector<1x16x64xi1> to vector<16x16x64xi1>
    %19 = vector.broadcast %cst_8 : f32 to vector<16x16x64xf32>
    %20 = arith.select %18, %12, %19 : vector<16x16x64xi1>, vector<16x16x64xf32>
    %cst_9 = arith.constant dense<0.000000e+00> : vector<16x64xf32>
    %21 = vector.multi_reduction <add>, %20, %cst_9 [1] : vector<16x16x64xf32> to vector<16x64xf32>
    %c0_10 = arith.constant 0 : index
    %c0_11 = arith.constant 0 : index
    %c0_12 = arith.constant 0 : index
    %22 = vector.load %arg2[%c0_10, %c0_11, %c0_12] : memref<1x16x23xf32, #tpu.memory_space<vmem>>, vector<1x16x23xf32>
    %23 = vector.shape_cast %22 : vector<1x16x23xf32> to vector<16x23xf32>
    %24 = arith.truncf %23 : vector<16x23xf32> to vector<16x23xbf16>
    %c0_13 = arith.constant 0 : index
    %c0_14 = arith.constant 0 : index
    %25 = vector.load %arg5[%c0_13, %c0_14] : memref<23x64xbf16, #tpu.memory_space<vmem>>, vector<23x64xbf16>
    %cst_15 = arith.constant dense<0.000000e+00> : vector<16x64xf32>
    %26 = tpu.matmul %24, %25, %cst_15 {dimension_numbers = #tpu.dot_dimension_numbers<[1], [0], [0], [1], [0, 0, 1, 1], [], []>} : vector<16x23xbf16>, vector<23x64xbf16>, vector<16x64xf32> -> vector<16x64xf32>
    %c0_16 = arith.constant 0 : index
    %c0_17 = arith.constant 0 : index
    %27 = vector.load %arg6[%c0_16, %c0_17] : memref<1x64xf32, #tpu.memory_space<vmem>>, vector<1x64xf32>
    %28 = vector.broadcast %27 : vector<1x64xf32> to vector<16x64xf32>
    %29 = arith.addf %26, %28 : vector<16x64xf32>
    %cst_18 = arith.constant 0.000000e+00 : f32
    %30 = vector.broadcast %cst_18 : f32 to vector<16x64xf32>
    %31 = arith.maximumf %29, %30 : vector<16x64xf32>
    %32 = tpu.concatenate %31, %21 in 1 : vector<16x64xf32>, vector<16x64xf32> -> vector<16x128xf32>
    %33 = arith.truncf %32 : vector<16x128xf32> to vector<16x128xbf16>
    %c0_19 = arith.constant 0 : index
    %c0_20 = arith.constant 0 : index
    %34 = vector.load %arg9[%c0_19, %c0_20] : memref<128x64xbf16, #tpu.memory_space<vmem>>, vector<128x64xbf16>
    %cst_21 = arith.constant dense<0.000000e+00> : vector<16x64xf32>
    %35 = tpu.matmul %33, %34, %cst_21 {dimension_numbers = #tpu.dot_dimension_numbers<[1], [0], [0], [1], [0, 0, 1, 1], [], []>} : vector<16x128xbf16>, vector<128x64xbf16>, vector<16x64xf32> -> vector<16x64xf32>
    %c0_22 = arith.constant 0 : index
    %c0_23 = arith.constant 0 : index
    %36 = vector.load %arg10[%c0_22, %c0_23] : memref<1x64xf32, #tpu.memory_space<vmem>>, vector<1x64xf32>
    %37 = vector.broadcast %36 : vector<1x64xf32> to vector<16x64xf32>
    %38 = arith.addf %35, %37 : vector<16x64xf32>
    %cst_24 = arith.constant 0.000000e+00 : f32
    %39 = vector.broadcast %cst_24 : f32 to vector<16x64xf32>
    %40 = arith.maximumf %38, %39 : vector<16x64xf32>
    %41 = arith.truncf %40 : vector<16x64xf32> to vector<16x64xbf16>
    %c0_25 = arith.constant 0 : index
    %c0_26 = arith.constant 0 : index
    %c0_27 = arith.constant 0 : index
    %42 = vector.load %arg16[%c0_25, %c0_26, %c0_27] : memref<1x16x64xbf16, #tpu.memory_space<vmem>>, vector<1x16x64xbf16>
    %43 = vector.shape_cast %42 : vector<1x16x64xbf16> to vector<16x64xbf16>
    %44 = vector.shape_cast %41 : vector<16x64xbf16> to vector<1x16x64xbf16>
    tpu.vector_store %arg16[%c0_25, %c0_26, %c0_27], %44 {strides = array<i32>} : memref<1x16x64xbf16, #tpu.memory_space<vmem>>, vector<1x16x64xbf16>,
    %c0_28 = arith.constant 0 : index
    %c0_29 = arith.constant 0 : index
    %c0_30 = arith.constant 0 : index
    %45 = vector.load %arg3[%c0_28, %c0_29, %c0_30] : memref<1x16x23xf32, #tpu.memory_space<vmem>>, vector<1x16x23xf32>
    %46 = vector.shape_cast %45 : vector<1x16x23xf32> to vector<16x23xf32>
    %47 = arith.truncf %46 : vector<16x23xf32> to vector<16x23xbf16>
    %c0_31 = arith.constant 0 : index
    %c0_32 = arith.constant 0 : index
    %48 = vector.load %arg11[%c0_31, %c0_32] : memref<23x64xbf16, #tpu.memory_space<vmem>>, vector<23x64xbf16>
    %cst_33 = arith.constant dense<0.000000e+00> : vector<16x64xf32>
    %49 = tpu.matmul %24, %48, %cst_33 {dimension_numbers = #tpu.dot_dimension_numbers<[1], [0], [0], [1], [0, 0, 1, 1], [], []>} : vector<16x23xbf16>, vector<23x64xbf16>, vector<16x64xf32> -> vector<16x64xf32>
    %c0_34 = arith.constant 0 : index
    %c0_35 = arith.constant 0 : index
    %50 = vector.load %arg12[%c0_34, %c0_35] : memref<23x64xbf16, #tpu.memory_space<vmem>>, vector<23x64xbf16>
    %cst_36 = arith.constant dense<0.000000e+00> : vector<16x64xf32>
    %51 = tpu.matmul %47, %50, %cst_36 {dimension_numbers = #tpu.dot_dimension_numbers<[1], [0], [0], [1], [0, 0, 1, 1], [], []>} : vector<16x23xbf16>, vector<23x64xbf16>, vector<16x64xf32> -> vector<16x64xf32>
    %52 = vector.shape_cast %49 : vector<16x64xf32> to vector<16x1x64xf32>
    %53 = vector.shape_cast %51 : vector<16x64xf32> to vector<1x16x64xf32>
    %54 = vector.broadcast %52 : vector<16x1x64xf32> to vector<16x16x64xf32>
    %55 = vector.broadcast %53 : vector<1x16x64xf32> to vector<16x16x64xf32>
    %56 = arith.addf %54, %55 : vector<16x16x64xf32>
    %c0_37 = arith.constant 0 : index
    %c0_38 = arith.constant 0 : index
    %57 = vector.load %arg13[%c0_37, %c0_38] : memref<1x64xf32, #tpu.memory_space<vmem>>, vector<1x64xf32>
    %58 = vector.shape_cast %57 : vector<1x64xf32> to vector<1x1x64xf32>
    %59 = vector.broadcast %58 : vector<1x1x64xf32> to vector<16x16x64xf32>
    %60 = arith.addf %56, %59 : vector<16x16x64xf32>
    %cst_39 = arith.constant 0.000000e+00 : f32
    %61 = vector.broadcast %cst_39 : f32 to vector<16x16x64xf32>
    %62 = arith.maximumf %60, %61 : vector<16x16x64xf32>
    %63 = vector.extract_strided_slice %11 {offsets = [0, 0, 64], sizes = [16, 16, 64], strides = [1, 1, 1]} : vector<16x16x128xf32> to vector<16x16x64xf32>
    %64 = tpu.concatenate %62, %63 in 2 : vector<16x16x64xf32>, vector<16x16x64xf32> -> vector<16x16x128xf32>
    %65 = arith.truncf %64 : vector<16x16x128xf32> to vector<16x16x128xbf16>
    %66 = vector.shape_cast %65 : vector<16x16x128xbf16> to vector<256x128xbf16>
    %c0_40 = arith.constant 0 : index
    %c0_41 = arith.constant 0 : index
    %67 = vector.load %arg14[%c0_40, %c0_41] : memref<128x64xbf16, #tpu.memory_space<vmem>>, vector<128x64xbf16>
    %cst_42 = arith.constant dense<0.000000e+00> : vector<256x64xf32>
    %68 = tpu.matmul %66, %67, %cst_42 {dimension_numbers = #tpu.dot_dimension_numbers<[1], [0], [0], [1], [0, 0, 1, 1], [], []>} : vector<256x128xbf16>, vector<128x64xbf16>, vector<256x64xf32> -> vector<256x64xf32>
    %c0_43 = arith.constant 0 : index
    %c0_44 = arith.constant 0 : index
    %69 = vector.load %arg15[%c0_43, %c0_44] : memref<1x64xf32, #tpu.memory_space<vmem>>, vector<1x64xf32>
    %70 = vector.broadcast %69 : vector<1x64xf32> to vector<256x64xf32>
    %71 = arith.addf %68, %70 : vector<256x64xf32>
    %cst_45 = arith.constant 0.000000e+00 : f32
    %72 = vector.broadcast %cst_45 : f32 to vector<256x64xf32>
    %73 = arith.maximumf %71, %72 : vector<256x64xf32>
    %74 = arith.truncf %73 : vector<256x64xf32> to vector<256x64xbf16>
    %75 = vector.shape_cast %74 : vector<256x64xbf16> to vector<16x16x64xbf16>
    %c0_46 = arith.constant 0 : index
    %c0_47 = arith.constant 0 : index
    %c0_48 = arith.constant 0 : index
    %c0_49 = arith.constant 0 : index
    %76 = vector.load %arg17[%c0_46, %c0_47, %c0_48, %c0_49] : memref<1x16x16x64xbf16, #tpu.memory_space<vmem>>, vector<1x16x16x64xbf16>
    %77 = vector.shape_cast %76 : vector<1x16x16x64xbf16> to vector<16x16x64xbf16>
    %78 = vector.shape_cast %75 : vector<16x16x64xbf16> to vector<1x16x16x64xbf16>
    tpu.vector_store %arg17[%c0_46, %c0_47, %c0_48, %c0_49], %78 {strides = array<i32>} : memref<1x16x16x64xbf16, #tpu.memory_space<vmem>>, vector<1x16x16x64xbf16>,
    return
  }
  func.func @transform_0(%arg0: i32, %arg1: i32) -> (i32, i32, i32) {
    %c0_i32 = arith.constant 0 : i32
    %c0_i32_0 = arith.constant 0 : i32
    return %arg0, %arg1, %c0_i32 : i32, i32, i32
  }
  func.func @transform_1(%arg0: i32, %arg1: i32) -> (i32, i32, i32) {
    %c0_i32 = arith.constant 0 : i32
    %c0_i32_0 = arith.constant 0 : i32
    %c0_i32_1 = arith.constant 0 : i32
    return %arg0, %c0_i32, %c0_i32_0 : i32, i32, i32
  }
  func.func @transform_2(%arg0: i32, %arg1: i32) -> (i32, i32, i32, i32) {
    %c0_i32 = arith.constant 0 : i32
    %c0_i32_0 = arith.constant 0 : i32
    %c0_i32_1 = arith.constant 0 : i32
    return %arg0, %arg1, %c0_i32, %c0_i32_0 : i32, i32, i32, i32
  }
  func.func @transform_3(%arg0: i32, %arg1: i32) -> (i32, i32) {
    %c0_i32 = arith.constant 0 : i32
    %c0_i32_0 = arith.constant 0 : i32
    %c0_i32_1 = arith.constant 0 : i32
    return %c0_i32, %c0_i32_0 : i32, i32
  }
  func.func @transform_4(%arg0: i32, %arg1: i32) -> (i32, i32) {
    %c0_i32 = arith.constant 0 : i32
    %c0_i32_0 = arith.constant 0 : i32
    %c0_i32_1 = arith.constant 0 : i32
    return %c0_i32, %c0_i32_0 : i32, i32
  }
  func.func @transform_5(%arg0: i32, %arg1: i32) -> (i32, i32) {
    %c0_i32 = arith.constant 0 : i32
    %c0_i32_0 = arith.constant 0 : i32
    %c0_i32_1 = arith.constant 0 : i32
    return %c0_i32, %c0_i32_0 : i32, i32
  }
  func.func @transform_6(%arg0: i32, %arg1: i32) -> (i32, i32) {
    %c0_i32 = arith.constant 0 : i32
    %c0_i32_0 = arith.constant 0 : i32
    %c0_i32_1 = arith.constant 0 : i32
    return %c0_i32, %c0_i32_0 : i32, i32
  }
  func.func @transform_7(%arg0: i32, %arg1: i32) -> (i32, i32) {
    %c0_i32 = arith.constant 0 : i32
    %c0_i32_0 = arith.constant 0 : i32
    %c0_i32_1 = arith.constant 0 : i32
    return %c0_i32, %c0_i32_0 : i32, i32
  }
  func.func @transform_8(%arg0: i32, %arg1: i32) -> (i32, i32) {
    %c0_i32 = arith.constant 0 : i32
    %c0_i32_0 = arith.constant 0 : i32
    %c0_i32_1 = arith.constant 0 : i32
    return %c0_i32, %c0_i32_0 : i32, i32
  }
  func.func @transform_9(%arg0: i32, %arg1: i32) -> (i32, i32) {
    %c0_i32 = arith.constant 0 : i32
    %c0_i32_0 = arith.constant 0 : i32
    %c0_i32_1 = arith.constant 0 : i32
    return %c0_i32, %c0_i32_0 : i32, i32
  }
  func.func @transform_10(%arg0: i32, %arg1: i32) -> (i32, i32) {
    %c0_i32 = arith.constant 0 : i32
    %c0_i32_0 = arith.constant 0 : i32
    %c0_i32_1 = arith.constant 0 : i32
    return %c0_i32, %c0_i32_0 : i32, i32
  }
  func.func @transform_11(%arg0: i32, %arg1: i32) -> (i32, i32) {
    %c0_i32 = arith.constant 0 : i32
    %c0_i32_0 = arith.constant 0 : i32
    %c0_i32_1 = arith.constant 0 : i32
    return %c0_i32, %c0_i32_0 : i32, i32
  }
  func.func @transform_12(%arg0: i32, %arg1: i32) -> (i32, i32) {
    %c0_i32 = arith.constant 0 : i32
    %c0_i32_0 = arith.constant 0 : i32
    %c0_i32_1 = arith.constant 0 : i32
    return %c0_i32, %c0_i32_0 : i32, i32
  }
  func.func @transform_13(%arg0: i32, %arg1: i32) -> (i32, i32) {
    %c0_i32 = arith.constant 0 : i32
    %c0_i32_0 = arith.constant 0 : i32
    %c0_i32_1 = arith.constant 0 : i32
    return %c0_i32, %c0_i32_0 : i32, i32
  }
  func.func @transform_14(%arg0: i32, %arg1: i32) -> (i32, i32, i32) {
    %c0_i32 = arith.constant 0 : i32
    %c0_i32_0 = arith.constant 0 : i32
    return %arg0, %arg1, %c0_i32 : i32, i32, i32
  }
  func.func @transform_15(%arg0: i32, %arg1: i32) -> (i32, i32, i32, i32) {
    %c0_i32 = arith.constant 0 : i32
    %c0_i32_0 = arith.constant 0 : i32
    %c0_i32_1 = arith.constant 0 : i32
    return %arg0, %arg1, %c0_i32, %c0_i32_0 : i32, i32, i32, i32
  }
}

module attributes {stable_mosaic.version = 11 : i64} {
  func.func @_final_node_head_kernel(%arg0: i32, %arg1: i32, %arg2: memref<1x16x64xbf16, #tpu.memory_space<vmem>>, %arg3: memref<1x16x16x64xbf16, #tpu.memory_space<vmem>>, %arg4: memref<64x64xbf16, #tpu.memory_space<vmem>>, %arg5: memref<1x64xf32, #tpu.memory_space<vmem>>, %arg6: memref<64x64xbf16, #tpu.memory_space<vmem>>, %arg7: memref<1x64xf32, #tpu.memory_space<vmem>>, %arg8: memref<128x64xbf16, #tpu.memory_space<vmem>>, %arg9: memref<1x64xf32, #tpu.memory_space<vmem>>, %arg10: memref<64x128xbf16, #tpu.memory_space<vmem>>, %arg11: memref<1x128xf32, #tpu.memory_space<vmem>>, %arg12: memref<128x128xbf16, #tpu.memory_space<vmem>>, %arg13: memref<1x128xf32, #tpu.memory_space<vmem>>, %arg14: memref<128x256xbf16, #tpu.memory_space<vmem>>, %arg15: memref<1x256xf32, #tpu.memory_space<vmem>>, %arg16: memref<1x16x256xf32, #tpu.memory_space<vmem>>) attributes {dimension_semantics = [#tpu.dimension_semantics<parallel>, #tpu.dimension_semantics<parallel>], iteration_bounds = array<i64: 2, 1>, scalar_prefetch = 0 : i64, scratch_operands = 0 : i64, tpu.core_type = #tpu.core_type<tc>, window_params = [{transform_indices = @transform_0, window_bounds = array<i64: 1, 16, 64>}, {transform_indices = @transform_1, window_bounds = array<i64: 1, 16, 16, 64>}, {pipeline_mode = #tpu.pipeline_mode<synchronous>, transform_indices = @transform_2, window_bounds = array<i64: 64, 64>}, {pipeline_mode = #tpu.pipeline_mode<synchronous>, transform_indices = @transform_3, window_bounds = array<i64: 1, 64>}, {pipeline_mode = #tpu.pipeline_mode<synchronous>, transform_indices = @transform_4, window_bounds = array<i64: 64, 64>}, {pipeline_mode = #tpu.pipeline_mode<synchronous>, transform_indices = @transform_5, window_bounds = array<i64: 1, 64>}, {pipeline_mode = #tpu.pipeline_mode<synchronous>, transform_indices = @transform_6, window_bounds = array<i64: 128, 64>}, {pipeline_mode = #tpu.pipeline_mode<synchronous>, transform_indices = @transform_7, window_bounds = array<i64: 1, 64>}, {pipeline_mode = #tpu.pipeline_mode<synchronous>, transform_indices = @transform_8, window_bounds = array<i64: 64, 128>}, {pipeline_mode = #tpu.pipeline_mode<synchronous>, transform_indices = @transform_9, window_bounds = array<i64: 1, 128>}, {pipeline_mode = #tpu.pipeline_mode<synchronous>, transform_indices = @transform_10, window_bounds = array<i64: 128, 128>}, {pipeline_mode = #tpu.pipeline_mode<synchronous>, transform_indices = @transform_11, window_bounds = array<i64: 1, 128>}, {pipeline_mode = #tpu.pipeline_mode<synchronous>, transform_indices = @transform_12, window_bounds = array<i64: 128, 256>}, {pipeline_mode = #tpu.pipeline_mode<synchronous>, transform_indices = @transform_13, window_bounds = array<i64: 1, 256>}, {transform_indices = @transform_14, window_bounds = array<i64: 1, 16, 256>}]} {
    %c0 = arith.constant 0 : index
    %c0_0 = arith.constant 0 : index
    %c0_1 = arith.constant 0 : index
    %c0_2 = arith.constant 0 : index
    %0 = vector.load %arg3[%c0, %c0_0, %c0_1, %c0_2] : memref<1x16x16x64xbf16, #tpu.memory_space<vmem>>, vector<1x16x16x64xbf16>
    %1 = vector.shape_cast %0 : vector<1x16x16x64xbf16> to vector<16x16x64xbf16>
    %2 = vector.shape_cast %1 : vector<16x16x64xbf16> to vector<256x64xbf16>
    %c0_3 = arith.constant 0 : index
    %c0_4 = arith.constant 0 : index
    %3 = vector.load %arg6[%c0_3, %c0_4] : memref<64x64xbf16, #tpu.memory_space<vmem>>, vector<64x64xbf16>
    %cst = arith.constant dense<0.000000e+00> : vector<256x64xf32>
    %4 = tpu.matmul %2, %3, %cst {dimension_numbers = #tpu.dot_dimension_numbers<[1], [0], [0], [1], [0, 0, 1, 1], [], []>} : vector<256x64xbf16>, vector<64x64xbf16>, vector<256x64xf32> -> vector<256x64xf32>
    %c0_5 = arith.constant 0 : index
    %c0_6 = arith.constant 0 : index
    %5 = vector.load %arg7[%c0_5, %c0_6] : memref<1x64xf32, #tpu.memory_space<vmem>>, vector<1x64xf32>
    %6 = vector.broadcast %5 : vector<1x64xf32> to vector<256x64xf32>
    %7 = arith.addf %4, %6 : vector<256x64xf32>
    %cst_7 = arith.constant 0.000000e+00 : f32
    %8 = vector.broadcast %cst_7 : f32 to vector<256x64xf32>
    %9 = arith.maximumf %7, %8 : vector<256x64xf32>
    %10 = vector.shape_cast %9 : vector<256x64xf32> to vector<16x16x64xf32>
    %11 = tpu.iota {dimensions = array<i32: 0>} : vector<16x64xi32>
    %c8_i32 = arith.constant 8 : i32
    %12 = vector.broadcast %c8_i32 : i32 to vector<16x64xi32>
    %13 = arith.cmpi slt, %11, %12 : vector<16x64xi32>
    %14 = vector.shape_cast %13 : vector<16x64xi1> to vector<1x16x64xi1>
    %cst_8 = arith.constant 0.000000e+00 : f32
    %15 = vector.shape_cast %14 : vector<1x16x64xi1> to vector<1x16x64xi1>
    %16 = vector.broadcast %15 : vector<1x16x64xi1> to vector<16x16x64xi1>
    %17 = vector.broadcast %cst_8 : f32 to vector<16x16x64xf32>
    %18 = arith.select %16, %10, %17 : vector<16x16x64xi1>, vector<16x16x64xf32>
    %cst_9 = arith.constant dense<0.000000e+00> : vector<16x64xf32>
    %19 = vector.multi_reduction <add>, %18, %cst_9 [1] : vector<16x16x64xf32> to vector<16x64xf32>
    %c0_10 = arith.constant 0 : index
    %c0_11 = arith.constant 0 : index
    %c0_12 = arith.constant 0 : index
    %20 = vector.load %arg2[%c0_10, %c0_11, %c0_12] : memref<1x16x64xbf16, #tpu.memory_space<vmem>>, vector<1x16x64xbf16>
    %21 = vector.shape_cast %20 : vector<1x16x64xbf16> to vector<16x64xbf16>
    %c0_13 = arith.constant 0 : index
    %c0_14 = arith.constant 0 : index
    %22 = vector.load %arg4[%c0_13, %c0_14] : memref<64x64xbf16, #tpu.memory_space<vmem>>, vector<64x64xbf16>
    %cst_15 = arith.constant dense<0.000000e+00> : vector<16x64xf32>
    %23 = tpu.matmul %21, %22, %cst_15 {dimension_numbers = #tpu.dot_dimension_numbers<[1], [0], [0], [1], [0, 0, 1, 1], [], []>} : vector<16x64xbf16>, vector<64x64xbf16>, vector<16x64xf32> -> vector<16x64xf32>
    %c0_16 = arith.constant 0 : index
    %c0_17 = arith.constant 0 : index
    %24 = vector.load %arg5[%c0_16, %c0_17] : memref<1x64xf32, #tpu.memory_space<vmem>>, vector<1x64xf32>
    %25 = vector.broadcast %24 : vector<1x64xf32> to vector<16x64xf32>
    %26 = arith.addf %23, %25 : vector<16x64xf32>
    %cst_18 = arith.constant 0.000000e+00 : f32
    %27 = vector.broadcast %cst_18 : f32 to vector<16x64xf32>
    %28 = arith.maximumf %26, %27 : vector<16x64xf32>
    %29 = tpu.concatenate %28, %19 in 1 : vector<16x64xf32>, vector<16x64xf32> -> vector<16x128xf32>
    %30 = arith.truncf %29 : vector<16x128xf32> to vector<16x128xbf16>
    %c0_19 = arith.constant 0 : index
    %c0_20 = arith.constant 0 : index
    %31 = vector.load %arg8[%c0_19, %c0_20] : memref<128x64xbf16, #tpu.memory_space<vmem>>, vector<128x64xbf16>
    %cst_21 = arith.constant dense<0.000000e+00> : vector<16x64xf32>
    %32 = tpu.matmul %30, %31, %cst_21 {dimension_numbers = #tpu.dot_dimension_numbers<[1], [0], [0], [1], [0, 0, 1, 1], [], []>} : vector<16x128xbf16>, vector<128x64xbf16>, vector<16x64xf32> -> vector<16x64xf32>
    %c0_22 = arith.constant 0 : index
    %c0_23 = arith.constant 0 : index
    %33 = vector.load %arg9[%c0_22, %c0_23] : memref<1x64xf32, #tpu.memory_space<vmem>>, vector<1x64xf32>
    %34 = vector.broadcast %33 : vector<1x64xf32> to vector<16x64xf32>
    %35 = arith.addf %32, %34 : vector<16x64xf32>
    %cst_24 = arith.constant 0.000000e+00 : f32
    %36 = vector.broadcast %cst_24 : f32 to vector<16x64xf32>
    %37 = arith.maximumf %35, %36 : vector<16x64xf32>
    %38 = arith.truncf %37 : vector<16x64xf32> to vector<16x64xbf16>
    %c0_25 = arith.constant 0 : index
    %c0_26 = arith.constant 0 : index
    %39 = vector.load %arg10[%c0_25, %c0_26] : memref<64x128xbf16, #tpu.memory_space<vmem>>, vector<64x128xbf16>
    %cst_27 = arith.constant dense<0.000000e+00> : vector<16x128xf32>
    %40 = tpu.matmul %38, %39, %cst_27 {dimension_numbers = #tpu.dot_dimension_numbers<[1], [0], [0], [1], [0, 0, 1, 1], [], []>} : vector<16x64xbf16>, vector<64x128xbf16>, vector<16x128xf32> -> vector<16x128xf32>
    %c0_28 = arith.constant 0 : index
    %c0_29 = arith.constant 0 : index
    %41 = vector.load %arg11[%c0_28, %c0_29] : memref<1x128xf32, #tpu.memory_space<vmem>>, vector<1x128xf32>
    %42 = vector.broadcast %41 : vector<1x128xf32> to vector<16x128xf32>
    %43 = arith.addf %40, %42 : vector<16x128xf32>
    %cst_30 = arith.constant 0.000000e+00 : f32
    %44 = vector.broadcast %cst_30 : f32 to vector<16x128xf32>
    %45 = arith.maximumf %43, %44 : vector<16x128xf32>
    %46 = arith.truncf %45 : vector<16x128xf32> to vector<16x128xbf16>
    %c0_31 = arith.constant 0 : index
    %c0_32 = arith.constant 0 : index
    %47 = vector.load %arg12[%c0_31, %c0_32] : memref<128x128xbf16, #tpu.memory_space<vmem>>, vector<128x128xbf16>
    %cst_33 = arith.constant dense<0.000000e+00> : vector<16x128xf32>
    %48 = tpu.matmul %46, %47, %cst_33 {dimension_numbers = #tpu.dot_dimension_numbers<[1], [0], [0], [1], [0, 0, 1, 1], [], []>} : vector<16x128xbf16>, vector<128x128xbf16>, vector<16x128xf32> -> vector<16x128xf32>
    %c0_34 = arith.constant 0 : index
    %c0_35 = arith.constant 0 : index
    %49 = vector.load %arg13[%c0_34, %c0_35] : memref<1x128xf32, #tpu.memory_space<vmem>>, vector<1x128xf32>
    %50 = vector.broadcast %49 : vector<1x128xf32> to vector<16x128xf32>
    %51 = arith.addf %48, %50 : vector<16x128xf32>
    %cst_36 = arith.constant 0.000000e+00 : f32
    %52 = vector.broadcast %cst_36 : f32 to vector<16x128xf32>
    %53 = arith.maximumf %51, %52 : vector<16x128xf32>
    %54 = arith.truncf %53 : vector<16x128xf32> to vector<16x128xbf16>
    %c0_37 = arith.constant 0 : index
    %c0_38 = arith.constant 0 : index
    %55 = vector.load %arg14[%c0_37, %c0_38] : memref<128x256xbf16, #tpu.memory_space<vmem>>, vector<128x256xbf16>
    %cst_39 = arith.constant dense<0.000000e+00> : vector<16x256xf32>
    %56 = tpu.matmul %54, %55, %cst_39 {dimension_numbers = #tpu.dot_dimension_numbers<[1], [0], [0], [1], [0, 0, 1, 1], [], []>} : vector<16x128xbf16>, vector<128x256xbf16>, vector<16x256xf32> -> vector<16x256xf32>
    %c0_40 = arith.constant 0 : index
    %c0_41 = arith.constant 0 : index
    %57 = vector.load %arg15[%c0_40, %c0_41] : memref<1x256xf32, #tpu.memory_space<vmem>>, vector<1x256xf32>
    %58 = vector.broadcast %57 : vector<1x256xf32> to vector<16x256xf32>
    %59 = arith.addf %56, %58 : vector<16x256xf32>
    %c0_42 = arith.constant 0 : index
    %c0_43 = arith.constant 0 : index
    %c0_44 = arith.constant 0 : index
    %60 = vector.load %arg16[%c0_42, %c0_43, %c0_44] : memref<1x16x256xf32, #tpu.memory_space<vmem>>, vector<1x16x256xf32>
    %61 = vector.shape_cast %60 : vector<1x16x256xf32> to vector<16x256xf32>
    %62 = vector.shape_cast %59 : vector<16x256xf32> to vector<1x16x256xf32>
    tpu.vector_store %arg16[%c0_42, %c0_43, %c0_44], %62 {strides = array<i32>} : memref<1x16x256xf32, #tpu.memory_space<vmem>>, vector<1x16x256xf32>,
    return
  }
  func.func @transform_0(%arg0: i32, %arg1: i32) -> (i32, i32, i32) {
    %c0_i32 = arith.constant 0 : i32
    %c0_i32_0 = arith.constant 0 : i32
    return %arg0, %arg1, %c0_i32 : i32, i32, i32
  }
  func.func @transform_1(%arg0: i32, %arg1: i32) -> (i32, i32, i32, i32) {
    %c0_i32 = arith.constant 0 : i32
    %c0_i32_0 = arith.constant 0 : i32
    %c0_i32_1 = arith.constant 0 : i32
    return %arg0, %arg1, %c0_i32, %c0_i32_0 : i32, i32, i32, i32
  }
  func.func @transform_2(%arg0: i32, %arg1: i32) -> (i32, i32) {
    %c0_i32 = arith.constant 0 : i32
    %c0_i32_0 = arith.constant 0 : i32
    %c0_i32_1 = arith.constant 0 : i32
    return %c0_i32, %c0_i32_0 : i32, i32
  }
  func.func @transform_3(%arg0: i32, %arg1: i32) -> (i32, i32) {
    %c0_i32 = arith.constant 0 : i32
    %c0_i32_0 = arith.constant 0 : i32
    %c0_i32_1 = arith.constant 0 : i32
    return %c0_i32, %c0_i32_0 : i32, i32
  }
  func.func @transform_4(%arg0: i32, %arg1: i32) -> (i32, i32) {
    %c0_i32 = arith.constant 0 : i32
    %c0_i32_0 = arith.constant 0 : i32
    %c0_i32_1 = arith.constant 0 : i32
    return %c0_i32, %c0_i32_0 : i32, i32
  }
  func.func @transform_5(%arg0: i32, %arg1: i32) -> (i32, i32) {
    %c0_i32 = arith.constant 0 : i32
    %c0_i32_0 = arith.constant 0 : i32
    %c0_i32_1 = arith.constant 0 : i32
    return %c0_i32, %c0_i32_0 : i32, i32
  }
  func.func @transform_6(%arg0: i32, %arg1: i32) -> (i32, i32) {
    %c0_i32 = arith.constant 0 : i32
    %c0_i32_0 = arith.constant 0 : i32
    %c0_i32_1 = arith.constant 0 : i32
    return %c0_i32, %c0_i32_0 : i32, i32
  }
  func.func @transform_7(%arg0: i32, %arg1: i32) -> (i32, i32) {
    %c0_i32 = arith.constant 0 : i32
    %c0_i32_0 = arith.constant 0 : i32
    %c0_i32_1 = arith.constant 0 : i32
    return %c0_i32, %c0_i32_0 : i32, i32
  }
  func.func @transform_8(%arg0: i32, %arg1: i32) -> (i32, i32) {
    %c0_i32 = arith.constant 0 : i32
    %c0_i32_0 = arith.constant 0 : i32
    %c0_i32_1 = arith.constant 0 : i32
    return %c0_i32, %c0_i32_0 : i32, i32
  }
  func.func @transform_9(%arg0: i32, %arg1: i32) -> (i32, i32) {
    %c0_i32 = arith.constant 0 : i32
    %c0_i32_0 = arith.constant 0 : i32
    %c0_i32_1 = arith.constant 0 : i32
    return %c0_i32, %c0_i32_0 : i32, i32
  }
  func.func @transform_10(%arg0: i32, %arg1: i32) -> (i32, i32) {
    %c0_i32 = arith.constant 0 : i32
    %c0_i32_0 = arith.constant 0 : i32
    %c0_i32_1 = arith.constant 0 : i32
    return %c0_i32, %c0_i32_0 : i32, i32
  }
  func.func @transform_11(%arg0: i32, %arg1: i32) -> (i32, i32) {
    %c0_i32 = arith.constant 0 : i32
    %c0_i32_0 = arith.constant 0 : i32
    %c0_i32_1 = arith.constant 0 : i32
    return %c0_i32, %c0_i32_0 : i32, i32
  }
  func.func @transform_12(%arg0: i32, %arg1: i32) -> (i32, i32) {
    %c0_i32 = arith.constant 0 : i32
    %c0_i32_0 = arith.constant 0 : i32
    %c0_i32_1 = arith.constant 0 : i32
    return %c0_i32, %c0_i32_0 : i32, i32
  }
  func.func @transform_13(%arg0: i32, %arg1: i32) -> (i32, i32) {
    %c0_i32 = arith.constant 0 : i32
    %c0_i32_0 = arith.constant 0 : i32
    %c0_i32_1 = arith.constant 0 : i32
    return %c0_i32, %c0_i32_0 : i32, i32
  }
  func.func @transform_14(%arg0: i32, %arg1: i32) -> (i32, i32, i32) {
    %c0_i32 = arith.constant 0 : i32
    %c0_i32_0 = arith.constant 0 : i32
    return %arg0, %arg1, %c0_i32 : i32, i32, i32
  }
}

</mosaic_0001>

<bundles_post_ra>
// kernel: weave_enc_forward.3
= control target key start
LH: loop header
LB: loop body
LE: loop exit
PB: predicated region body
PF: predicated region fallthrough
CT: control target
= control target key end

     0   :  { %s2903_s18 = smov 0   ;;  %s2905_s19 = smov 0   ;;  %s3653_s0 = inlined_call_operand.vmem [shape: f32[2,16,23], index: 0, kind: input, shape index: {}, may-alias: {0,1}]   ;;  %s3654_s1 = inlined_call_operand.vmem [shape: f32[2,16,23], index: 1, kind: input, shape index: {}, may-alias: {0,1}]   ;;  %s3655_s2 = inlined_call_operand.vmem [shape: f32[2,16,16,15], index: 2, kind: input, shape index: {}]   ;;  %s3656_s3 = inlined_call_operand.vmem [shape: bf16[23,64], index: 3, kind: input, shape index: {}]   ;;  %s3657_s4 = inlined_call_operand.vmem [shape: f32[1,64], index: 4, kind: input, shape index: {}]   ;;  %s3658_s5 = inlined_call_operand.vmem [shape: bf16[15,128], index: 5, kind: input, shape index: {}]   ;;  %s3659_s6 = inlined_call_operand.vmem [shape: f32[1,128], index: 6, kind: input, shape index: {}]   ;;  %s3660_s7 = inlined_call_operand.vmem [shape: bf16[128,64], index: 7, kind: input, shape index: {}]   ;;  %s3661_s8 = inlined_call_operand.vmem [shape: f32[1,64], index: 8, kind: input, shape index: {}]   ;;  %s3662_s9 = inlined_call_operand.vmem [shape: bf16[23,64], index: 9, kind: input, shape index: {}]   ;;  %s3663_s10 = inlined_call_operand.vmem [shape: bf16[23,64], index: 10, kind: input, shape index: {}]   ;;  %s3664_s11 = inlined_call_operand.vmem [shape: f32[1,64], index: 11, kind: input, shape index: {}]   ;;  %s3665_s12 = inlined_call_operand.vmem [shape: bf16[128,64], index: 12, kind: input, shape index: {}]   ;;  %s3666_s13 = inlined_call_operand.vmem [shape: f32[1,64], index: 13, kind: input, shape index: {}]   ;;  %s3667_s14 = inlined_call_operand.vmem [shape: bf16[2,16,64], index: 14, kind: output, shape index: {0}]   ;;  %s3668_s15 = inlined_call_operand.vmem [shape: bf16[2,16,16,64], index: 15, kind: output, shape index: {1}]  }
   0x1   :  { %s2907_s20 = smov 0  }
   0x2 LB: > { %s38_s21 = sadd.s32 1, %s2812_s19  ;;  %p2417_p0 = scmp.ge.s32.totalorder %s2816_s20, 1  ;;  %s2816_s20 = sphi %s2907_s20, %s26_s20   ;;  %s2812_s19 = sphi %s2905_s19, %s3736_s19   ;;  %s2808_s18 = sphi %s2903_s18, %s3735_s18  }
   0x3   : > { %p40_p1 = scmp.ge.s32.totalorder %s38_s21, 2  ;;  %p491_p2 = scmp.lt.s32.totalorder %s2816_s20, 3 }
   0x5   : > { %s3738_s21 = smov (%p40_p1, %s38_s21), 0  ;;  %p492_p3 = pnand %p2417_p0, %p491_p2 }
   0x7   : > { %495 = sbr.rel (%p492_p3) target bundleno = 928 (0x3a0), region = 76 }
   0xe   : > { %v2771_v0 = vld [vmem:[%s3658_s5] sm:$0xff]   ;;  %vm731_vm0 = vcmask 1046528   ;;  %vm732_vm1 = vcmask 1047552   ;;  %p573_p4 = scmp.lt.s32.totalorder %s2808_s18, 1  ;;  %v2818_v1 = vmov 65535   ;;  %vm1143_vm2 = vcmask 1042432  }
   0xf   : > { %v733_v2 = vsel %vm731_vm0, 4294967295, %v2818_v1  ;;  %vm682_vm3 = vcmask 121856   ;;  %v3681_v12 = vmov 0.0   ;;  %v2772_v13 = vld [vmem:[%s3656_s3] sm:$0xff]   ;;  %v2773_v14 = vld [vmem:[%s3656_s3 + $0x8] ss:$0 sps:$4 sm:$0xff]  }
  0x10   : > { %v734_v3 = vsel %vm732_vm1, %v733_v2, 0  ;;  %s3740_s18 = smov (!%p573_p4, %s2808_s18), 1  ;;  %vm1144_vm4 = vcmask 1043456   ;;  %v1145_v15 = vsel %vm1143_vm2, 4294967295, %v2818_v1  ;;  %vm2820_vm5 = vmmov 0   ;;  %v2774_v62 = vld [vmem:[%s3660_s7] sm:$0xff]  }
  0x11   : > { %v736_v4 = vand.u32 %v2771_v0, %v734_v3  ;;  %s2513_s24 = sshll.u32 %s3740_s18, 8  ;;  %v2956_v27 = vsel %vm1144_vm4, %v1145_v15, 0  ;;  %s2511_s17 = sshll.u32 %s3740_s18, 4  ;;  %vm1139_vm6 = vcmask 187392   ;;  %v2775_v63 = vld [vmem:[%s3660_s7 + $0x8] sm:$0xff]   ;;  %v2776_v0 = vld [vmem:[%s3660_s7 + $0x10] sm:$0xff]  }
  0x12   : > { %s2930_s27 = scalar_lea.vmem %s3655_s2, %s2513_s24  ;;  %v1148_v36 = vand.u32 %v2773_v14, %v2956_v27  ;;  %s580_s24 = scalar_lea.vmem %s3653_s0, %s2511_s17  ;;  %v2777_v1 = vld [vmem:[%s3660_s7 + $0x18] sm:$0xff]   ;;  %v2778_v2 = vld [vmem:[%s3660_s7 + $0x20] sm:$0xff]   ;;  %v2779_v3 = vld [vmem:[%s3660_s7 + $0x28] sm:$0xff]   ;;  %vm972_vm7 = vcmask 523264   ;;  %vm1209_vm8 = vcmask 1041409   ;;  %vm1211_vm9 = vcmask 1042434  }
  0x13   : > { %2609 = vmatprep.subr.bf16.mxu0 %v736_v4  ;;  %2735 = vmatprep.subr.bf16.mxu1 %v736_v4  ;;  %v620_v5 = vld [vmem:[%s2930_s27] sm:$0xff]  ;;  %v621_v6 = vld [vmem:[%s2930_s27 + $0x8] sm:$0xff]  ;;  %v622_v10 = vld [vmem:[%s2930_s27 + $0x10] sm:$0xff]  ;;  %vm1213_vm10 = vcmask 1043459   ;;  %vm1215_vm11 = vcmask 1044484   ;;  %vm1217_vm12 = vcmask 1045509   ;;  %s586_s28 = scalar_lea.vmem %s3654_s1, %s2511_s17 }
  0x14   : > { %2610 = vmatpush3.bf16.msra.mxu0 %v736_v4  ;;  %2736 = vmatpush3.bf16.msra.mxu1 %v736_v4  ;;  %v636_v7 = vld [vmem:[%s2930_s27 + $0x80] sm:$0xff]  ;;  %v652_v8 = vpack.c.bf16 %v621_v6, %v620_v5  ;;  %v637_v9 = vld [vmem:[%s2930_s27 + $0x88] sm:$0xff]  ;;  %v623_v11 = vld [vmem:[%s2930_s27 + $0x18] sm:$0xff]  ;;  %vm1219_vm13 = vcmask 1046534   ;;  %vm1221_vm14 = vcmask 1047559   ;;  %s2821_s23 = smov 64  }
  0x15   : > { %2643 = vmatprep.subr.bf16.mxu1 %v3681_v12  ;;  %v660_v16 = vpack.c.bf16 %v637_v9, %v636_v7  ;;  %v653_v17 = vpack.c.bf16 %v623_v11, %v622_v10  ;;  %v638_v18 = vld [vmem:[%s2930_s27 + $0x90] sm:$0xff]  ;;  %v639_v19 = vld [vmem:[%s2930_s27 + $0x98] sm:$0xff]  ;;  %v624_v20 = vld [vmem:[%s2930_s27 + $0x20] sm:$0xff]  ;;  %vm1361_vm15 = vcmask 519168   ;;  %s2515_s17 = sshll.u32 %s3740_s18, 7 }
  0x16   : > { %2611 = vmatprep.mubr.msk.bf16.mxu0 %vm682_vm3, %v652_v8  ;;  %v661_v21 = vpack.c.bf16 %v639_v19, %v638_v18  ;;  %v625_v22 = vld [vmem:[%s2930_s27 + $0x28] sm:$0xff]  ;;  %v640_v23 = vld [vmem:[%s2930_s27 + $0xa0] sm:$0xff]  ;;  %v626_v28 = vld [vmem:[%s2930_s27 + $0x30] sm:$0xff] }
  0x17   : > { %v641_v24 = vld [vmem:[%s2930_s27 + $0xa8] sm:$0xff]  ;;  %2627 = vmatprep.mubr.msk.bf16.mxu1 %vm682_vm3, %v660_v16  ;;  %2612 = vmatmul.mubr.msk.bf16.vlgmr.msra.gmra.mrb[0].mxu0 %vm682_vm3, %v653_v17  ;;  %v654_v25 = vpack.c.bf16 %v625_v22, %v624_v20  ;;  %v627_v29 = vld [vmem:[%s2930_s27 + $0x38] sm:$0xff]  ;;  %v642_v30 = vld [vmem:[%s2930_s27 + $0xb0] sm:$0xff] }
  0x18   : > { %v662_v26 = vpack.c.bf16 %v641_v24, %v640_v23  ;;  %2628 = vmatmul.mubr.msk.bf16.vlgmr.msra.gmra.mrb[0].mxu1 %vm682_vm3, %v661_v21  ;;  %v643_v31 = vld [vmem:[%s2930_s27 + $0xb8] sm:$0xff]  ;;  %v628_v32 = vld [vmem:[%s2930_s27 + $0x40] sm:$0xff]  ;;  %v629_v33 = vld [vmem:[%s2930_s27 + $0x48] sm:$0xff]  ;;  %v655_v37 = vpack.c.bf16 %v627_v29, %v626_v28 }
  0x19   : > { %2615 = vmatprep.mubr.msk.bf16.mxu0 %vm682_vm3, %v654_v25  ;;  %v644_v34 = vld [vmem:[%s2930_s27 + $0xc0] sm:$0xff]  ;;  %v645_v35 = vld [vmem:[%s2930_s27 + $0xc8] sm:$0xff]  ;;  %2644 = vmatpush3.bf16.msra.mxu1 %v2772_v13  ;;  %v663_v38 = vpack.c.bf16 %v643_v31, %v642_v30  ;;  %v656_v39 = vpack.c.bf16 %v629_v33, %v628_v32  ;;  %v630_v41 = vld [vmem:[%s2930_s27 + $0x50] sm:$0xff] }
  0x1a   : > { %2631 = vmatprep.mubr.msk.bf16.mxu1 %vm682_vm3, %v662_v26  ;;  %2645 = vmatprep.subr.bf16.mxu1 %v3681_v12  ;;  %v664_v40 = vpack.c.bf16 %v645_v35, %v644_v34  ;;  %v631_v42 = vld [vmem:[%s2930_s27 + $0x58] sm:$0xff]  ;;  %v646_v43 = vld [vmem:[%s2930_s27 + $0xd0] sm:$0xff]  ;;  %v632_v45 = vld [vmem:[%s2930_s27 + $0x60] sm:$0xff] }
  0x1b   : > { %v647_v44 = vld [vmem:[%s2930_s27 + $0xd8] sm:$0xff]  ;;  %v633_v46 = vld [vmem:[%s2930_s27 + $0x68] sm:$0xff]  ;;  %v648_v47 = vld [vmem:[%s2930_s27 + $0xe0] sm:$0xff]  ;;  %v657_v49 = vpack.c.bf16 %v631_v42, %v630_v41 }
  0x1c   : > { %v649_v48 = vld [vmem:[%s2930_s27 + $0xe8] sm:$0xff]  ;;  %v665_v50 = vpack.c.bf16 %v647_v44, %v646_v43  ;;  %v658_v51 = vpack.c.bf16 %v633_v46, %v632_v45  ;;  %v634_v53 = vld [vmem:[%s2930_s27 + $0x70] sm:$0xff]  ;;  %v635_v54 = vld [vmem:[%s2930_s27 + $0x78] sm:$0xff] }
  0x1d   : > { %2646 = vmatpush3.bf16.msra.mxu1 %v1148_v36  ;;  %v666_v52 = vpack.c.bf16 %v649_v48, %v648_v47  ;;  %v650_v55 = vld [vmem:[%s2930_s27 + $0xf0] sm:$0xff]  ;;  %v651_v56 = vld [vmem:[%s2930_s27 + $0xf8] sm:$0xff]  ;;  %v659_v57 = vpack.c.bf16 %v635_v54, %v634_v53  ;;  %v1117_v59 = vld [vmem:[%s580_s24] sm:$0xff] }
  0x1e   : > { %2651 = vmatprep.subr.bf16.mxu1 %v3681_v12  ;;  %v667_v58 = vpack.c.bf16 %v651_v56, %v650_v55  ;;  %v1118_v60 = vld [vmem:[%s580_s24 + $0x8] sm:$0xff]  ;;  %v2780_v4 = vld [vmem:[%s3660_s7 + $0x30] sm:$0xff]   ;;  %v3039_v5 = vld [vmem:[%s3659_s6] ss:$0 sm:$0xff] }
  0x1f   : > { %2616 = vmatmul.mubr.msk.bf16.gmra.mrb[4].mxu0 %vm682_vm3, %v655_v37  ;;  %v3002_v61 = vpack.c.bf16 %v1118_v60, %v1117_v59 }
  0x20   : > { %2632 = vmatmul.mubr.msk.bf16.gmra.mrb[4].mxu1 %vm682_vm3, %v663_v38  ;;  %2619 = vmatprep.mubr.msk.bf16.mxu0 %vm682_vm3, %v656_v39 }
  0x21   : > { %2635 = vmatprep.mubr.msk.bf16.mxu1 %vm682_vm3, %v664_v40 }
  0x27   : > { %2620 = vmatmul.mubr.msk.bf16.gmra.mrb[8].mxu0 %vm682_vm3, %v657_v49 }
  0x28   : > { %2636 = vmatmul.mubr.msk.bf16.gmra.mrb[8].mxu1 %vm682_vm3, %v665_v50  ;;  %2623 = vmatprep.mubr.msk.bf16.mxu0 %vm682_vm3, %v658_v51 }
  0x29   : > { %2639 = vmatprep.mubr.msk.bf16.mxu1 %vm682_vm3, %v666_v52 }
  0x2f   : > { %2624 = vmatmul.mubr.msk.bf16.gmra.mrb[12].mxu0 %vm682_vm3, %v659_v57 }
  0x30   : > { %2640 = vmatmul.mubr.msk.bf16.gmra.mrb[12].mxu1 %vm682_vm3, %v667_v58 }
  0x31   : > { %2647 = vmatprep.mubr.msk.bf16.mxu1 %vm2820_vm5, %v3681_v12 }
  0x38   : > { %2648 = vmatmul.mubr.msk.bf16.vlgmr.msra.gmra.mrb[16].mxu1 %vm1139_vm6, %v3002_v61 }
  0x39   : > { %2667 = vmatprep.mubr.msk.bf16.mxu1 %vm2820_vm5, %v3681_v12  ;;  %2652 = vmatpush3.bf16.msra.mxu1 %v2774_v62 }
  0x3a   : > { %2653 = vmatprep.subr.bf16.mxu1 %v3681_v12 }
  0x3d   : > { %2654 = vmatpush3.bf16.msra.mxu1 %v2775_v63 }
  0x3e   : > { %2655 = vmatprep.subr.bf16.mxu1 %v3681_v12 }
  0x41   : > { %2656 = vmatpush3.bf16.msra.mxu1 %v2776_v0 }
  0x42   : > { %2657 = vmatprep.subr.bf16.mxu1 %v3681_v12 }
  0x45   : > { %2658 = vmatpush3.bf16.msra.mxu1 %v2777_v1 }
  0x46   : > { %2659 = vmatprep.subr.bf16.mxu1 %v3681_v12 }
  0x49   : > { %2660 = vmatpush3.bf16.msra.mxu1 %v2778_v2 }
  0x4a   : > { %2661 = vmatprep.subr.bf16.mxu1 %v3681_v12 }
  0x4d   : > { %2662 = vmatpush3.bf16.msra.mxu1 %v2779_v3 }
  0x4e   : > { %2663 = vmatprep.subr.bf16.mxu1 %v3681_v12 }
  0x51   : > { %2664 = vmatpush3.bf16.msra.mxu1 %v2780_v4 }
  0x52   : > { %2665 = vmatprep.subr.bf16.mxu1 %v3681_v12 }
  0xea   : > { %v2613_v6 = vpop.f32.mrb[0].mxu0 }
  0xeb   : > { %v3042_v7 = vadd.f32 %v2613_v6, %v3039_v5  ;;  %v2629_v8 = vpop.f32.mrb[0].mxu1  ;;  %v772_v9 = vpop.f32.mrb[1].mxu0 }
  0xec   : > { %v3045_v10 = vadd.f32 %v2629_v8, %v3039_v5  ;;  %v3048_v11 = vadd.f32 %v3039_v5, %v772_v9  ;;  %v836_v13 = vpop.f32.mrb[1].mxu1  ;;  %v2614_v14 = vpop.f32.mrb[2].mxu0 }
  0xed   : > { %v3679_v15 = vmax.f32 %v3042_v7, 0.0  ;;  %v3052_v16 = vadd.f32 %v3039_v5, %v836_v13  ;;  %v3055_v17 = vadd.f32 %v2614_v14, %v3039_v5  ;;  %v2630_v18 = vpop.f32.mrb[2].mxu1  ;;  %v775_v19 = vpop.f32.mrb[3].mxu0 }
  0xee   : > { %3694 = vst [vmem:[#allocation2_spill] sm:$0xff] %v3045_v10  ;;  %v3671_v20 = vmax.f32 %v3045_v10, 0.0  ;;  %v3680_v21 = vmax.f32 %v3048_v11, 0.0  ;;  %v3060_v22 = vadd.f32 %v2630_v18, %v3039_v5  ;;  %v3063_v23 = vadd.f32 %v3039_v5, %v775_v19  ;;  %v839_v24 = vpop.f32.mrb[3].mxu1 }
  0xef   : > { %3695 = vst [vmem:[#allocation3_spill] sm:$0xff] %v3052_v16  ;;  %v982_v25 = vsel %vm972_vm7, %v3679_v15, 0.0  ;;  %v3673_v26 = vmax.f32 %v3052_v16, 0.0  ;;  %v3070_v28 = vadd.f32 %v3039_v5, %v839_v24 }
  0xf0   : > { %v985_v29 = vrot.slane %v982_v25, 4  ;;  %v1054_v30 = vsel %vm972_vm7, %v3671_v20, 0.0  ;;  %v973_v31 = vsel %vm972_vm7, %v3680_v21, 0.0 }
  0xf1   : > { %v1057_v32 = vrot.slane %v1054_v30, 4  ;;  %v976_v33 = vrot.slane %v973_v31, 4  ;;  %v1045_v34 = vsel %vm972_vm7, %v3673_v26, 0.0 }
  0xf2   : > { %v986_v35 = vadd.f32 %v985_v29, %v982_v25  ;;  %v1048_v36 = vrot.slane %v1045_v34, 4  ;;  %v2617_v37 = vpop.f32.mrb[4].mxu0 }
  0xf3   : > { %v1058_v38 = vadd.f32 %v1057_v32, %v1054_v30  ;;  %v977_v39 = vadd.f32 %v976_v33, %v973_v31  ;;  %v3082_v40 = vadd.f32 %v2617_v37, %v3039_v5  ;;  %v2633_v41 = vpop.f32.mrb[4].mxu1  ;;  %v788_v42 = vpop.f32.mrb[5].mxu0 }
  0xf4   : > { %v1049_v43 = vadd.f32 %v1048_v36, %v1045_v34  ;;  %v3085_v44 = vadd.f32 %v2633_v41, %v3039_v5  ;;  %v3088_v45 = vadd.f32 %v3039_v5, %v788_v42  ;;  %v852_v46 = vpop.f32.mrb[5].mxu1  ;;  %v2618_v47 = vpop.f32.mrb[6].mxu0  ;;  %v987_v48 = vrot.slane %v986_v35, 2 }
  0xf5   : > { %v3675_v49 = vmax.f32 %v3082_v40, 0.0  ;;  %v3092_v50 = vadd.f32 %v3039_v5, %v852_v46  ;;  %v2634_v51 = vpop.f32.mrb[6].mxu1  ;;  %v791_v52 = vpop.f32.mrb[7].mxu0  ;;  %v1059_v53 = vrot.slane %v1058_v38, 2  ;;  %v978_v54 = vrot.slane %v977_v39, 2 }
  0xf6   : > { %3696 = vst [vmem:[#allocation4_spill] sm:$0xff] %v3085_v44  ;;  %v3669_v55 = vmax.f32 %v3085_v44, 0.0  ;;  %v3678_v56 = vmax.f32 %v3088_v45, 0.0  ;;  %v855_v57 = vpop.f32.mrb[7].mxu1  ;;  %v1050_v60 = vrot.slane %v1049_v43, 2  ;;  %v988_v0 = vadd.f32 %v987_v48, %v986_v35 }
  0xf7   : > { %3697 = vst [vmem:[#allocation5_spill] sm:$0xff] %v3092_v50  ;;  %v1000_v58 = vsel %vm972_vm7, %v3675_v49, 0.0  ;;  %v3670_v59 = vmax.f32 %v3092_v50, 0.0  ;;  %v1060_v2 = vadd.f32 %v1059_v53, %v1058_v38  ;;  %v979_v3 = vadd.f32 %v978_v54, %v977_v39 }
  0xf8   : > { %v1003_v62 = vrot.slane %v1000_v58, 4  ;;  %v1072_v63 = vsel %vm972_vm7, %v3669_v55, 0.0  ;;  %v991_v1 = vsel %vm972_vm7, %v3678_v56, 0.0  ;;  %v1051_v19 = vadd.f32 %v1050_v60, %v1049_v43 }
  0xf9   : > { %v1075_v4 = vrot.slane %v1072_v63, 4  ;;  %v994_v6 = vrot.slane %v991_v1, 4  ;;  %v1063_v13 = vsel %vm972_vm7, %v3670_v59, 0.0  ;;  %v989_v30 = vrot.slane %v988_v0, 1 }
  0xfa   : > { %v2621_v8 = vpop.f32.mrb[8].mxu0  ;;  %v1004_v9 = vadd.f32 %v1003_v62, %v1000_v58  ;;  %v1066_v24 = vrot.slane %v1063_v13, 4  ;;  %v3110_v31 = vadd.f32 %v2618_v47, %v3039_v5  ;;  %v3113_v32 = vadd.f32 %v2634_v51, %v3039_v5 }
  0xfb   : > { %v2637_v14 = vpop.f32.mrb[8].mxu1  ;;  %v804_v18 = vpop.f32.mrb[9].mxu0  ;;  %v1061_v35 = vrot.slane %v1060_v2, 1  ;;  %v980_v36 = vrot.slane %v979_v3, 1  ;;  %v1076_v37 = vadd.f32 %v1075_v4, %v1072_v63  ;;  %v995_v38 = vadd.f32 %v994_v6, %v991_v1 }
  0xfc   : > { %v868_v25 = vpop.f32.mrb[9].mxu1  ;;  %v2622_v29 = vpop.f32.mrb[10].mxu0  ;;  %v1005_v41 = vrot.slane %v1004_v9, 2  ;;  %v3116_v42 = vadd.f32 %v3039_v5, %v791_v52  ;;  %v1052_v43 = vrot.slane %v1051_v19, 1  ;;  %v1067_v46 = vadd.f32 %v1066_v24, %v1063_v13 }
  0xfd   : > { %v2638_v33 = vpop.f32.mrb[10].mxu1  ;;  %v807_v34 = vpop.f32.mrb[11].mxu0  ;;  %v3119_v48 = vadd.f32 %v3039_v5, %v855_v57  ;;  %v990_v47 = vadd.f32 %v989_v30, %v988_v0  ;;  %v3122_v51 = vadd.f32 %v2621_v8, %v3039_v5  ;;  %v3125_v53 = vadd.f32 %v2637_v14, %v3039_v5 }
  0xfe   : > { %v871_v39 = vpop.f32.mrb[11].mxu1  ;;  %v1062_v54 = vadd.f32 %v1061_v35, %v1060_v2  ;;  %v981_v58 = vadd.f32 %v980_v36, %v979_v3  ;;  %v1077_v60 = vrot.slane %v1076_v37, 2  ;;  %v996_v62 = vrot.slane %v995_v38, 2 }
  0xff   : > { %3698 = vst [vmem:[#allocation6_spill] sm:$0xff] %v3125_v53  ;;  %v1006_v52 = vadd.f32 %v1005_v41, %v1004_v9  ;;  %v3674_v1 = vmax.f32 %v3122_v51, 0.0  ;;  %v3672_v4 = vmax.f32 %v3125_v53, 0.0  ;;  %v3130_v57 = vadd.f32 %v3039_v5, %v804_v18 }
 0x100   : > { %v1053_v8 = vadd.f32 %v1052_v43, %v1051_v19  ;;  %v1068_v13 = vrot.slane %v1067_v46, 2  ;;  %v3133_v14 = vadd.f32 %v3039_v5, %v868_v25  ;;  %v3136_v2 = vadd.f32 %v2622_v29, %v3039_v5 }
 0x101   : > { %v1018_v9 = vsel %vm972_vm7, %v3674_v1, 0.0  ;;  %v1090_v18 = vsel %vm972_vm7, %v3672_v4, 0.0  ;;  %v3676_v19 = vmax.f32 %v3130_v57, 0.0  ;;  %v3148_v30 = vadd.f32 %v2638_v33, %v3039_v5 }
 0x102   : > { %v2625_v63 = vpop.f32.mrb[12].mxu0  ;;  %3699 = vst [vmem:[#allocation7_spill] sm:$0xff] %v3133_v14  ;;  %v3155_v35 = vsel %vm1209_vm8, %v990_v47, %v981_v58  ;;  %v997_v36 = vadd.f32 %v996_v62, %v995_v38  ;;  %v1021_v41 = vrot.slane %v1018_v9, 4  ;;  %v1093_v43 = vrot.slane %v1090_v18, 4 }
 0x103   : > { %v2641_v0 = vpop.f32.mrb[12].mxu1  ;;  %v820_v6 = vpop.f32.mrb[13].mxu0  ;;  %v1007_v59 = vrot.slane %v1006_v52, 1  ;;  %v3159_v20 = vadd.f32 %v1077_v60, %v1076_v37  ;;  %v1009_v33 = vsel %vm972_vm7, %v3676_v19, 0.0  ;;  %v3677_v4 = vmax.f32 %v3133_v14, 0.0 }
 0x104   : > { %v884_v3 = vpop.f32.mrb[13].mxu1  ;;  %v3138_v24 = vpop.f32.mrb[14].mxu0  ;;  %v1223_v26 = vsel %vm1209_vm8, %v1062_v54, %v1053_v8  ;;  %v1069_v1 = vadd.f32 %v1068_v13, %v1067_v46  ;;  %v1022_v49 = vadd.f32 %v1021_v41, %v1018_v9  ;;  %v1012_v47 = vrot.slane %v1009_v33, 4 }
 0x105   : > { %v3150_v25 = vpop.f32.mrb[14].mxu1  ;;  %v3152_v29 = vpop.f32.mrb[15].mxu0  ;;  %v1081_v38 = vsel %vm972_vm7, %v3677_v4, 0.0  ;;  %v3170_v58 = vadd.f32 %v3039_v5, %v807_v34  ;;  %v3173_v37 = vadd.f32 %v3039_v5, %v871_v39  ;;  %v3176_v60 = vadd.f32 %v2625_v63, %v3039_v5 }
 0x106   : > { %v3157_v55 = vpop.f32.mrb[15].mxu1  ;;  %v998_v62 = vrot.slane %v997_v36, 1  ;;  %v1094_v19 = vadd.f32 %v1093_v43, %v1090_v18  ;;  %v1013_v54 = vadd.f32 %v1012_v47, %v1009_v33  ;;  %v1084_v46 = vrot.slane %v1081_v38, 4 }
 0x107   : > { %v3178_v8 = vadd.f32 %v1007_v59, %v1006_v52  ;;  %v1079_v13 = vrot.slane %v3159_v20, 1  ;;  %v3683_v9 = vmax.f32 %v3176_v60, 0.0  ;;  %v3183_v41 = vadd.f32 %v2641_v0, %v3039_v5 }
 0x108   : > { %v1070_v39 = vrot.slane %v1069_v1, 1  ;;  %v1023_v4 = vrot.slane %v1022_v49, 2  ;;  %v1014_v56 = vrot.slane %v1013_v54, 2  ;;  %v1085_v63 = vadd.f32 %v1084_v46, %v1081_v38 }
 0x109   : > { %3700 = vst [vmem:[#allocation8_spill] sm:$0xff] %v3183_v41  ;;  %v1036_v18 = vsel %vm972_vm7, %v3683_v9, 0.0  ;;  %v3687_v59 = vmax.f32 %v3183_v41, 0.0  ;;  %v3192_v52 = vadd.f32 %v3039_v5, %v820_v6  ;;  %v3195_v43 = vadd.f32 %v3039_v5, %v884_v3 }
 0x10a   : > { %v999_v33 = vadd.f32 %v998_v62, %v997_v36  ;;  %v1095_v47 = vrot.slane %v1094_v19, 2  ;;  %v1015_v21 = vadd.f32 %v1014_v56, %v1013_v54  ;;  %v1086_v12 = vrot.slane %v1085_v63, 2 }
 0x10b   : > { %v3185_v34 = vpop.f32.mrb[16].mxu1  ;;  %v1039_v38 = vrot.slane %v1036_v18, 4  ;;  %v1108_v46 = vsel %vm972_vm7, %v3687_v59, 0.0  ;;  %v3693_v9 = vmax.f32 %v3192_v52, 0.0  ;;  %v3692_v6 = vmax.f32 %v3195_v43, 0.0 }
 0x10c   : > { %v2649_v15 = vpop.f32.mrb[17].mxu1  ;;  %v1071_v3 = vadd.f32 %v1070_v39, %v1069_v1  ;;  %v1024_v53 = vadd.f32 %v1023_v4, %v1022_v49  ;;  %v1016_v14 = vrot.slane %v1015_v21, 1  ;;  %v1087_v44 = vadd.f32 %v1086_v12, %v1085_v63 }
 0x10d   : > { %v3197_v0 = vpop.f32.mrb[18].mxu1  ;;  %v1040_v36 = vadd.f32 %v1039_v38, %v1036_v18  ;;  %v1111_v62 = vrot.slane %v1108_v46, 4  ;;  %v1027_v56 = vsel %vm972_vm7, %v3693_v9, 0.0  ;;  %v1099_v54 = vsel %vm972_vm7, %v3692_v6, 0.0 }
 0x10e   : > { %v2650_v15 = vpop.f32.mrb[19].mxu1  ;;  %v1088_v59 = vrot.slane %v1087_v44, 1  ;;  %v1030_v41 = vrot.slane %v1027_v56, 4  ;;  %v1102_v50 = vrot.slane %v1099_v54, 4  ;;  %v3212_v49 = vadd.f32 %v3138_v24, %v3039_v5 }
 0x10f   : > { %v1096_v15 = vadd.f32 %v1095_v47, %v1094_v19  ;;  %v1041_v10 = vrot.slane %v1040_v36, 2  ;;  %v1112_v16 = vadd.f32 %v1111_v62, %v1108_v46  ;;  %v3216_v12 = vadd.f32 %v3150_v25, %v3039_v5 }
 0x110   : > { %v1212_v1 = vsel %vm1211_vm9, %v999_v33, %v3155_v35  ;;  %v1031_v4 = vadd.f32 %v1030_v41, %v1027_v56  ;;  %v1103_v39 = vadd.f32 %v1102_v50, %v1099_v54  ;;  %v3222_v19 = vadd.f32 %v3039_v5, %v3152_v29 }
 0x111   : > { %v1224_v63 = vsel %vm1211_vm9, %v1071_v3, %v1223_v26  ;;  %v1017_v18 = vadd.f32 %v1016_v14, %v1015_v21  ;;  %v1042_v47 = vadd.f32 %v1041_v10, %v1040_v36  ;;  %v1113_v38 = vrot.slane %v1112_v16, 2  ;;  %v2781_v10 = vld [vmem:[%s3660_s7 + $0x38] sm:$0xff]  }
 0x112   : > { %v1089_v24 = vadd.f32 %v1088_v59, %v1087_v44  ;;  %v1032_v46 = vrot.slane %v1031_v4, 2  ;;  %v1104_v62 = vrot.slane %v1103_v39, 2  ;;  %v3227_v25 = vadd.f32 %v3039_v5, %v3157_v55  ;;  %2666 = vmatpush3.bf16.msra.mxu1 %v2781_v10 }
 0x113   : > { %v1080_v35 = vadd.f32 %v1079_v13, %v3159_v20  ;;  %v1025_v41 = vrot.slane %v1024_v53, 1  ;;  %v1097_v50 = vrot.slane %v1096_v15, 1  ;;  %v1114_v33 = vadd.f32 %v1113_v38, %v1112_v16 }
 0x114   : > { %v1033_v56 = vadd.f32 %v1032_v46, %v1031_v4  ;;  %v1105_v29 = vadd.f32 %v1104_v62, %v1103_v39  ;;  %v1043_v21 = vrot.slane %v1042_v47, 1  ;;  %v1214_v44 = vsel %vm1213_vm10, %v3178_v8, %v1212_v1 }
 0x115   : > { %v1115_v26 = vrot.slane %v1114_v33, 1  ;;  %v1225_v5 = vsel %vm1213_vm10, %v1080_v35, %v1224_v63  ;;  %v1216_v20 = vsel %vm1215_vm11, %v1017_v18, %v1214_v44  ;;  %v1026_v13 = vadd.f32 %v1025_v41, %v1024_v53  ;;  %v2786_v53 = vld [vmem:[%s3665_s12] sm:$0xff]  }
 0x116   : > { %v1034_v55 = vrot.slane %v1033_v56, 1  ;;  %v1106_v14 = vrot.slane %v1105_v29, 1  ;;  %v1226_v16 = vsel %vm1215_vm11, %v1089_v24, %v1225_v5  ;;  %v1098_v59 = vadd.f32 %v1097_v50, %v1096_v15  ;;  %2687 = vmatprep.subr.bf16.mxu0 %v2786_v53  ;;  %v2446_v15 = vld [vmem:[%s3657_s4] ss:$0 sm:$0xff]  ;;  %v2785_v5 = vld [vmem:[%s3663_s10 + $0x8] ss:$0 sps:$4 sm:$0xff]  }
 0x117   : > { %v3701_v3 = vmov 0.0   ;;  %v1044_v4 = vadd.f32 %v1043_v21, %v1042_v47  ;;  %v1116_v39 = vadd.f32 %v1115_v26, %v1114_v33  ;;  %v1218_v8 = vsel %vm1217_vm12, %v1026_v13, %v1216_v20  ;;  %2688 = vmatpush3.bf16.msra.mxu0 %v2786_v53  ;;  %v2782_v21 = vld [vmem:[%s3662_s9] sm:$0xff]   ;;  %v1365_v20 = vld [vmem:[%s586_s28 + $0x8] sm:$0xff] }
 0x118   : > { %2671 = vmatprep.subr.bf16.mxu1 %v3701_v3  ;;  %v1035_v36 = vadd.f32 %v1034_v55, %v1033_v56  ;;  %v1107_v54 = vadd.f32 %v1106_v14, %v1105_v29  ;;  %v1227_v1 = vsel %vm1217_vm12, %v1098_v59, %v1226_v16  ;;  %v1185_v47 = vadd.f32 %v2446_v15, %v3185_v34  ;;  %v2783_v34 = vld [vmem:[%s3662_s9 + $0x8] ss:$0 sps:$4 sm:$0xff]   ;;  %v2784_v44 = vld [vmem:[%s3663_s10] sm:$0xff]  }
 0x119   : > { %v1188_v62 = vadd.f32 %v2446_v15, %v3197_v0  ;;  %v1380_v0 = vand.u32 %v2783_v34, %v2956_v27  ;;  %v1439_v55 = vand.u32 %v2785_v5, %v2956_v27  ;;  %v1364_v14 = vld [vmem:[%s586_s28] sm:$0xff]  ;;  %v2787_v13 = vld [vmem:[%s3665_s12 + $0x8] sm:$0xff]   ;;  %v2788_v27 = vld [vmem:[%s3665_s12 + $0x10] sm:$0xff]   ;;  %v906_v34 = vmax.f32 %v3110_v31, 0.0 }
 0x11a   : > { %v1220_v63 = vsel %vm1219_vm13, %v1035_v36, %v1218_v8  ;;  %v1228_v38 = vsel %vm1219_vm13, %v1107_v54, %v1227_v1  ;;  %v1191_v41 = vmax.f32 %v1185_v47, 0.0  ;;  %v1366_v16 = vpack.c.bf16 %v1365_v20, %v1364_v14  ;;  %2689 = vmatprep.subr.bf16.mxu0 %v2787_v13  ;;  %v2790_v59 = vld [vmem:[%s3665_s12 + $0x20] sm:$0xff]   ;;  %v2792_v36 = vld [vmem:[%s3665_s12 + $0x30] sm:$0xff]   ;;  %v2793_v54 = vld [vmem:[%s3665_s12 + $0x38] sm:$0xff]  }
 0x11b   : > { %v1222_v18 = vsel %vm1221_vm14, %v1044_v4, %v1220_v63  ;;  %v1229_v46 = vsel %vm1221_vm14, %v1116_v39, %v1228_v38  ;;  %v1192_v50 = vmax.f32 %v1188_v62, 0.0  ;;  %2690 = vmatpush3.bf16.msra.mxu0 %v2787_v13  ;;  %v2822_v4 = vmov 1966171168   ;;  %v2450_v1 = vld [vmem:[%s3661_s8] ss:$0 sm:$0xff] }
 0x11c   : > { %v2766_v24 = vpack.i.bf16 %v1229_v46, %v1222_v18  ;;  %2691 = vmatprep.subr.bf16.mxu0 %v2788_v27  ;;  %v1486_v39 = vunpack.c.l.s4 %v2822_v4  ;;  %v1488_v8 = vlaneseq }
 0x11e   : > { %2767 = vrot.lane.b32.xlu0 %v2766_v24, %s2821_s23  ;;  %s2514_s23 = sshll.u32 %s3740_s18, 3  ;;  %v1487_v46 = vunpack.c.0.s8 %v1486_v39  ;;  %v1489_v24 = vshrl.u32 %v1488_v8, 7 }
 0x11f   : > { %2692 = vmatpush3.bf16.msra.mxu0 %v2788_v27  ;;  %s606_s26 = scalar_lea.vmem %s3667_s14, %s2514_s23  ;;  %v908_v27 = vmax.f32 %v3170_v58, 0.0  ;;  %s3549_s23 = scalar_lea.vmem %s3668_s15, %s2515_s17 }
 0x190   : > { %v2768_v35 = vpop.permute.xlu0 %2767 }
 0x191   : > { %v2770_v33 = vunpack.i.h.bf16 %v2768_v35  ;;  %v2769_v56 = vunpack.i.l.bf16 %v2768_v35 }
 0x193   : > { %v1236_v29 = vsel %vm972_vm7, %v1191_v41, %v2769_v56  ;;  %v1237_v10 = vsel %vm972_vm7, %v1192_v50, %v2770_v33  ;;  %v1490_v50 = vsub.s32 %v1487_v46, %v1489_v24  ;;  %v902_v33 = vmax.f32 %v3055_v17, 0.0 }
 0x194   : > { %v1238_v26 = vpack.c.bf16 %v1237_v10, %v1236_v29  ;;  %v900_v29 = vmax.f32 %v3063_v23, 0.0  ;;  %v3704_v23 = vmax.f32 %v3088_v45, 0.0 }
 0x196   : > { %2668 = vmatmul.mubr.bf16.vlgmr.msra.gmra.mrb[20].mxu1 %v1238_v26 }
 0x197   : > { %2672 = vmatpush3.bf16.msra.mxu1 %v2782_v21  ;;  %2675 = vmatprep.mubr.msk.bf16.mxu1 %vm2820_vm5, %v3701_v3 }
 0x198   : > { %2673 = vmatprep.subr.bf16.mxu1 %v3701_v3 }
 0x19b   : > { %2674 = vmatpush3.bf16.msra.mxu1 %v1380_v0  ;;  %v904_v0 = vmax.f32 %v3116_v42, 0.0 }
 0x19c   : > { %2679 = vmatprep.subr.bf16.mxu1 %v3701_v3 }
 0x19e   : > { %2676 = vmatmul.mubr.msk.bf16.vlgmr.msra.gmra.mrb[24].mxu1 %vm1139_vm6, %v3002_v61  ;;  %v2789_v61 = vld [vmem:[%s3665_s12 + $0x18] sm:$0xff]  }
 0x19f   : > { %2680 = vmatpush3.bf16.msra.mxu1 %v2784_v44  ;;  %2683 = vmatprep.mubr.msk.bf16.mxu1 %vm2820_vm5, %v3701_v3 }
 0x1a0   : > { %2681 = vmatprep.subr.bf16.mxu1 %v3701_v3  ;;  %2693 = vmatprep.subr.bf16.mxu0 %v2789_v61  ;;  %v2791_v3 = vld [vmem:[%s3665_s12 + $0x28] sm:$0xff]  }
 0x1a1   : > { %2694 = vmatpush3.bf16.msra.mxu0 %v2789_v61 }
 0x1a2   : > { %2695 = vmatprep.subr.bf16.mxu0 %v2790_v59 }
 0x1a3   : > { %2682 = vmatpush3.bf16.msra.mxu1 %v1439_v55 }
 0x1a5   : > { %2696 = vmatpush3.bf16.msra.mxu0 %v2790_v59  ;;  %v1584_v59 = vsub.s32 0, %v1489_v24 }
 0x1a6   : > { %2684 = vmatmul.mubr.msk.bf16.vlgmr.msra.gmra.mrb[28].mxu1 %vm1139_vm6, %v1366_v16  ;;  %2697 = vmatprep.subr.bf16.mxu0 %v2791_v3 }
 0x1a9   : > { %2698 = vmatpush3.bf16.msra.mxu0 %v2791_v3 }
 0x1aa   : > { %2699 = vmatprep.subr.bf16.mxu0 %v2792_v36 }
 0x1ad   : > { %2700 = vmatpush3.bf16.msra.mxu0 %v2792_v36 }
 0x1ae   : > { %2701 = vmatprep.subr.bf16.mxu0 %v2793_v54 }
 0x1b1   : > { %2702 = vmatpush3.bf16.msra.mxu0 %v2793_v54 }
 0x269   : > { %v1344_v63 = vpop.f32.mrb[20].mxu1 }
 0x26a   : > { %v1345_v38 = vadd.f32 %v2450_v1, %v1344_v63  ;;  %v2669_v18 = vpop.f32.mrb[21].mxu1 }
 0x26b   : > { %v1347_v53 = vpop.f32.mrb[22].mxu1 }
 0x26c   : > { %v1351_v15 = vmax.f32 %v1345_v38, 0.0  ;;  %v1348_v47 = vadd.f32 %v2450_v1, %v1347_v53  ;;  %v2670_v62 = vpop.f32.mrb[23].mxu1 }
 0x26e   : > { %v2516_v35 = vpack.c.bf16 %v1351_v15, %v1351_v15  ;;  %v1352_v41 = vmax.f32 %v1348_v47, 0.0 }
 0x270   : > { %1362 = vst.msk [vmem:[%s606_s26] sm:$0xf] %vm1361_vm15, %v2516_v35  ;;  %v2517_v10 = vpack.c.bf16 %v1352_v41, %v1352_v41 }
 0x271   : > { %v1416_v44 = vpop.f32.mrb[24].mxu1 }
 0x272   : > { %1363 = vst.msk [vmem:[%s606_s26 + $0x4] sm:$0xf] %vm1361_vm15, %v2517_v10  ;;  %v1484_v14 = vcombine.high %v1416_v44, %v1416_v44  ;;  %v1491_v20 = vrot.slane %v1416_v44, %v1490_v50  ;;  %v2677_v16 = vpop.f32.mrb[25].mxu1 }
 0x273   : > { %v1419_v3 = vpop.f32.mrb[26].mxu1 }
 0x274   : > { %v1498_v36 = vrot.slane %v1484_v14, %v1490_v50  ;;  %v1499_v54 = vcombine.high %v1491_v20, %v1491_v20  ;;  %v1507_v4 = vrot.slane %v1491_v20, %v1490_v50  ;;  %v1533_v39 = vcombine.high %v1419_v3, %v1419_v3  ;;  %v2678_v8 = vpop.f32.mrb[27].mxu1 }
 0x275   : > { %v1540_v18 = vrot.slane %v1419_v3, %v1490_v50 }
 0x276   : > { %v1500_v46 = vcombine.high %v1498_v36, %v1498_v36  ;;  %v1514_v53 = vrot.slane %v1498_v36, %v1490_v50  ;;  %v1521_v15 = vrot.slane %v1499_v54, %v1490_v50  ;;  %v1529_v47 = vcombine.high %v1507_v4, %v1507_v4 }
 0x277   : > { %v1585_v62 = vrot.slane %v1507_v4, %v1584_v59  ;;  %v1547_v35 = vrot.slane %v1533_v39, %v1490_v50  ;;  %v1548_v24 = vcombine.high %v1540_v18, %v1540_v18  ;;  %v1556_v41 = vrot.slane %v1540_v18, %v1490_v50 }
 0x278   : > { %v1528_v10 = vrot.slane %v1500_v46, %v1490_v50  ;;  %v1530_v44 = vcombine.high %v1514_v53, %v1514_v53  ;;  %v1531_v14 = vcombine.high %v1521_v15, %v1521_v15  ;;  %v1589_v20 = vrot.slane %v1521_v15, %v1584_v59 }
 0x279   : > { %v1593_v16 = vrot.slane %v1529_v47, %v1584_v59  ;;  %v3325_v8 = vrot.slane %v1514_v53, %v1584_v59  ;;  %v1549_v6 = vcombine.high %v1547_v35, %v1547_v35  ;;  %v1563_v13 = vrot.slane %v1547_v35, %v1490_v50  ;;  %v3327_v61 = vpop.f32.mrb[28].mxu1  ;;  %v3336_v53 = vld [vmem:[%s3664_s11] ss:$0 sm:$0xff] }
 0x27a   : > { %v1532_v3 = vcombine.high %v1528_v10, %v1528_v10  ;;  %v1597_v38 = vrot.slane %v1531_v14, %v1584_v59  ;;  %v1605_v36 = vrot.slane %v1528_v10, %v1584_v59  ;;  %v3329_v54 = vrot.slane %v1530_v44, %v1584_v59  ;;  %v2685_v4 = vpop.f32.mrb[29].mxu1 }
 0x27b   : > { %v1570_v39 = vrot.slane %v1548_v24, %v1490_v50  ;;  %v1577_v26 = vrot.slane %v1549_v6, %v1490_v50  ;;  %v1578_v18 = vcombine.high %v1556_v41, %v1556_v41  ;;  %v1579_v46 = vcombine.high %v1563_v13, %v1563_v13  ;;  %v3331_v5 = vpop.f32.mrb[30].mxu1 }
 0x27c   : > { %v3338_v15 = vrot.slane %v1532_v3, %v1584_v59  ;;  %v3340_v47 = vrot.slane %v1556_v41, %v1584_v59  ;;  %v3342_v35 = vrot.slane %v1563_v13, %v1584_v59  ;;  %v2686_v10 = vpop.f32.mrb[31].mxu1  ;;  %v1662_v44 = vadd.f32 %v1585_v62, %v3327_v61 }
 0x27d   : > { %v1580_v24 = vcombine.high %v1570_v39, %v1570_v39  ;;  %v1581_v6 = vcombine.high %v1577_v26, %v1577_v26  ;;  %v3345_v50 = vrot.slane %v1570_v39, %v1584_v59  ;;  %v3347_v14 = vrot.slane %v1578_v18, %v1584_v59 }
 0x27e   : > { %v3349_v4 = vrot.slane %v1577_v26, %v1584_v59  ;;  %v3351_v56 = vrot.slane %v1579_v46, %v1584_v59  ;;  %v1663_v3 = vadd.f32 %v1585_v62, %v3331_v5  ;;  %v1701_v41 = vadd.f32 %v3336_v53, %v1662_v44 }
 0x27f   : > { %v3355_v21 = vrot.slane %v1580_v24, %v1584_v59  ;;  %v3357_v13 = vrot.slane %v1581_v6, %v1584_v59  ;;  %v1664_v10 = vadd.f32 %v1589_v20, %v3327_v61  ;;  %v1665_v1 = vadd.f32 %v1589_v20, %v3331_v5 }
 0x280   : > { %v1702_v39 = vadd.f32 %v3336_v53, %v1663_v3  ;;  %v1733_v18 = vmax.f32 %v1701_v41, 0.0  ;;  %v1666_v26 = vadd.f32 %v1593_v16, %v3327_v61  ;;  %v1667_v46 = vadd.f32 %v1593_v16, %v3331_v5 }
 0x281   : > { %v1703_v63 = vadd.f32 %v3336_v53, %v1664_v10  ;;  %v1704_v62 = vadd.f32 %v3336_v53, %v1665_v1  ;;  %v1668_v44 = vadd.f32 %v1597_v38, %v3327_v61  ;;  %v1669_v59 = vadd.f32 %v1597_v38, %v3331_v5 }
 0x282   : > { %v1734_v24 = vmax.f32 %v1702_v39, 0.0  ;;  %v3702_v6 = vmax.f32 %v3048_v11, 0.0  ;;  %v1705_v3 = vadd.f32 %v3336_v53, %v1666_v26  ;;  %v1706_v41 = vadd.f32 %v3336_v53, %v1667_v46 }
 0x283   : > { %v1735_v9 = vmax.f32 %v1703_v63, 0.0  ;;  %v1736_v55 = vmax.f32 %v1704_v62, 0.0  ;;  %v1707_v16 = vadd.f32 %v3336_v53, %v1668_v44  ;;  %v1708_v10 = vadd.f32 %v3336_v53, %v1669_v59 }
 0x284   : > { %v1765_v20 = vsel %vm972_vm7, %v1733_v18, %v3702_v6  ;;  %v1766_v1 = vsel %vm972_vm7, %v1734_v24, %v900_v29  ;;  %v1737_v38 = vmax.f32 %v1705_v3, 0.0  ;;  %v1738_v39 = vmax.f32 %v1706_v41, 0.0 }
 0x285   : > { %v1670_v11 = vadd.f32 %v3325_v8, %v3327_v61  ;;  %v1797_v18 = vpack.c.bf16 %v1766_v1, %v1765_v20  ;;  %v3703_v26 = vmax.f32 %v3042_v7, 0.0  ;;  %v1768_v63 = vsel %vm972_vm7, %v1736_v55, %v902_v33 }
 0x286   : > { %v1739_v62 = vmax.f32 %v1707_v16, 0.0  ;;  %v1769_v29 = vsel %vm972_vm7, %v1737_v38, %v3704_v23  ;;  %v1770_v59 = vsel %vm972_vm7, %v1738_v39, %v904_v0  ;;  %v1740_v24 = vmax.f32 %v1708_v10, 0.0 }
 0x287   : > { %v1767_v46 = vsel %vm972_vm7, %v1735_v9, %v3703_v26  ;;  %2703 = vmatprep.mubr.bf16.mxu0 %v1797_v18  ;;  %v1799_v6 = vpack.c.bf16 %v1770_v59, %v1769_v29  ;;  %v3705_v7 = vmax.f32 %v3082_v40, 0.0  ;;  %v1671_v17 = vadd.f32 %v3325_v8, %v3331_v5 }
 0x288   : > { %v1798_v44 = vpack.c.bf16 %v1768_v63, %v1767_v46  ;;  %v1709_v33 = vadd.f32 %v3336_v53, %v1670_v11  ;;  %v1772_v45 = vsel %vm972_vm7, %v1740_v24, %v906_v34  ;;  %v1672_v42 = vadd.f32 %v1605_v36, %v3327_v61 }
 0x289   : > { %v1771_v9 = vsel %vm972_vm7, %v1739_v62, %v3705_v7  ;;  %v1673_v0 = vadd.f32 %v1605_v36, %v3331_v5  ;;  %v1674_v55 = vadd.f32 %v3329_v54, %v3327_v61  ;;  %v1710_v20 = vadd.f32 %v3336_v53, %v1671_v17 }
 0x28a   : > { %2704 = vmatmul.mubr.bf16.vlgmr.msra.gmra.mrb[16].mxu0 %v1798_v44  ;;  %v1800_v40 = vpack.c.bf16 %v1772_v45, %v1771_v9  ;;  %v1741_v3 = vmax.f32 %v1709_v33, 0.0  ;;  %v1675_v8 = vadd.f32 %v3329_v54, %v3331_v5  ;;  %v1711_v41 = vadd.f32 %v3336_v53, %v1672_v42 }
 0x28b   : > { %2707 = vmatprep.mubr.bf16.mxu0 %v1799_v6  ;;  %v1712_v31 = vadd.f32 %v3336_v53, %v1673_v0  ;;  %v1713_v34 = vadd.f32 %v3336_v53, %v1674_v55  ;;  %v1676_v36 = vadd.f32 %v3338_v15, %v3327_v61  ;;  %v1742_v16 = vmax.f32 %v1710_v20, 0.0 }
 0x28c   : > { %v3706_v10 = vmax.f32 %v3130_v57, 0.0  ;;  %v1714_v38 = vadd.f32 %v3336_v53, %v1675_v8  ;;  %v1677_v39 = vadd.f32 %v3338_v15, %v3331_v5  ;;  %v1743_v54 = vmax.f32 %v1711_v41, 0.0 }
 0x28d   : > { %v1744_v11 = vmax.f32 %v1712_v31, 0.0  ;;  %v1745_v18 = vmax.f32 %v1713_v34, 0.0  ;;  %v1715_v26 = vadd.f32 %v3336_v53, %v1676_v36  ;;  %v1774_v46 = vsel %vm972_vm7, %v1742_v16, %v908_v27  ;;  %v3713_v34 = vld [vmem:[#allocation3_spill] sm:$0xff] }
 0x28e   : > { %v1773_v1 = vsel %vm972_vm7, %v1741_v3, %v3706_v10  ;;  %v1746_v63 = vmax.f32 %v1714_v38, 0.0  ;;  %v1716_v62 = vadd.f32 %v3336_v53, %v1677_v39  ;;  %v1678_v57 = vadd.f32 %v3340_v47, %v3327_v61 }
 0x28f   : > { %v1801_v44 = vpack.c.bf16 %v1774_v46, %v1773_v1  ;;  %v3707_v23 = vmax.f32 %v3122_v51, 0.0  ;;  %v3708_v29 = vmax.f32 %v3136_v2, 0.0  ;;  %v3709_v24 = vmax.f32 %v3192_v52, 0.0 }
 0x290   : > { %v3710_v6 = vmax.f32 %v3222_v19, 0.0  ;;  %v1747_v9 = vmax.f32 %v1715_v26, 0.0  ;;  %v1748_v17 = vmax.f32 %v1716_v62, 0.0  ;;  %v1679_v51 = vadd.f32 %v3340_v47, %v3331_v5  ;;  %v3716_v26 = vld [vmem:[#allocation2_spill] sm:$0xff] }
 0x291   : > { %v1775_v15 = vsel %vm972_vm7, %v1743_v54, %v3707_v23  ;;  %v1776_v59 = vsel %vm972_vm7, %v1744_v11, %v3708_v29  ;;  %v1777_v58 = vsel %vm972_vm7, %v1745_v18, %v3709_v24  ;;  %v1717_v2 = vadd.f32 %v3336_v53, %v1678_v57  ;;  %v3719_v29 = vld [vmem:[#allocation5_spill] sm:$0xff] }
 0x292   : > { %v1802_v27 = vpack.c.bf16 %v1776_v59, %v1775_v15  ;;  %v1778_v7 = vsel %vm972_vm7, %v1746_v63, %v3710_v6  ;;  %2708 = vmatmul.mubr.bf16.gmra.mrb[20].mxu0 %v1800_v40  ;;  %v1680_v45 = vadd.f32 %v3345_v50, %v3327_v61  ;;  %v3711_v52 = vmax.f32 %v3176_v60, 0.0 }
 0x293   : > { %v1803_v33 = vpack.c.bf16 %v1778_v7, %v1777_v58  ;;  %2711 = vmatprep.mubr.bf16.mxu0 %v1801_v44  ;;  %v3712_v19 = vmax.f32 %v3212_v49, 0.0  ;;  %v1681_v55 = vadd.f32 %v3345_v50, %v3331_v5  ;;  %v1682_v47 = vadd.f32 %v3347_v14, %v3327_v61 }
 0x294   : > { %v1779_v42 = vsel %vm972_vm7, %v1747_v9, %v3711_v52  ;;  %v1718_v20 = vadd.f32 %v3336_v53, %v1679_v51  ;;  %v1749_v3 = vmax.f32 %v1717_v2, 0.0  ;;  %v1719_v8 = vadd.f32 %v3336_v53, %v1680_v45  ;;  %v3722_v45 = vld [vmem:[#allocation4_spill] sm:$0xff] }
 0x295   : > { %v1780_v0 = vsel %vm972_vm7, %v1748_v17, %v3712_v19  ;;  %v1720_v60 = vadd.f32 %v3336_v53, %v1681_v55  ;;  %v1683_v41 = vadd.f32 %v3347_v14, %v3331_v5  ;;  %v1721_v49 = vadd.f32 %v3336_v53, %v1682_v47 }
 0x296   : > { %v1804_v40 = vpack.c.bf16 %v1780_v0, %v1779_v42  ;;  %v1684_v31 = vadd.f32 %v3355_v21, %v3327_v61  ;;  %v1750_v50 = vmax.f32 %v1718_v20, 0.0  ;;  %v3714_v36 = vmax.f32 %v3713_v34, 0.0 }
 0x297   : > { %v1751_v10 = vmax.f32 %v1719_v8, 0.0  ;;  %v1685_v1 = vadd.f32 %v3355_v21, %v3331_v5  ;;  %v1752_v38 = vmax.f32 %v1720_v60, 0.0  ;;  %v1722_v39 = vadd.f32 %v3336_v53, %v1683_v41  ;;  %v3725_v8 = vld [vmem:[#allocation7_spill] sm:$0xff] }
 0x298   : > { %v1781_v16 = vsel %vm972_vm7, %v1749_v3, %v3714_v36  ;;  %v1753_v54 = vmax.f32 %v1721_v49, 0.0  ;;  %v1723_v14 = vadd.f32 %v3336_v53, %v1684_v31  ;;  %v3715_v11 = vmax.f32 %v3070_v28, 0.0 }
 0x299   : > { %v3717_v46 = vmax.f32 %v3716_v26, 0.0  ;;  %v1724_v62 = vadd.f32 %v3336_v53, %v1685_v1  ;;  %v1686_v57 = vadd.f32 %v3342_v35, %v3327_v61  ;;  %v3718_v44 = vmax.f32 %v3060_v22, 0.0  ;;  %v3728_v1 = vld [vmem:[#allocation6_spill] sm:$0xff] }
 0x29a   : > { %v1782_v18 = vsel %vm972_vm7, %v1750_v50, %v3715_v11  ;;  %v1754_v15 = vmax.f32 %v1722_v39, 0.0  ;;  %v3720_v59 = vmax.f32 %v3719_v29, 0.0  ;;  %2712 = vmatmul.mubr.bf16.gmra.mrb[24].mxu0 %v1802_v27  ;;  %v1755_v58 = vmax.f32 %v1723_v14, 0.0 }
 0x29b   : > { %v1783_v63 = vsel %vm972_vm7, %v1751_v10, %v3717_v46  ;;  %v1805_v21 = vpack.c.bf16 %v1782_v18, %v1781_v16  ;;  %v1784_v23 = vsel %vm972_vm7, %v1752_v38, %v3718_v44  ;;  %v1756_v6 = vmax.f32 %v1724_v62, 0.0  ;;  %2715 = vmatprep.mubr.bf16.mxu0 %v1803_v33  ;;  %v3733_v44 = vld [vmem:[#allocation8_spill] sm:$0xff] }
 0x29c   : > { %v1785_v28 = vsel %vm972_vm7, %v1753_v54, %v3720_v59  ;;  %v1806_v24 = vpack.c.bf16 %v1784_v23, %v1783_v63  ;;  %v1687_v7 = vadd.f32 %v3342_v35, %v3331_v5  ;;  %v3721_v9 = vmax.f32 %v3119_v48, 0.0 }
 0x29d   : > { %v1725_v22 = vadd.f32 %v3336_v53, %v1686_v57  ;;  %v1688_v51 = vadd.f32 %v3349_v4, %v3327_v61  ;;  %v1689_v2 = vadd.f32 %v3349_v4, %v3331_v5  ;;  %v3723_v52 = vmax.f32 %v3722_v45, 0.0 }
 0x29e   : > { %v1786_v17 = vsel %vm972_vm7, %v1754_v15, %v3721_v9  ;;  %v3724_v35 = vmax.f32 %v3113_v32, 0.0  ;;  %v1726_v48 = vadd.f32 %v3336_v53, %v1687_v7  ;;  %v1690_v4 = vadd.f32 %v3351_v56, %v3327_v61 }
 0x29f   : > { %v1807_v27 = vpack.c.bf16 %v1786_v17, %v1785_v28  ;;  %v1787_v42 = vsel %vm972_vm7, %v1755_v58, %v3723_v52  ;;  %v1757_v0 = vmax.f32 %v1725_v22, 0.0  ;;  %v1727_v55 = vadd.f32 %v3336_v53, %v1688_v51 }
 0x2a0   : > { %v1788_v33 = vsel %vm972_vm7, %v1756_v6, %v3724_v35  ;;  %v1728_v47 = vadd.f32 %v3336_v53, %v1689_v2  ;;  %v1758_v20 = vmax.f32 %v1726_v48, 0.0  ;;  %v1691_v3 = vadd.f32 %v3351_v56, %v3331_v5 }
 0x2a1   : > { %v1808_v19 = vpack.c.bf16 %v1788_v33, %v1787_v42  ;;  %v1692_v32 = vadd.f32 %v3357_v13, %v3327_v61  ;;  %v3726_v60 = vmax.f32 %v3725_v8, 0.0  ;;  %v1759_v49 = vmax.f32 %v1727_v55, 0.0 }
 0x2a2   : > { %v1760_v31 = vmax.f32 %v1728_v47, 0.0  ;;  %v1693_v50 = vadd.f32 %v3357_v13, %v3331_v5  ;;  %v3727_v34 = vmax.f32 %v3173_v37, 0.0  ;;  %v1729_v16 = vadd.f32 %v3336_v53, %v1690_v4  ;;  %2716 = vmatmul.mubr.bf16.gmra.mrb[28].mxu0 %v1804_v40 }
 0x2a3   : > { %v1789_v41 = vsel %vm972_vm7, %v1757_v0, %v3726_v60  ;;  %v1730_v56 = vadd.f32 %v3336_v53, %v1691_v3  ;;  %v1731_v10 = vadd.f32 %v3336_v53, %v1692_v32  ;;  %v3729_v38 = vmax.f32 %v3728_v1, 0.0  ;;  %2719 = vmatprep.mubr.bf16.mxu0 %v1805_v21 }
 0x2a4   : > { %v1790_v36 = vsel %vm972_vm7, %v1758_v20, %v3727_v34  ;;  %v3730_v54 = vmax.f32 %v3148_v30, 0.0  ;;  %v1732_v5 = vadd.f32 %v3336_v53, %v1693_v50  ;;  %v1761_v13 = vmax.f32 %v1729_v16, 0.0 }
 0x2a5   : > { %v1809_v61 = vpack.c.bf16 %v1790_v36, %v1789_v41  ;;  %v1791_v39 = vsel %vm972_vm7, %v1759_v49, %v3729_v38  ;;  %v1762_v11 = vmax.f32 %v1730_v56, 0.0  ;;  %v1763_v18 = vmax.f32 %v1731_v10, 0.0 }
 0x2a6   : > { %v1792_v14 = vsel %vm972_vm7, %v1760_v31, %v3730_v54  ;;  %v930_v26 = vmax.f32 %v3216_v12, 0.0  ;;  %v1764_v46 = vmax.f32 %v1732_v5, 0.0  ;;  %v3731_v63 = vmax.f32 %v3195_v43, 0.0  ;;  %v3540_v43 = vld [vmem:[%s3666_s13] ss:$0 sm:$0xff] }
 0x2a7   : > { %v1810_v37 = vpack.c.bf16 %v1792_v14, %v1791_v39  ;;  %v3732_v30 = vmax.f32 %v3227_v25, 0.0  ;;  %v3734_v53 = vmax.f32 %v3733_v44, 0.0 }
 0x2a8   : > { %v1793_v62 = vsel %vm972_vm7, %v1761_v13, %v3731_v63  ;;  %v1796_v15 = vsel %vm972_vm7, %v1764_v46, %v930_v26 }
 0x2a9   : > { %v1794_v57 = vsel %vm972_vm7, %v1762_v11, %v3732_v30  ;;  %v1795_v40 = vsel %vm972_vm7, %v1763_v18, %v3734_v53 }
 0x2aa   : > { %v1811_v23 = vpack.c.bf16 %v1794_v57, %v1793_v62  ;;  %v1812_v29 = vpack.c.bf16 %v1796_v15, %v1795_v40  ;;  %2720 = vmatmul.mubr.bf16.gmra.mrb[32].mxu0 %v1806_v24 }
 0x2ab   : > { %2723 = vmatprep.mubr.bf16.mxu0 %v1807_v27 }
 0x2b2   : > { %2724 = vmatmul.mubr.bf16.gmra.mrb[36].mxu0 %v1808_v19 }
 0x2b3   : > { %2727 = vmatprep.mubr.bf16.mxu0 %v1809_v61 }
 0x2ba   : > { %2728 = vmatmul.mubr.bf16.gmra.mrb[40].mxu0 %v1810_v37 }
 0x2bb   : > { %2731 = vmatprep.mubr.bf16.mxu0 %v1811_v23 }
 0x2c2   : > { %2732 = vmatmul.mubr.bf16.gmra.mrb[44].mxu0 %v1812_v29 }
 0x35d   : > { %v2705_v12 = vpop.f32.mrb[16].mxu0 }
 0x35e   : > { %v1927_v25 = vadd.f32 %v2705_v12, %v3540_v43  ;;  %v1918_v21 = vpop.f32.mrb[17].mxu0 }
 0x35f   : > { %v1919_v59 = vadd.f32 %v3540_v43, %v1918_v21  ;;  %v2706_v28 = vpop.f32.mrb[18].mxu0 }
 0x360   : > { %v2047_v24 = vmax.f32 %v1927_v25, 0.0  ;;  %v1930_v58 = vadd.f32 %v2706_v28, %v3540_v43  ;;  %v1921_v6 = vpop.f32.mrb[19].mxu0 }
 0x361   : > { %v2045_v7 = vmax.f32 %v1919_v59, 0.0  ;;  %v1922_v9 = vadd.f32 %v3540_v43, %v1921_v6 }
 0x362   : > { %v2520_v17 = vpack.c.bf16 %v2047_v24, %v2047_v24  ;;  %v2048_v22 = vmax.f32 %v1930_v58, 0.0 }
 0x363   : > { %v2518_v51 = vpack.c.bf16 %v2045_v7, %v2045_v7  ;;  %v2046_v2 = vmax.f32 %v1922_v9, 0.0 }
 0x364   : > { %2207 = vst.msk [vmem:[%s3549_s23 + $0x8] sm:$0xf] %vm1361_vm15, %v2520_v17  ;;  %v2521_v27 = vpack.c.bf16 %v2048_v22, %v2048_v22 }
 0x365   : > { %2205 = vst.msk [vmem:[%s3549_s23] sm:$0xf] %vm1361_vm15, %v2518_v51  ;;  %v2519_v45 = vpack.c.bf16 %v2046_v2, %v2046_v2  ;;  %v2709_v52 = vpop.f32.mrb[20].mxu0 }
 0x366   : > { %2208 = vst.msk [vmem:[%s3549_s23 + $0xc] sm:$0xf] %vm1361_vm15, %v2521_v27  ;;  %v1943_v42 = vadd.f32 %v2709_v52, %v3540_v43  ;;  %v1934_v35 = vpop.f32.mrb[21].mxu0 }
 0x367   : > { %2206 = vst.msk [vmem:[%s3549_s23 + $0x4] sm:$0xf] %vm1361_vm15, %v2519_v45  ;;  %v1935_v33 = vadd.f32 %v3540_v43, %v1934_v35  ;;  %v2710_v48 = vpop.f32.mrb[22].mxu0 }
 0x368   : > { %v2051_v19 = vmax.f32 %v1943_v42, 0.0  ;;  %v1946_v0 = vadd.f32 %v2710_v48, %v3540_v43  ;;  %v1937_v55 = vpop.f32.mrb[23].mxu0 }
 0x369   : > { %v2049_v47 = vmax.f32 %v1935_v33, 0.0  ;;  %v1938_v20 = vadd.f32 %v3540_v43, %v1937_v55 }
 0x36a   : > { %v2524_v4 = vpack.c.bf16 %v2051_v19, %v2051_v19  ;;  %v2052_v3 = vmax.f32 %v1946_v0, 0.0 }
 0x36b   : > { %v2522_v32 = vpack.c.bf16 %v2049_v47, %v2049_v47  ;;  %v2050_v8 = vmax.f32 %v1938_v20, 0.0 }
 0x36c   : > { %2211 = vst.msk [vmem:[%s3549_s23 + $0x18] sm:$0xf] %vm1361_vm15, %v2524_v4  ;;  %v2525_v60 = vpack.c.bf16 %v2052_v3, %v2052_v3 }
 0x36d   : > { %2209 = vst.msk [vmem:[%s3549_s23 + $0x10] sm:$0xf] %vm1361_vm15, %v2522_v32  ;;  %v2523_v41 = vpack.c.bf16 %v2050_v8, %v2050_v8  ;;  %v2713_v49 = vpop.f32.mrb[24].mxu0 }
 0x36e   : > { %2212 = vst.msk [vmem:[%s3549_s23 + $0x1c] sm:$0xf] %vm1361_vm15, %v2525_v60  ;;  %v1959_v31 = vadd.f32 %v2713_v49, %v3540_v43  ;;  %v1950_v50 = vpop.f32.mrb[25].mxu0 }
 0x36f   : > { %2210 = vst.msk [vmem:[%s3549_s23 + $0x14] sm:$0xf] %vm1361_vm15, %v2523_v41  ;;  %v1951_v34 = vadd.f32 %v3540_v43, %v1950_v50  ;;  %v2714_v36 = vpop.f32.mrb[26].mxu0 }
 0x370   : > { %v2055_v16 = vmax.f32 %v1959_v31, 0.0  ;;  %v1962_v56 = vadd.f32 %v2714_v36, %v3540_v43  ;;  %v1953_v10 = vpop.f32.mrb[27].mxu0 }
 0x371   : > { %v2053_v61 = vmax.f32 %v1951_v34, 0.0  ;;  %v1954_v1 = vadd.f32 %v3540_v43, %v1953_v10 }
 0x372   : > { %v2528_v38 = vpack.c.bf16 %v2055_v16, %v2055_v16  ;;  %v2056_v39 = vmax.f32 %v1962_v56, 0.0 }
 0x373   : > { %v2526_v54 = vpack.c.bf16 %v2053_v61, %v2053_v61  ;;  %v2054_v14 = vmax.f32 %v1954_v1, 0.0 }
 0x374   : > { %2215 = vst.msk [vmem:[%s3549_s23 + $0x28] sm:$0xf] %vm1361_vm15, %v2528_v38  ;;  %v2529_v5 = vpack.c.bf16 %v2056_v39, %v2056_v39 }
 0x375   : > { %2213 = vst.msk [vmem:[%s3549_s23 + $0x20] sm:$0xf] %vm1361_vm15, %v2526_v54  ;;  %v2527_v37 = vpack.c.bf16 %v2054_v14, %v2054_v14  ;;  %v2717_v13 = vpop.f32.mrb[28].mxu0 }
 0x376   : > { %2216 = vst.msk [vmem:[%s3549_s23 + $0x2c] sm:$0xf] %vm1361_vm15, %v2529_v5  ;;  %v1975_v11 = vadd.f32 %v2717_v13, %v3540_v43  ;;  %v1966_v18 = vpop.f32.mrb[29].mxu0 }
 0x377   : > { %2214 = vst.msk [vmem:[%s3549_s23 + $0x24] sm:$0xf] %vm1361_vm15, %v2527_v37  ;;  %v1967_v26 = vadd.f32 %v3540_v43, %v1966_v18  ;;  %v2718_v46 = vpop.f32.mrb[30].mxu0 }
 0x378   : > { %v2059_v63 = vmax.f32 %v1975_v11, 0.0  ;;  %v1978_v62 = vadd.f32 %v2718_v46, %v3540_v43  ;;  %v1969_v30 = vpop.f32.mrb[31].mxu0 }
 0x379   : > { %v2057_v57 = vmax.f32 %v1967_v26, 0.0  ;;  %v1970_v44 = vadd.f32 %v3540_v43, %v1969_v30 }
 0x37a   : > { %v2532_v53 = vpack.c.bf16 %v2059_v63, %v2059_v63  ;;  %v2060_v40 = vmax.f32 %v1978_v62, 0.0 }
 0x37b   : > { %v2530_v23 = vpack.c.bf16 %v2057_v57, %v2057_v57  ;;  %v2058_v15 = vmax.f32 %v1970_v44, 0.0 }
 0x37c   : > { %2219 = vst.msk [vmem:[%s3549_s23 + $0x38] sm:$0xf] %vm1361_vm15, %v2532_v53  ;;  %v2533_v29 = vpack.c.bf16 %v2060_v40, %v2060_v40 }
 0x37d   : > { %2217 = vst.msk [vmem:[%s3549_s23 + $0x30] sm:$0xf] %vm1361_vm15, %v2530_v23  ;;  %v2531_v12 = vpack.c.bf16 %v2058_v15, %v2058_v15  ;;  %v2721_v25 = vpop.f32.mrb[32].mxu0 }
 0x37e   : > { %2220 = vst.msk [vmem:[%s3549_s23 + $0x3c] sm:$0xf] %vm1361_vm15, %v2533_v29  ;;  %v1991_v21 = vadd.f32 %v2721_v25, %v3540_v43  ;;  %v1982_v59 = vpop.f32.mrb[33].mxu0 }
 0x37f   : > { %2218 = vst.msk [vmem:[%s3549_s23 + $0x34] sm:$0xf] %vm1361_vm15, %v2531_v12  ;;  %v1983_v28 = vadd.f32 %v3540_v43, %v1982_v59  ;;  %v2722_v24 = vpop.f32.mrb[34].mxu0 }
 0x380   : > { %v2063_v58 = vmax.f32 %v1991_v21, 0.0  ;;  %v1994_v6 = vadd.f32 %v2722_v24, %v3540_v43  ;;  %v1985_v7 = vpop.f32.mrb[35].mxu0 }
 0x381   : > { %v2061_v9 = vmax.f32 %v1983_v28, 0.0  ;;  %v1986_v17 = vadd.f32 %v3540_v43, %v1985_v7 }
 0x382   : > { %v2536_v22 = vpack.c.bf16 %v2063_v58, %v2063_v58  ;;  %v2064_v51 = vmax.f32 %v1994_v6, 0.0 }
 0x383   : > { %v2534_v2 = vpack.c.bf16 %v2061_v9, %v2061_v9  ;;  %v2062_v27 = vmax.f32 %v1986_v17, 0.0 }
 0x384   : > { %2223 = vst.msk [vmem:[%s3549_s23 + $0x48] sm:$0xf] %vm1361_vm15, %v2536_v22  ;;  %v2537_v45 = vpack.c.bf16 %v2064_v51, %v2064_v51 }
 0x385   : > { %2221 = vst.msk [vmem:[%s3549_s23 + $0x40] sm:$0xf] %vm1361_vm15, %v2534_v2  ;;  %v2535_v52 = vpack.c.bf16 %v2062_v27, %v2062_v27  ;;  %v2725_v42 = vpop.f32.mrb[36].mxu0 }
 0x386   : > { %2224 = vst.msk [vmem:[%s3549_s23 + $0x4c] sm:$0xf] %vm1361_vm15, %v2537_v45  ;;  %v2007_v35 = vadd.f32 %v2725_v42, %v3540_v43  ;;  %v1998_v33 = vpop.f32.mrb[37].mxu0 }
 0x387   : > { %2222 = vst.msk [vmem:[%s3549_s23 + $0x44] sm:$0xf] %vm1361_vm15, %v2535_v52  ;;  %v1999_v48 = vadd.f32 %v3540_v43, %v1998_v33  ;;  %v2726_v19 = vpop.f32.mrb[38].mxu0 }
 0x388   : > { %v2067_v0 = vmax.f32 %v2007_v35, 0.0  ;;  %v2010_v55 = vadd.f32 %v2726_v19, %v3540_v43  ;;  %v2001_v47 = vpop.f32.mrb[39].mxu0 }
 0x389   : > { %v2065_v20 = vmax.f32 %v1999_v48, 0.0  ;;  %v2002_v4 = vadd.f32 %v3540_v43, %v2001_v47 }
 0x38a   : > { %v2540_v3 = vpack.c.bf16 %v2067_v0, %v2067_v0  ;;  %v2068_v32 = vmax.f32 %v2010_v55, 0.0 }
 0x38b   : > { %v2538_v8 = vpack.c.bf16 %v2065_v20, %v2065_v20  ;;  %v2066_v60 = vmax.f32 %v2002_v4, 0.0 }
 0x38c   : > { %2227 = vst.msk [vmem:[%s3549_s23 + $0x58] sm:$0xf] %vm1361_vm15, %v2540_v3  ;;  %v2541_v41 = vpack.c.bf16 %v2068_v32, %v2068_v32 }
 0x38d   : > { %2225 = vst.msk [vmem:[%s3549_s23 + $0x50] sm:$0xf] %vm1361_vm15, %v2538_v8  ;;  %v2539_v49 = vpack.c.bf16 %v2066_v60, %v2066_v60  ;;  %v2729_v31 = vpop.f32.mrb[40].mxu0 }
 0x38e   : > { %2228 = vst.msk [vmem:[%s3549_s23 + $0x5c] sm:$0xf] %vm1361_vm15, %v2541_v41  ;;  %v2023_v50 = vadd.f32 %v2729_v31, %v3540_v43  ;;  %v2014_v34 = vpop.f32.mrb[41].mxu0 }
 0x38f   : > { %2226 = vst.msk [vmem:[%s3549_s23 + $0x54] sm:$0xf] %vm1361_vm15, %v2539_v49  ;;  %v2015_v36 = vadd.f32 %v3540_v43, %v2014_v34  ;;  %v2730_v16 = vpop.f32.mrb[42].mxu0 }
 0x390   : > { %v2071_v56 = vmax.f32 %v2023_v50, 0.0  ;;  %v2026_v10 = vadd.f32 %v2730_v16, %v3540_v43  ;;  %v2017_v61 = vpop.f32.mrb[43].mxu0 }
 0x391   : > { %v2069_v1 = vmax.f32 %v2015_v36, 0.0  ;;  %v2018_v38 = vadd.f32 %v3540_v43, %v2017_v61 }
 0x392   : > { %v2544_v39 = vpack.c.bf16 %v2071_v56, %v2071_v56  ;;  %v2072_v54 = vmax.f32 %v2026_v10, 0.0 }
 0x393   : > { %v2542_v14 = vpack.c.bf16 %v2069_v1, %v2069_v1  ;;  %v2070_v5 = vmax.f32 %v2018_v38, 0.0 }
 0x394   : > { %2231 = vst.msk [vmem:[%s3549_s23 + $0x68] sm:$0xf] %vm1361_vm15, %v2544_v39  ;;  %v2545_v37 = vpack.c.bf16 %v2072_v54, %v2072_v54 }
 0x395   : > { %2229 = vst.msk [vmem:[%s3549_s23 + $0x60] sm:$0xf] %vm1361_vm15, %v2542_v14  ;;  %v2543_v13 = vpack.c.bf16 %v2070_v5, %v2070_v5  ;;  %v2733_v11 = vpop.f32.mrb[44].mxu0 }
 0x396   : > { %2232 = vst.msk [vmem:[%s3549_s23 + $0x6c] sm:$0xf] %vm1361_vm15, %v2545_v37  ;;  %v2039_v18 = vadd.f32 %v2733_v11, %v3540_v43  ;;  %v2030_v26 = vpop.f32.mrb[45].mxu0 }
 0x397   : > { %2230 = vst.msk [vmem:[%s3549_s23 + $0x64] sm:$0xf] %vm1361_vm15, %v2543_v13  ;;  %v2031_v46 = vadd.f32 %v3540_v43, %v2030_v26  ;;  %v2734_v63 = vpop.f32.mrb[46].mxu0 }
 0x398   : > { %v2075_v62 = vmax.f32 %v2039_v18, 0.0  ;;  %v2042_v30 = vadd.f32 %v2734_v63, %v3540_v43  ;;  %v2033_v57 = vpop.f32.mrb[47].mxu0 }
 0x399   : > { %v2073_v44 = vmax.f32 %v2031_v46, 0.0  ;;  %v2034_v53 = vadd.f32 %v3540_v43, %v2033_v57 }
 0x39a   : > { %v2548_v40 = vpack.c.bf16 %v2075_v62, %v2075_v62  ;;  %v2076_v23 = vmax.f32 %v2042_v30, 0.0 }
 0x39b   : > { %v2546_v15 = vpack.c.bf16 %v2073_v44, %v2073_v44  ;;  %v2074_v29 = vmax.f32 %v2034_v53, 0.0 }
 0x39c   : > { %2235 = vst.msk [vmem:[%s3549_s23 + $0x78] sm:$0xf] %vm1361_vm15, %v2548_v40  ;;  %v2549_v12 = vpack.c.bf16 %v2076_v23, %v2076_v23 }
 0x39d   : > { %2233 = vst.msk [vmem:[%s3549_s23 + $0x70] sm:$0xf] %vm1361_vm15, %v2546_v15  ;;  %v2547_v25 = vpack.c.bf16 %v2074_v29, %v2074_v29 }
 0x39e   : > { %2236 = vst.msk [vmem:[%s3549_s23 + $0x7c] sm:$0xf] %vm1361_vm15, %v2549_v12 }
 0x39f   : > { %2234 = vst.msk [vmem:[%s3549_s23 + $0x74] sm:$0xf] %vm1361_vm15, %v2547_v25 }
 0x3a0 PF: > { %s26_s20 = sadd.s32 1, %s2816_s20   ;;  %s3735_s18 = smov %s2812_s19 }
 0x3a1   : > { %p23_p5 = scmp.ge.s32.totalorder %s26_s20, 4   ;;  %s3736_s19 = smov %s3738_s21 }
 0x3a3   :  { %25 = sbr.rel (!%p23_p5) target bundleno = 2 (0x2), region = 124 }

// kernel: weave_enc_forward.4
= control target key start
LH: loop header
LB: loop body
LE: loop exit
PB: predicated region body
PF: predicated region fallthrough
CT: control target
= control target key end

     0   :  { %s3115_s18 = smov 0   ;;  %s3117_s19 = smov 0   ;;  %s3872_s0 = inlined_call_operand.vmem [shape: bf16[2,16,64], index: 0, kind: input, shape index: {}, may-alias: {0,1}]   ;;  %s3873_s1 = inlined_call_operand.vmem [shape: bf16[2,16,64], index: 1, kind: input, shape index: {}, may-alias: {0,1}]   ;;  %s3874_s2 = inlined_call_operand.vmem [shape: bf16[2,16,16,64], index: 2, kind: input, shape index: {}]   ;;  %s3875_s3 = inlined_call_operand.vmem [shape: bf16[64,64], index: 3, kind: input, shape index: {}]   ;;  %s3876_s4 = inlined_call_operand.vmem [shape: f32[1,64], index: 4, kind: input, shape index: {}]   ;;  %s3877_s5 = inlined_call_operand.vmem [shape: bf16[64,128], index: 5, kind: input, shape index: {}]   ;;  %s3878_s6 = inlined_call_operand.vmem [shape: f32[1,128], index: 6, kind: input, shape index: {}]   ;;  %s3879_s7 = inlined_call_operand.vmem [shape: bf16[128,64], index: 7, kind: input, shape index: {}]   ;;  %s3880_s8 = inlined_call_operand.vmem [shape: f32[1,64], index: 8, kind: input, shape index: {}]   ;;  %s3881_s9 = inlined_call_operand.vmem [shape: bf16[64,64], index: 9, kind: input, shape index: {}]   ;;  %s3882_s10 = inlined_call_operand.vmem [shape: bf16[64,64], index: 10, kind: input, shape index: {}]   ;;  %s3883_s11 = inlined_call_operand.vmem [shape: f32[1,64], index: 11, kind: input, shape index: {}]   ;;  %s3884_s12 = inlined_call_operand.vmem [shape: bf16[128,64], index: 12, kind: input, shape index: {}]   ;;  %s3885_s13 = inlined_call_operand.vmem [shape: f32[1,64], index: 13, kind: input, shape index: {}]   ;;  %s3886_s14 = inlined_call_operand.vmem [shape: bf16[2,16,64], index: 14, kind: output, shape index: {0}]   ;;  %s3887_s15 = inlined_call_operand.vmem [shape: bf16[2,16,16,64], index: 15, kind: output, shape index: {1}]  }
   0x1   :  { %s3119_s20 = smov 0  }
   0x2 LB: > { %s38_s21 = sadd.s32 1, %s3025_s19  ;;  %p2552_p0 = scmp.ge.s32.totalorder %s3029_s20, 1  ;;  %s3029_s20 = sphi %s3119_s20, %s26_s20   ;;  %s3025_s19 = sphi %s3117_s19, %s3962_s19   ;;  %s3021_s18 = sphi %s3115_s18, %s3961_s18  }
   0x3   : > { %p40_p1 = scmp.ge.s32.totalorder %s38_s21, 2  ;;  %p491_p2 = scmp.lt.s32.totalorder %s3029_s20, 3 }
   0x5   : > { %s3964_s21 = smov (%p40_p1, %s38_s21), 0  ;;  %p492_p3 = pnand %p2552_p0, %p491_p2 }
   0x7   : > { %495 = sbr.rel (%p492_p3) target bundleno = 976 (0x3d0), region = 76 }
   0xe   : > { %v2957_v0 = vld [vmem:[%s3877_s5] sm:$0xff]   ;;  %p573_p4 = scmp.lt.s32.totalorder %s3021_s18, 1  ;;  %v2958_v1 = vld [vmem:[%s3877_s5 + $0x8] sm:$0xff]   ;;  %vm771_vm0 = vcmask 523264   ;;  %v2959_v2 = vld [vmem:[%s3877_s5 + $0x10] sm:$0xff]   ;;  %v3900_v3 = vmov 0.0  }
   0xf   : > { %2780 = vmatprep.subr.bf16.mxu0 %v2957_v0  ;;  %2820 = vmatprep.subr.bf16.mxu1 %v3900_v3  ;;  %v2977_v4 = vld [vmem:[%s3875_s3] sm:$0xff]   ;;  %v2978_v5 = vld [vmem:[%s3875_s3 + $0x8] sm:$0xff]   ;;  %vm3032_vm1 = vmmov 0   ;;  %v2960_v7 = vld [vmem:[%s3877_s5 + $0x18] sm:$0xff]   ;;  %vm1306_vm2 = vcmask 1041409   ;;  %vm1308_vm3 = vcmask 1042434  }
  0x10   : > { %s3966_s18 = smov (!%p573_p4, %s3021_s18), 1  ;;  %2781 = vmatpush3.bf16.msra.mxu0 %v2957_v0  ;;  %2821 = vmatpush3.bf16.msra.mxu1 %v2977_v4  ;;  %v2979_v11 = vld [vmem:[%s3875_s3 + $0x10] sm:$0xff]   ;;  %v2980_v13 = vld [vmem:[%s3875_s3 + $0x18] sm:$0xff]   ;;  %v2982_v26 = vld [vmem:[%s3879_s7] sm:$0xff]   ;;  %vm1310_vm4 = vcmask 1043459   ;;  %vm1312_vm5 = vcmask 1044484  }
  0x11   : > { %2782 = vmatprep.subr.bf16.mxu0 %v2958_v1  ;;  %s2675_s28 = sshll.u32 %s3966_s18, 7  ;;  %2828 = vmatprep.mubr.msk.bf16.mxu1 %vm3032_vm1, %v3900_v3  ;;  %s3174_s27 = sshll.u32 %s3966_s18, 3  ;;  %v2983_v27 = vld [vmem:[%s3879_s7 + $0x8] sm:$0xff]   ;;  %v2984_v28 = vld [vmem:[%s3879_s7 + $0x10] sm:$0xff]   ;;  %v2985_v29 = vld [vmem:[%s3879_s7 + $0x18] sm:$0xff]   ;;  %vm1314_vm6 = vcmask 1045509  }
  0x12   : > { %s3154_s22 = scalar_lea.vmem %s3874_s2, %s2675_s28  ;;  %2822 = vmatprep.subr.bf16.mxu1 %v3900_v3  ;;  %s580_s23 = scalar_lea.vmem %s3872_s0, %s3174_s27  ;;  %v2986_v30 = vld [vmem:[%s3879_s7 + $0x20] sm:$0xff]   ;;  %v2987_v31 = vld [vmem:[%s3879_s7 + $0x28] sm:$0xff]   ;;  %v2988_v32 = vld [vmem:[%s3879_s7 + $0x30] sm:$0xff]   ;;  %vm1316_vm7 = vcmask 1046534   ;;  %vm1318_vm8 = vcmask 1047559   ;;  %vm1458_vm9 = vcmask 519168  }
  0x13   : > { %v2961_v6 = vld [vmem:[%s3154_s22] sm:$0xff]   ;;  %v2962_v8 = vld [vmem:[%s3154_s22 + $0x8] sm:$0xff]   ;;  %v2963_v9 = vld [vmem:[%s3154_s22 + $0x10] sm:$0xff]   ;;  %s3033_s26 = smov 64   ;;  %s586_s16 = scalar_lea.vmem %s3873_s1, %s3174_s27 }
  0x14   : > { %2783 = vmatpush3.bf16.msra.mxu0 %v2958_v1  ;;  %2788 = vmatprep.mubr.msk.bf16.mxu0 %vm771_vm0, %v2961_v6  ;;  %v2964_v10 = vld [vmem:[%s3154_s22 + $0x18] sm:$0xff]   ;;  %v2965_v12 = vld [vmem:[%s3154_s22 + $0x20] sm:$0xff]   ;;  %v2966_v15 = vld [vmem:[%s3154_s22 + $0x28] sm:$0xff]   ;;  %s606_s29 = scalar_lea.vmem %s3886_s14, %s3174_s27  ;;  %s3768_s24 = scalar_lea.vmem %s3887_s15, %s2675_s28 }
  0x15   : > { %2784 = vmatprep.subr.bf16.mxu0 %v2959_v2  ;;  %2823 = vmatpush3.bf16.msra.mxu1 %v2978_v5  ;;  %v3189_v14 = vld [vmem:[%s580_s23] sm:$0xff]   ;;  %v2967_v16 = vld [vmem:[%s3154_s22 + $0x30] sm:$0xff]   ;;  %v2968_v17 = vld [vmem:[%s3154_s22 + $0x38] sm:$0xff]  }
  0x16   : > { %2824 = vmatprep.subr.bf16.mxu1 %v3900_v3  ;;  %v2969_v18 = vld [vmem:[%s3154_s22 + $0x40] sm:$0xff]   ;;  %v2970_v19 = vld [vmem:[%s3154_s22 + $0x48] sm:$0xff]   ;;  %v2971_v20 = vld [vmem:[%s3154_s22 + $0x50] sm:$0xff]  }
  0x17   : > { %v2972_v21 = vld [vmem:[%s3154_s22 + $0x58] sm:$0xff]   ;;  %v2973_v22 = vld [vmem:[%s3154_s22 + $0x60] sm:$0xff]   ;;  %v2974_v23 = vld [vmem:[%s3154_s22 + $0x68] sm:$0xff]  }
  0x18   : > { %2785 = vmatpush3.bf16.msra.mxu0 %v2959_v2  ;;  %v2975_v24 = vld [vmem:[%s3154_s22 + $0x70] sm:$0xff]   ;;  %v2976_v25 = vld [vmem:[%s3154_s22 + $0x78] sm:$0xff]   ;;  %v3254_v36 = vld [vmem:[%s3878_s6] ss:$0 sm:$0xff] }
  0x19   : > { %2786 = vmatprep.subr.bf16.mxu0 %v2960_v7  ;;  %2825 = vmatpush3.bf16.msra.mxu1 %v2979_v11  ;;  %v2989_v33 = vld [vmem:[%s3879_s7 + $0x38] sm:$0xff]  }
  0x1a   : > { %2826 = vmatprep.subr.bf16.mxu1 %v3900_v3 }
  0x1c   : > { %2787 = vmatpush3.bf16.msra.mxu0 %v2960_v7 }
  0x1d   : > { %2832 = vmatprep.subr.bf16.mxu0 %v3900_v3  ;;  %2827 = vmatpush3.bf16.msra.mxu1 %v2980_v13 }
  0x1f   : > { %2789 = vmatmul.mubr.msk.bf16.vlgmr.msra.gmra.mrb[0].mxu0 %vm771_vm0, %v2962_v8 }
  0x20   : > { %2792 = vmatprep.mubr.msk.bf16.mxu0 %vm771_vm0, %v2963_v9  ;;  %2829 = vmatmul.mubr.msk.bf16.vlgmr.msra.gmra.mrb[0].mxu1 %vm771_vm0, %v3189_v14 }
  0x21   : > { %2833 = vmatpush3.bf16.msra.mxu0 %v2982_v26 }
  0x22   : > { %2834 = vmatprep.subr.bf16.mxu0 %v3900_v3 }
  0x25   : > { %2835 = vmatpush3.bf16.msra.mxu0 %v2983_v27 }
  0x26   : > { %2836 = vmatprep.subr.bf16.mxu0 %v3900_v3 }
  0x27   : > { %2793 = vmatmul.mubr.msk.bf16.gmra.mrb[4].mxu0 %vm771_vm0, %v2964_v10 }
  0x28   : > { %2796 = vmatprep.mubr.msk.bf16.mxu0 %vm771_vm0, %v2965_v12 }
  0x29   : > { %2837 = vmatpush3.bf16.msra.mxu0 %v2984_v28 }
  0x2a   : > { %2838 = vmatprep.subr.bf16.mxu0 %v3900_v3 }
  0x2d   : > { %2839 = vmatpush3.bf16.msra.mxu0 %v2985_v29 }
  0x2e   : > { %2840 = vmatprep.subr.bf16.mxu0 %v3900_v3 }
  0x2f   : > { %2797 = vmatmul.mubr.msk.bf16.gmra.mrb[8].mxu0 %vm771_vm0, %v2966_v15 }
  0x30   : > { %2800 = vmatprep.mubr.msk.bf16.mxu0 %vm771_vm0, %v2967_v16 }
  0x31   : > { %2841 = vmatpush3.bf16.msra.mxu0 %v2986_v30 }
  0x32   : > { %2842 = vmatprep.subr.bf16.mxu0 %v3900_v3 }
  0x35   : > { %2843 = vmatpush3.bf16.msra.mxu0 %v2987_v31 }
  0x36   : > { %2844 = vmatprep.subr.bf16.mxu0 %v3900_v3 }
  0x37   : > { %2801 = vmatmul.mubr.msk.bf16.gmra.mrb[12].mxu0 %vm771_vm0, %v2968_v17 }
  0x38   : > { %2804 = vmatprep.mubr.msk.bf16.mxu0 %vm771_vm0, %v2969_v18 }
  0x39   : > { %2845 = vmatpush3.bf16.msra.mxu0 %v2988_v32 }
  0x3a   : > { %2846 = vmatprep.subr.bf16.mxu0 %v3900_v3 }
  0x3d   : > { %2847 = vmatpush3.bf16.msra.mxu0 %v2989_v33 }
  0x3e   : > { %2852 = vmatprep.subr.bf16.mxu0 %v3900_v3 }
  0x3f   : > { %2805 = vmatmul.mubr.msk.bf16.gmra.mrb[16].mxu0 %vm771_vm0, %v2970_v19 }
  0x40   : > { %2808 = vmatprep.mubr.msk.bf16.mxu0 %vm771_vm0, %v2971_v20 }
  0x47   : > { %2809 = vmatmul.mubr.msk.bf16.gmra.mrb[20].mxu0 %vm771_vm0, %v2972_v21 }
  0x48   : > { %2812 = vmatprep.mubr.msk.bf16.mxu0 %vm771_vm0, %v2973_v22 }
  0x4f   : > { %2813 = vmatmul.mubr.msk.bf16.gmra.mrb[24].mxu0 %vm771_vm0, %v2974_v23 }
  0x50   : > { %2816 = vmatprep.mubr.msk.bf16.mxu0 %vm771_vm0, %v2975_v24 }
  0x57   : > { %2817 = vmatmul.mubr.msk.bf16.gmra.mrb[28].mxu0 %vm771_vm0, %v2976_v25 }
  0x58   : > { %2848 = vmatprep.mubr.msk.bf16.mxu0 %vm3032_vm1, %v3900_v3 }
  0xf2   : > { %v2790_v34 = vpop.f32.mrb[0].mxu0 }
  0xf3   : > { %v854_v35 = vpop.f32.mrb[1].mxu0  ;;  %v3268_v47 = vpop.f32.mrb[0].mxu1  ;;  %v3273_v50 = vadd.f32 %v2790_v34, %v3254_v36 }
  0xf4   : > { %v2791_v37 = vpop.f32.mrb[2].mxu0  ;;  %v2830_v48 = vpop.f32.mrb[1].mxu1  ;;  %v3276_v53 = vadd.f32 %v3254_v36, %v854_v35 }
  0xf5   : > { %v3257_v38 = vadd.f32 %v2791_v37, %v3254_v36  ;;  %v857_v39 = vpop.f32.mrb[3].mxu0  ;;  %v3270_v49 = vpop.f32.mrb[2].mxu1  ;;  %v3898_v58 = vmax.f32 %v3273_v50, 0.0 }
  0xf6   : > { %v3260_v40 = vadd.f32 %v3254_v36, %v857_v39  ;;  %v2831_v52 = vpop.f32.mrb[3].mxu1  ;;  %v3899_v60 = vmax.f32 %v3276_v53, 0.0 }
  0xf7   : > { %v1063_v61 = vsel %vm771_vm0, %v3898_v58, 0.0 }
  0xf8   : > { %v1054_v0 = vsel %vm771_vm0, %v3899_v60, 0.0  ;;  %v1066_v5 = vrot.slane %v1063_v61, 4 }
  0xf9   : > { %v1057_v8 = vrot.slane %v1054_v0, 4 }
  0xfa   : > { %v2794_v41 = vpop.f32.mrb[4].mxu0  ;;  %v1067_v13 = vadd.f32 %v1066_v5, %v1063_v61 }
  0xfb   : > { %v870_v42 = vpop.f32.mrb[5].mxu0  ;;  %v3296_v1 = vadd.f32 %v2794_v41, %v3254_v36  ;;  %v1058_v15 = vadd.f32 %v1057_v8, %v1054_v0 }
  0xfc   : > { %v2795_v43 = vpop.f32.mrb[6].mxu0  ;;  %v3290_v62 = vadd.f32 %v3254_v36, %v870_v42  ;;  %v1068_v25 = vrot.slane %v1067_v13, 2 }
  0xfd   : > { %v3263_v44 = vadd.f32 %v2795_v43, %v3254_v36  ;;  %v873_v45 = vpop.f32.mrb[7].mxu0  ;;  %v3893_v11 = vmax.f32 %v3296_v1, 0.0  ;;  %v1059_v30 = vrot.slane %v1058_v15, 2 }
  0xfe   : > { %v3266_v46 = vadd.f32 %v3254_v36, %v873_v45  ;;  %v3897_v9 = vmax.f32 %v3290_v62, 0.0  ;;  %v1069_v39 = vadd.f32 %v1068_v25, %v1067_v13 }
  0xff   : > { %v1081_v18 = vsel %vm771_vm0, %v3893_v11, 0.0  ;;  %v3346_v45 = vadd.f32 %v1059_v30, %v1058_v15 }
 0x100   : > { %v1072_v16 = vsel %vm771_vm0, %v3897_v9, 0.0  ;;  %v1084_v31 = vrot.slane %v1081_v18, 4  ;;  %v1070_v8 = vrot.slane %v1069_v39, 1 }
 0x101   : > { %v1075_v26 = vrot.slane %v1072_v16, 4 }
 0x102   : > { %v2798_v51 = vpop.f32.mrb[8].mxu0  ;;  %v1085_v48 = vadd.f32 %v1084_v31, %v1081_v18 }
 0x103   : > { %v886_v54 = vpop.f32.mrb[9].mxu0  ;;  %v3316_v19 = vadd.f32 %v2798_v51, %v3254_v36  ;;  %v1076_v41 = vadd.f32 %v1075_v26, %v1072_v16 }
 0x104   : > { %v2799_v55 = vpop.f32.mrb[10].mxu0  ;;  %v3307_v12 = vadd.f32 %v3254_v36, %v886_v54 }
 0x105   : > { %v3279_v56 = vadd.f32 %v2799_v55, %v3254_v36  ;;  %v889_v57 = vpop.f32.mrb[11].mxu0  ;;  %v3891_v34 = vmax.f32 %v3316_v19, 0.0  ;;  %v1077_v13 = vrot.slane %v1076_v41, 2 }
 0x106   : > { %v3283_v59 = vadd.f32 %v3254_v36, %v889_v57  ;;  %v3892_v22 = vmax.f32 %v3307_v12, 0.0 }
 0x107   : > { %v1099_v52 = vsel %vm771_vm0, %v3891_v34, 0.0 }
 0x108   : > { %v1090_v35 = vsel %vm771_vm0, %v3892_v22, 0.0  ;;  %v1102_v18 = vrot.slane %v1099_v52, 4 }
 0x109   : > { %v1093_v54 = vrot.slane %v1090_v35, 4 }
 0x10a   : > { %v2802_v63 = vpop.f32.mrb[12].mxu0 }
 0x10b   : > { %v902_v2 = vpop.f32.mrb[13].mxu0  ;;  %v3352_v55 = vadd.f32 %v2802_v63, %v3254_v36  ;;  %v1094_v25 = vadd.f32 %v1093_v54, %v1090_v35  ;;  %v3380_v54 = vadd.f32 %v1070_v8, %v1069_v39 }
 0x10c   : > { %v2803_v4 = vpop.f32.mrb[14].mxu0  ;;  %v3338_v37 = vadd.f32 %v3254_v36, %v902_v2 }
 0x10d   : > { %v3299_v6 = vadd.f32 %v2803_v4, %v3254_v36  ;;  %v905_v7 = vpop.f32.mrb[15].mxu0  ;;  %v3896_v26 = vmax.f32 %v3352_v55, 0.0  ;;  %v1095_v22 = vrot.slane %v1094_v25, 2 }
 0x10e   : > { %v3303_v10 = vadd.f32 %v3254_v36, %v905_v7  ;;  %v3894_v0 = vmax.f32 %v3338_v37, 0.0 }
 0x110   : > { %v1108_v30 = vsel %vm771_vm0, %v3894_v0, 0.0 }
 0x111   : > { %v1111_v11 = vrot.slane %v1108_v30, 4 }
 0x112   : > { %v2806_v17 = vpop.f32.mrb[16].mxu0 }
 0x113   : > { %v3319_v20 = vadd.f32 %v2806_v17, %v3254_v36  ;;  %v918_v21 = vpop.f32.mrb[17].mxu0  ;;  %v1086_v17 = vrot.slane %v1085_v48, 2  ;;  %v1112_v9 = vadd.f32 %v1111_v11, %v1108_v30 }
 0x114   : > { %v3323_v23 = vadd.f32 %v3254_v36, %v918_v21  ;;  %v2807_v24 = vpop.f32.mrb[18].mxu0 }
 0x115   : > { %3914 = vst [vmem:[#allocation2_spill] sm:$0xff] %v3319_v20  ;;  %v3888_v27 = vmax.f32 %v3319_v20, 0.0  ;;  %v3327_v28 = vadd.f32 %v2807_v24, %v3254_v36  ;;  %v921_v29 = vpop.f32.mrb[19].mxu0 }
 0x116   : > { %3915 = vst [vmem:[#allocation3_spill] sm:$0xff] %v3323_v23  ;;  %v3889_v32 = vmax.f32 %v3323_v23, 0.0  ;;  %v3331_v33 = vadd.f32 %v3254_v36, %v921_v29 }
 0x117   : > { %v1135_v42 = vsel %vm771_vm0, %v3888_v27, 0.0  ;;  %v3382_v27 = vadd.f32 %v1086_v17, %v1085_v48 }
 0x118   : > { %v1126_v43 = vsel %vm771_vm0, %v3889_v32, 0.0  ;;  %v1138_v2 = vrot.slane %v1135_v42, 4  ;;  %v1103_v32 = vadd.f32 %v1102_v18, %v1099_v52 }
 0x119   : > { %v1129_v4 = vrot.slane %v1126_v43, 4 }
 0x11a   : > { %v2810_v51 = vpop.f32.mrb[20].mxu0  ;;  %v1139_v31 = vadd.f32 %v1138_v2, %v1135_v42  ;;  %v1117_v2 = vsel %vm771_vm0, %v3896_v26, 0.0  ;;  %v1104_v18 = vrot.slane %v1103_v32, 2  ;;  %v1096_v26 = vadd.f32 %v1095_v22, %v1094_v25 }
 0x11b   : > { %v3355_v57 = vadd.f32 %v2810_v51, %v3254_v36  ;;  %v934_v61 = vpop.f32.mrb[21].mxu0  ;;  %v1130_v51 = vadd.f32 %v1129_v4, %v1126_v43 }
 0x11c   : > { %v3359_v5 = vadd.f32 %v3254_v36, %v934_v61  ;;  %v2811_v7 = vpop.f32.mrb[22].mxu0  ;;  %v1105_v11 = vadd.f32 %v1104_v18, %v1103_v32 }
 0x11d   : > { %3916 = vst [vmem:[#allocation4_spill] sm:$0xff] %v3355_v57  ;;  %v3890_v15 = vmax.f32 %v3355_v57, 0.0  ;;  %v3363_v16 = vadd.f32 %v2811_v7, %v3254_v36  ;;  %v937_v63 = vpop.f32.mrb[23].mxu0  ;;  %v1061_v7 = vrot.slane %v3346_v45, 1  ;;  %v1131_v4 = vrot.slane %v1130_v51, 2 }
 0x11e   : > { %3917 = vst [vmem:[#allocation5_spill] sm:$0xff] %v3359_v5  ;;  %v3895_v21 = vmax.f32 %v3359_v5, 0.0  ;;  %v3367_v24 = vadd.f32 %v3254_v36, %v937_v63  ;;  %v1078_v63 = vadd.f32 %v1077_v13, %v1076_v41  ;;  %v1140_v41 = vrot.slane %v1139_v31, 2 }
 0x11f   : > { %v1153_v29 = vsel %vm771_vm0, %v3890_v15, 0.0  ;;  %v1113_v5 = vrot.slane %v1112_v9, 2 }
 0x120   : > { %v1144_v61 = vsel %vm771_vm0, %v3895_v21, 0.0  ;;  %v1156_v15 = vrot.slane %v1153_v29, 4  ;;  %v1079_v52 = vrot.slane %v1078_v63, 1  ;;  %v1141_v60 = vadd.f32 %v1140_v41, %v1139_v31 }
 0x121   : > { %v1147_v35 = vrot.slane %v1144_v61, 4 }
 0x122   : > { %v2814_v34 = vpop.f32.mrb[24].mxu0  ;;  %v1080_v25 = vadd.f32 %v1079_v52, %v1078_v63 }
 0x123   : > { %v1148_v0 = vadd.f32 %v1147_v35, %v1144_v61  ;;  %v3385_v42 = vadd.f32 %v2814_v34, %v3254_v36  ;;  %v950_v43 = vpop.f32.mrb[25].mxu0  ;;  %v1157_v61 = vadd.f32 %v1156_v15, %v1153_v29  ;;  %v1062_v29 = vadd.f32 %v1061_v7, %v3346_v45 }
 0x124   : > { %v3391_v39 = vadd.f32 %v3254_v36, %v950_v43  ;;  %v2815_v48 = vpop.f32.mrb[26].mxu0  ;;  %v1120_v43 = vrot.slane %v1117_v2, 4 }
 0x125   : > { %3918 = vst [vmem:[#allocation6_spill] sm:$0xff] %v3385_v42  ;;  %v1149_v8 = vrot.slane %v1148_v0, 2  ;;  %v3904_v13 = vmax.f32 %v3385_v42, 0.0  ;;  %v3395_v17 = vadd.f32 %v2815_v48, %v3254_v36  ;;  %v953_v34 = vpop.f32.mrb[27].mxu0  ;;  %v1132_v48 = vadd.f32 %v1131_v4, %v1130_v51 }
 0x126   : > { %3919 = vst [vmem:[#allocation7_spill] sm:$0xff] %v3391_v39  ;;  %v3906_v35 = vmax.f32 %v3391_v39, 0.0  ;;  %v3399_v21 = vadd.f32 %v3254_v36, %v953_v34  ;;  %v1088_v34 = vrot.slane %v3382_v27, 1  ;;  %v1158_v30 = vrot.slane %v1157_v61, 2 }
 0x127   : > { %3920 = vst [vmem:[#allocation8_spill] sm:$0xff] %v3395_v17  ;;  %v1171_v58 = vsel %vm771_vm0, %v3904_v13, 0.0  ;;  %v1150_v17 = vadd.f32 %v1149_v8, %v1148_v0  ;;  %v1121_v13 = vadd.f32 %v1120_v43, %v1117_v2  ;;  %v1097_v4 = vrot.slane %v1096_v26, 1 }
 0x128   : > { %v1174_v3 = vrot.slane %v1171_v58, 4  ;;  %v1162_v15 = vsel %vm771_vm0, %v3906_v35, 0.0  ;;  %v1142_v35 = vrot.slane %v1141_v60, 1  ;;  %v1133_v45 = vrot.slane %v1132_v48, 1 }
 0x129   : > { %v1165_v22 = vrot.slane %v1162_v15, 4  ;;  %v1151_v32 = vrot.slane %v1150_v17, 1  ;;  %v1122_v43 = vrot.slane %v1121_v13, 2 }
 0x12a   : > { %v1175_v42 = vadd.f32 %v1174_v3, %v1171_v58  ;;  %v2818_v57 = vpop.f32.mrb[28].mxu0  ;;  %v1143_v39 = vadd.f32 %v1142_v35, %v1141_v60  ;;  %v1134_v20 = vadd.f32 %v1133_v45, %v1132_v48  ;;  %v1098_v60 = vadd.f32 %v1097_v4, %v1096_v26 }
 0x12b   : > { %v1166_v31 = vadd.f32 %v1165_v22, %v1162_v15  ;;  %v3410_v51 = vadd.f32 %v2818_v57, %v3254_v36  ;;  %v966_v41 = vpop.f32.mrb[29].mxu0  ;;  %v1159_v57 = vadd.f32 %v1158_v30, %v1157_v61  ;;  %v1114_v15 = vadd.f32 %v1113_v5, %v1112_v9 }
 0x12c   : > { %v3413_v7 = vadd.f32 %v3254_v36, %v966_v41  ;;  %v2819_v0 = vpop.f32.mrb[30].mxu0  ;;  %v1176_v52 = vrot.slane %v1175_v42, 2  ;;  %v1307_v30 = vsel %vm1306_vm2, %v3380_v54, %v1062_v29  ;;  %v1089_v9 = vadd.f32 %v1088_v34, %v3382_v27 }
 0x12d   : > { %3921 = vst [vmem:[#allocation9_spill] sm:$0xff] %v3410_v51  ;;  %v1167_v63 = vrot.slane %v1166_v31, 2  ;;  %v3910_v3 = vmax.f32 %v3410_v51, 0.0  ;;  %v3417_v58 = vadd.f32 %v2819_v0, %v3254_v36  ;;  %v969_v2 = vpop.f32.mrb[31].mxu0  ;;  %v1152_v0 = vadd.f32 %v1151_v32, %v1150_v17 }
 0x12e   : > { %3922 = vst [vmem:[#allocation10_spill] sm:$0xff] %v3413_v7  ;;  %v3912_v8 = vmax.f32 %v3413_v7, 0.0  ;;  %v3421_v18 = vadd.f32 %v3254_v36, %v969_v2  ;;  %v1160_v5 = vrot.slane %v1159_v57, 1  ;;  %v1115_v35 = vrot.slane %v1114_v15, 1 }
 0x12f   : > { %v1168_v22 = vadd.f32 %v1167_v63, %v1166_v31  ;;  %v1189_v41 = vsel %vm771_vm0, %v3910_v3, 0.0  ;;  %v1177_v31 = vadd.f32 %v1176_v52, %v1175_v42  ;;  %v1309_v3 = vsel %vm1308_vm3, %v1080_v25, %v1307_v30 }
 0x130   : > { %v1192_v23 = vrot.slane %v1189_v41, 4  ;;  %v1180_v61 = vsel %vm771_vm0, %v3912_v8, 0.0  ;;  %v1106_v45 = vrot.slane %v1105_v11, 1  ;;  %v1123_v51 = vadd.f32 %v1122_v43, %v1121_v13 }
 0x131   : > { %v1169_v36 = vrot.slane %v1168_v22, 1  ;;  %v1183_v2 = vrot.slane %v1180_v61, 4  ;;  %v1320_v8 = vsel %vm1306_vm2, %v1143_v39, %v1134_v20  ;;  %v1161_v32 = vadd.f32 %v1160_v5, %v1159_v57 }
 0x132   : > { %v1193_v63 = vadd.f32 %v1192_v23, %v1189_v41  ;;  %v1321_v54 = vsel %vm1308_vm3, %v1152_v0, %v1320_v8  ;;  %v1178_v27 = vrot.slane %v1177_v31, 1  ;;  %v1311_v23 = vsel %vm1310_vm4, %v1089_v9, %v1309_v3 }
 0x133   : > { %v1184_v48 = vadd.f32 %v1183_v2, %v1180_v61  ;;  %v1170_v17 = vadd.f32 %v1169_v36, %v1168_v22  ;;  %v1116_v42 = vadd.f32 %v1115_v35, %v1114_v15  ;;  %v1313_v26 = vsel %vm1312_vm5, %v1098_v60, %v1311_v23  ;;  %v2600_v36 = vld [vmem:[%s3876_s4] ss:$0 sm:$0xff] }
 0x134   : > { %v1194_v7 = vrot.slane %v1193_v63, 2  ;;  %v1107_v4 = vadd.f32 %v1106_v45, %v1105_v11  ;;  %v1124_v13 = vrot.slane %v1123_v51, 1  ;;  %v1322_v20 = vsel %vm1310_vm4, %v1161_v32, %v1321_v54  ;;  %v2990_v45 = vld [vmem:[%s3881_s9] sm:$0xff]  }
 0x135   : > { %v1185_v29 = vrot.slane %v1184_v48, 2  ;;  %v1323_v8 = vsel %vm1312_vm5, %v1170_v17, %v1322_v20  ;;  %v1179_v43 = vadd.f32 %v1178_v27, %v1177_v31  ;;  %v1282_v2 = vadd.f32 %v2600_v36, %v3268_v47  ;;  %v2991_v47 = vld [vmem:[%s3881_s9 + $0x8] sm:$0xff]   ;;  %v2992_v17 = vld [vmem:[%s3881_s9 + $0x10] sm:$0xff]   ;;  %v2994_v32 = vld [vmem:[%s3882_s10] sm:$0xff]  }
 0x136   : > { %v1195_v34 = vadd.f32 %v1194_v7, %v1193_v63  ;;  %v1315_v57 = vsel %vm1314_vm6, %v1107_v4, %v1313_v26  ;;  %v1125_v3 = vadd.f32 %v1124_v13, %v1123_v51  ;;  %v1285_v51 = vadd.f32 %v2600_v36, %v3270_v49  ;;  %v2995_v27 = vld [vmem:[%s3882_s10 + $0x8] sm:$0xff]   ;;  %v2998_v23 = vld [vmem:[%s586_s16] sm:$0xff]   ;;  %v3001_v26 = vld [vmem:[%s3884_s12 + $0x10] sm:$0xff]  }
 0x137   : > { %v1186_v25 = vadd.f32 %v1185_v29, %v1184_v48  ;;  %v1317_v22 = vsel %vm1316_vm7, %v1116_v42, %v1315_v57  ;;  %v1324_v41 = vsel %vm1314_vm6, %v1179_v43, %v1323_v8  ;;  %v1288_v5 = vmax.f32 %v1282_v2, 0.0  ;;  %v2993_v29 = vld [vmem:[%s3881_s9 + $0x18] sm:$0xff]   ;;  %v2999_v42 = vld [vmem:[%s3884_s12] sm:$0xff]   ;;  %v3005_v20 = vld [vmem:[%s3884_s12 + $0x30] sm:$0xff]  }
 0x138   : > { %v1196_v52 = vrot.slane %v1195_v34, 1  ;;  %v1319_v11 = vsel %vm1318_vm8, %v1125_v3, %v1317_v22  ;;  %v1289_v31 = vmax.f32 %v1285_v51, 0.0  ;;  %v3923_v49 = vmov 0.0   ;;  %2876 = vmatprep.subr.bf16.mxu1 %v2999_v42  ;;  %v3002_v4 = vld [vmem:[%s3884_s12 + $0x18] sm:$0xff]   ;;  %v3003_v13 = vld [vmem:[%s3884_s12 + $0x20] sm:$0xff]  }
 0x139   : > { %v1187_v39 = vrot.slane %v1186_v25, 1  ;;  %2877 = vmatpush3.bf16.msra.mxu1 %v2999_v42  ;;  %v2607_v8 = vld [vmem:[%s3880_s8] ss:$0 sm:$0xff]  ;;  %v1623_v36 = vlaneseq }
 0x13a   : > { %v1197_v15 = vadd.f32 %v1196_v52, %v1195_v34  ;;  %v2996_v34 = vld [vmem:[%s3882_s10 + $0x10] sm:$0xff]   ;;  %v3004_v52 = vld [vmem:[%s3884_s12 + $0x28] sm:$0xff]  }
 0x13b   : > { %v1188_v7 = vadd.f32 %v1187_v39, %v1186_v25  ;;  %v3000_v25 = vld [vmem:[%s3884_s12 + $0x8] sm:$0xff]   ;;  %v3006_v39 = vld [vmem:[%s3884_s12 + $0x38] sm:$0xff]  }
 0x13c   : > { %2878 = vmatprep.subr.bf16.mxu1 %v3000_v25 }
 0x13d   : > { %v1325_v61 = vsel %vm1316_vm7, %v1188_v7, %v1324_v41  ;;  %2879 = vmatpush3.bf16.msra.mxu1 %v3000_v25 }
 0x13e   : > { %v1326_v30 = vsel %vm1318_vm8, %v1197_v15, %v1325_v61  ;;  %2880 = vmatprep.subr.bf16.mxu1 %v3001_v26 }
 0x13f   : > { %v2952_v0 = vpack.i.bf16 %v1326_v30, %v1319_v11  ;;  %v3034_v30 = vmov 1966171168  }
 0x141   : > { %2953 = vrot.lane.b32.xlu0 %v2952_v0, %s3033_s26  ;;  %2881 = vmatpush3.bf16.msra.mxu1 %v3001_v26  ;;  %v1621_v0 = vunpack.c.l.s4 %v3034_v30 }
 0x142   : > { %2882 = vmatprep.subr.bf16.mxu1 %v3002_v4 }
 0x143   : > { %v1622_v51 = vunpack.c.0.s8 %v1621_v0 }
 0x145   : > { %2883 = vmatpush3.bf16.msra.mxu1 %v3002_v4 }
 0x146   : > { %2884 = vmatprep.subr.bf16.mxu1 %v3003_v13 }
 0x149   : > { %2885 = vmatpush3.bf16.msra.mxu1 %v3003_v13 }
 0x14a   : > { %2886 = vmatprep.subr.bf16.mxu1 %v3004_v52 }
 0x14d   : > { %2887 = vmatpush3.bf16.msra.mxu1 %v3004_v52 }
 0x14e   : > { %2888 = vmatprep.subr.bf16.mxu1 %v3005_v20 }
 0x151   : > { %2889 = vmatpush3.bf16.msra.mxu1 %v3005_v20 }
 0x152   : > { %2890 = vmatprep.subr.bf16.mxu1 %v3006_v39 }
 0x155   : > { %2891 = vmatpush3.bf16.msra.mxu1 %v3006_v39 }
 0x1b3   : > { %v2954_v9 = vpop.permute.xlu0 %2953 }
 0x1b4   : > { %v2956_v63 = vunpack.i.h.bf16 %v2954_v9  ;;  %v2955_v60 = vunpack.i.l.bf16 %v2954_v9  ;;  %v1624_v9 = vshrl.u32 %v1623_v36, 7 }
 0x1b6   : > { %v1333_v35 = vsel %vm771_vm0, %v1288_v5, %v2955_v60  ;;  %v1334_v48 = vsel %vm771_vm0, %v1289_v31, %v2956_v63  ;;  %v1625_v5 = vsub.s32 %v1622_v51, %v1624_v9 }
 0x1b7   : > { %v1335_v54 = vpack.c.bf16 %v1334_v48, %v1333_v35 }
 0x1b9   : > { %2849 = vmatmul.mubr.bf16.vlgmr.msra.gmra.mrb[32].mxu0 %v1335_v54 }
 0x1ba   : > { %2853 = vmatpush3.bf16.msra.mxu0 %v2990_v45  ;;  %2860 = vmatprep.mubr.msk.bf16.mxu0 %vm3032_vm1, %v3923_v49 }
 0x1bb   : > { %2854 = vmatprep.subr.bf16.mxu0 %v3923_v49 }
 0x1be   : > { %2855 = vmatpush3.bf16.msra.mxu0 %v2991_v47 }
 0x1bf   : > { %2856 = vmatprep.subr.bf16.mxu0 %v3923_v49 }
 0x1c2   : > { %2857 = vmatpush3.bf16.msra.mxu0 %v2992_v17 }
 0x1c3   : > { %2858 = vmatprep.subr.bf16.mxu0 %v3923_v49 }
 0x1c6   : > { %2859 = vmatpush3.bf16.msra.mxu0 %v2993_v29  ;;  %v982_v29 = vmax.f32 %v3260_v40, 0.0 }
 0x1c7   : > { %2864 = vmatprep.subr.bf16.mxu0 %v3923_v49 }
 0x1c9   : > { %2861 = vmatmul.mubr.msk.bf16.vlgmr.msra.gmra.mrb[36].mxu0 %vm771_vm0, %v3189_v14  ;;  %v2997_v14 = vld [vmem:[%s3882_s10 + $0x18] sm:$0xff]  }
 0x1ca   : > { %2865 = vmatpush3.bf16.msra.mxu0 %v2994_v32  ;;  %2872 = vmatprep.mubr.msk.bf16.mxu0 %vm3032_vm1, %v3923_v49 }
 0x1cb   : > { %2866 = vmatprep.subr.bf16.mxu0 %v3923_v49 }
 0x1ce   : > { %2867 = vmatpush3.bf16.msra.mxu0 %v2995_v27 }
 0x1cf   : > { %2868 = vmatprep.subr.bf16.mxu0 %v3923_v49 }
 0x1d2   : > { %2869 = vmatpush3.bf16.msra.mxu0 %v2996_v34 }
 0x1d3   : > { %2870 = vmatprep.subr.bf16.mxu0 %v3923_v49 }
 0x1d6   : > { %2871 = vmatpush3.bf16.msra.mxu0 %v2997_v14 }
 0x1d9   : > { %2873 = vmatmul.mubr.msk.bf16.vlgmr.msra.gmra.mrb[40].mxu0 %vm771_vm0, %v2998_v23 }
 0x28c   : > { %v1441_v43 = vpop.f32.mrb[32].mxu0 }
 0x28d   : > { %v1442_v57 = vadd.f32 %v2607_v8, %v1441_v43  ;;  %v2850_v7 = vpop.f32.mrb[33].mxu0 }
 0x28e   : > { %v1444_v22 = vpop.f32.mrb[34].mxu0 }
 0x28f   : > { %v1448_v3 = vmax.f32 %v1442_v57, 0.0  ;;  %v1445_v15 = vadd.f32 %v2607_v8, %v1444_v22  ;;  %v2851_v41 = vpop.f32.mrb[35].mxu0 }
 0x290   : > { %v1719_v41 = vsub.s32 0, %v1624_v9 }
 0x291   : > { %v2678_v61 = vpack.c.bf16 %v1448_v3, %v1448_v3  ;;  %v1449_v11 = vmax.f32 %v1445_v15, 0.0 }
 0x293   : > { %1459 = vst.msk [vmem:[%s606_s29] sm:$0xf] %vm1458_vm9, %v2678_v61  ;;  %v2679_v2 = vpack.c.bf16 %v1449_v11, %v1449_v11 }
 0x295   : > { %1460 = vst.msk [vmem:[%s606_s29 + $0x4] sm:$0xf] %vm1458_vm9, %v2679_v2 }
 0x29c   : > { %v1529_v31 = vpop.f32.mrb[36].mxu0 }
 0x29d   : > { %v1619_v63 = vcombine.high %v1529_v31, %v1529_v31  ;;  %v1626_v60 = vrot.slane %v1529_v31, %v1625_v5  ;;  %v2862_v35 = vpop.f32.mrb[37].mxu0 }
 0x29e   : > { %v1532_v48 = vpop.f32.mrb[38].mxu0 }
 0x29f   : > { %v1633_v45 = vrot.slane %v1619_v63, %v1625_v5  ;;  %v1634_v54 = vcombine.high %v1626_v60, %v1626_v60  ;;  %v1668_v47 = vcombine.high %v1532_v48, %v1532_v48  ;;  %v2863_v49 = vpop.f32.mrb[39].mxu0  ;;  %v1675_v32 = vrot.slane %v1532_v48, %v1625_v5 }
 0x2a0   : > { %v1642_v14 = vrot.slane %v1626_v60, %v1625_v5 }
 0x2a1   : > { %v1635_v34 = vcombine.high %v1633_v45, %v1633_v45  ;;  %v1649_v23 = vrot.slane %v1633_v45, %v1625_v5  ;;  %v1656_v25 = vrot.slane %v1634_v54, %v1625_v5  ;;  %v1682_v26 = vrot.slane %v1668_v47, %v1625_v5 }
 0x2a2   : > { %v1683_v4 = vcombine.high %v1675_v32, %v1675_v32  ;;  %v1691_v39 = vrot.slane %v1675_v32, %v1625_v5  ;;  %v1664_v3 = vcombine.high %v1642_v14, %v1642_v14  ;;  %v1720_v45 = vrot.slane %v1642_v14, %v1719_v41 }
 0x2a3   : > { %v1663_v20 = vrot.slane %v1635_v34, %v1625_v5  ;;  %v1684_v57 = vcombine.high %v1682_v26, %v1682_v26  ;;  %v1698_v7 = vrot.slane %v1682_v26, %v1625_v5  ;;  %v1665_v15 = vcombine.high %v1649_v23, %v1649_v23 }
 0x2a4   : > { %v1666_v61 = vcombine.high %v1656_v25, %v1656_v25  ;;  %v1705_v30 = vrot.slane %v1683_v4, %v1625_v5  ;;  %v1713_v31 = vcombine.high %v1691_v39, %v1691_v39  ;;  %v1724_v54 = vrot.slane %v1656_v25, %v1719_v41 }
 0x2a5   : > { %v1667_v11 = vcombine.high %v1663_v20, %v1663_v20  ;;  %v1712_v0 = vrot.slane %v1684_v57, %v1625_v5  ;;  %v1714_v60 = vcombine.high %v1698_v7, %v1698_v7  ;;  %v1728_v47 = vrot.slane %v1664_v3, %v1719_v41 }
 0x2a6   : > { %v1715_v35 = vcombine.high %v1705_v30, %v1705_v30  ;;  %v1736_v9 = vrot.slane %v1649_v23, %v1719_v41  ;;  %v1732_v49 = vrot.slane %v1666_v61, %v1719_v41  ;;  %v1740_v32 = vrot.slane %v1663_v20, %v1719_v41  ;;  %v3564_v20 = vld [vmem:[%s3883_s11] ss:$0 sm:$0xff] }
 0x2a7   : > { %v1716_v48 = vcombine.high %v1712_v0, %v1712_v0  ;;  %v1744_v34 = vrot.slane %v1665_v15, %v1719_v41  ;;  %v3541_v5 = vrot.slane %v1667_v11, %v1719_v41  ;;  %v3543_v26 = vrot.slane %v1691_v39, %v1719_v41 }
 0x2a8   : > { %v3545_v4 = vrot.slane %v1705_v30, %v1719_v41  ;;  %v3547_v57 = vrot.slane %v1713_v31, %v1719_v41  ;;  %v3549_v2 = vrot.slane %v1698_v7, %v1719_v41  ;;  %v3551_v63 = vrot.slane %v1715_v35, %v1719_v41 }
 0x2a9   : > { %v3553_v51 = vrot.slane %v1712_v0, %v1719_v41  ;;  %v3555_v14 = vrot.slane %v1714_v60, %v1719_v41  ;;  %v3557_v23 = vrot.slane %v1716_v48, %v1719_v41 }
 0x2ac   : > { %v3559_v25 = vpop.f32.mrb[40].mxu0 }
 0x2ad   : > { %v2874_v39 = vpop.f32.mrb[41].mxu0  ;;  %v1797_v3 = vadd.f32 %v1720_v45, %v3559_v25  ;;  %v1799_v7 = vadd.f32 %v1724_v54, %v3559_v25  ;;  %v1801_v15 = vadd.f32 %v1728_v47, %v3559_v25  ;;  %v1803_v61 = vadd.f32 %v1732_v49, %v3559_v25 }
 0x2ae   : > { %v3570_v11 = vpop.f32.mrb[42].mxu0  ;;  %v1805_v41 = vadd.f32 %v1736_v9, %v3559_v25  ;;  %v1807_v30 = vadd.f32 %v1740_v32, %v3559_v25  ;;  %v1809_v0 = vadd.f32 %v1744_v34, %v3559_v25  ;;  %v1811_v31 = vadd.f32 %v3541_v5, %v3559_v25 }
 0x2af   : > { %v2875_v60 = vpop.f32.mrb[43].mxu0  ;;  %v1798_v35 = vadd.f32 %v1720_v45, %v3570_v11  ;;  %v1836_v48 = vadd.f32 %v3564_v20, %v1797_v3  ;;  %v1800_v39 = vadd.f32 %v1724_v54, %v3570_v11  ;;  %v1838_v22 = vadd.f32 %v3564_v20, %v1799_v7 }
 0x2b0   : > { %v1802_v36 = vadd.f32 %v1728_v47, %v3570_v11  ;;  %v1840_v8 = vadd.f32 %v3564_v20, %v1801_v15  ;;  %v1804_v43 = vadd.f32 %v1732_v49, %v3570_v11  ;;  %v1842_v13 = vadd.f32 %v3564_v20, %v1803_v61 }
 0x2b1   : > { %v1837_v52 = vadd.f32 %v3564_v20, %v1798_v35  ;;  %v1868_v27 = vmax.f32 %v1836_v48, 0.0  ;;  %v1839_v60 = vadd.f32 %v3564_v20, %v1800_v39  ;;  %v1870_v45 = vmax.f32 %v1838_v22, 0.0 }
 0x2b2   : > { %v1841_v3 = vadd.f32 %v3564_v20, %v1802_v36  ;;  %v1872_v42 = vmax.f32 %v1840_v8, 0.0  ;;  %v1843_v54 = vadd.f32 %v3564_v20, %v1804_v43  ;;  %v1874_v7 = vmax.f32 %v1842_v13, 0.0 }
 0x2b3   : > { %v1869_v17 = vmax.f32 %v1837_v52, 0.0  ;;  %v3924_v47 = vmax.f32 %v3276_v53, 0.0  ;;  %v1871_v49 = vmax.f32 %v1839_v60, 0.0  ;;  %v3925_v61 = vmax.f32 %v3273_v50, 0.0 }
 0x2b4   : > { %v1873_v48 = vmax.f32 %v1841_v3, 0.0  ;;  %v3926_v39 = vmax.f32 %v3290_v62, 0.0  ;;  %v1875_v36 = vmax.f32 %v1843_v54, 0.0  ;;  %v3927_v8 = vmax.f32 %v3296_v1, 0.0 }
 0x2b5   : > { %v1900_v15 = vsel %vm771_vm0, %v1868_v27, %v3924_v47  ;;  %v1902_v35 = vsel %vm771_vm0, %v1870_v45, %v3925_v61  ;;  %v1901_v53 = vsel %vm771_vm0, %v1869_v17, %v982_v29  ;;  %v3928_v27 = vmax.f32 %v3257_v38, 0.0 }
 0x2b6   : > { %v1904_v22 = vsel %vm771_vm0, %v1872_v42, %v3926_v39  ;;  %v1906_v13 = vsel %vm771_vm0, %v1874_v7, %v3927_v8  ;;  %v1806_v52 = vadd.f32 %v1736_v9, %v3570_v11  ;;  %v1844_v43 = vadd.f32 %v3564_v20, %v1805_v41 }
 0x2b7   : > { %v1903_v50 = vsel %vm771_vm0, %v1871_v49, %v3928_v27  ;;  %v1932_v62 = vpack.c.bf16 %v1901_v53, %v1900_v15  ;;  %v3929_v42 = vmax.f32 %v3266_v46, 0.0  ;;  %v3930_v45 = vmax.f32 %v3263_v44, 0.0 }
 0x2b8   : > { %v1933_v60 = vpack.c.bf16 %v1903_v50, %v1902_v35  ;;  %v1845_v38 = vadd.f32 %v3564_v20, %v1806_v52  ;;  %v1876_v29 = vmax.f32 %v1844_v43, 0.0  ;;  %v1808_v9 = vadd.f32 %v1740_v32, %v3570_v11 }
 0x2b9   : > { %v1905_v1 = vsel %vm771_vm0, %v1873_v48, %v3929_v42  ;;  %v1907_v40 = vsel %vm771_vm0, %v1875_v36, %v3930_v45  ;;  %2892 = vmatprep.mubr.bf16.mxu1 %v1932_v62  ;;  %v1846_v41 = vadd.f32 %v3564_v20, %v1807_v30  ;;  %v1810_v54 = vadd.f32 %v1744_v34, %v3570_v11 }
 0x2ba   : > { %v1934_v3 = vpack.c.bf16 %v1905_v1, %v1904_v22  ;;  %v1935_v17 = vpack.c.bf16 %v1907_v40, %v1906_v13  ;;  %v1848_v46 = vadd.f32 %v3564_v20, %v1809_v0  ;;  %2893 = vmatmul.mubr.bf16.vlgmr.msra.gmra.mrb[4].mxu1 %v1933_v60  ;;  %v1877_v7 = vmax.f32 %v1845_v38, 0.0 }
 0x2bb   : > { %v3931_v44 = vmax.f32 %v3307_v12, 0.0  ;;  %v1812_v15 = vadd.f32 %v3541_v5, %v3570_v11  ;;  %v1850_v49 = vadd.f32 %v3564_v20, %v1811_v31  ;;  %v1847_v32 = vadd.f32 %v3564_v20, %v1808_v9 }
 0x2bc   : > { %2896 = vmatprep.mubr.bf16.mxu1 %v1934_v3  ;;  %v1878_v61 = vmax.f32 %v1846_v41, 0.0  ;;  %v1849_v30 = vadd.f32 %v3564_v20, %v1810_v54  ;;  %v1880_v34 = vmax.f32 %v1848_v46, 0.0  ;;  %v3932_v0 = vmax.f32 %v3283_v59, 0.0  ;;  %v3939_v54 = vld [vmem:[#allocation3_spill] sm:$0xff] }
 0x2bd   : > { %v1908_v47 = vsel %vm771_vm0, %v1876_v29, %v3931_v44  ;;  %v1851_v12 = vadd.f32 %v3564_v20, %v1812_v15  ;;  %v1882_v48 = vmax.f32 %v1850_v49, 0.0  ;;  %v1813_v39 = vadd.f32 %v3543_v26, %v3559_v25 }
 0x2be   : > { %v1909_v35 = vsel %vm771_vm0, %v1877_v7, %v3932_v0  ;;  %v1879_v22 = vmax.f32 %v1847_v32, 0.0  ;;  %v3933_v31 = vmax.f32 %v3316_v19, 0.0  ;;  %v1881_v8 = vmax.f32 %v1849_v30, 0.0 }
 0x2bf   : > { %v1936_v5 = vpack.c.bf16 %v1909_v35, %v1908_v47  ;;  %v3934_v13 = vmax.f32 %v3338_v37, 0.0  ;;  %v1883_v59 = vmax.f32 %v1851_v12, 0.0  ;;  %v3935_v27 = vmax.f32 %v3352_v55, 0.0 }
 0x2c0   : > { %v1910_v36 = vsel %vm771_vm0, %v1878_v61, %v3933_v31  ;;  %v1814_v52 = vadd.f32 %v3543_v26, %v3570_v11  ;;  %v3936_v43 = vmax.f32 %v3279_v56, 0.0  ;;  %v3937_v62 = vmax.f32 %v3303_v10, 0.0 }
 0x2c1   : > { %v1912_v53 = vsel %vm771_vm0, %v1880_v34, %v3934_v13  ;;  %v3643_v50 = vsel %vm771_vm0, %v1882_v48, %v3935_v27  ;;  %v1852_v37 = vadd.f32 %v3564_v20, %v1813_v39  ;;  %v1815_v42 = vadd.f32 %v3545_v4, %v3559_v25  ;;  %v3942_v34 = vld [vmem:[#allocation2_spill] sm:$0xff] }
 0x2c2   : > { %v1911_v19 = vsel %vm771_vm0, %v1879_v22, %v3936_v43  ;;  %v1913_v60 = vsel %vm771_vm0, %v1881_v8, %v3937_v62  ;;  %v3938_v45 = vmax.f32 %v3299_v6, 0.0  ;;  %v1853_v56 = vadd.f32 %v3564_v20, %v1814_v52  ;;  %2897 = vmatmul.mubr.bf16.gmra.mrb[8].mxu1 %v1935_v17 }
 0x2c3   : > { %v1937_v55 = vpack.c.bf16 %v1911_v19, %v1910_v36  ;;  %v1938_v1 = vpack.c.bf16 %v1913_v60, %v1912_v53  ;;  %v1884_v10 = vmax.f32 %v1852_v37, 0.0  ;;  %v1816_v3 = vadd.f32 %v3545_v4, %v3570_v11  ;;  %2900 = vmatprep.mubr.bf16.mxu1 %v1936_v5  ;;  %v3945_v53 = vld [vmem:[#allocation5_spill] sm:$0xff]  ;;  %v3948_v19 = vld [vmem:[#allocation4_spill] sm:$0xff] }
 0x2c4   : > { %v3659_v40 = vsel %vm771_vm0, %v1883_v59, %v3938_v45  ;;  %v1854_v38 = vadd.f32 %v3564_v20, %v1815_v42  ;;  %v1885_v29 = vmax.f32 %v1853_v56, 0.0  ;;  %v1817_v9 = vadd.f32 %v3547_v57, %v3559_v25 }
 0x2c5   : > { %v1939_v26 = vpack.c.bf16 %v3659_v40, %v3643_v50  ;;  %v1818_v6 = vadd.f32 %v3547_v57, %v3570_v11  ;;  %v1819_v41 = vadd.f32 %v3551_v63, %v3559_v25  ;;  %v3940_v46 = vmax.f32 %v3939_v54, 0.0  ;;  %v3951_v54 = vld [vmem:[#allocation7_spill] sm:$0xff]  ;;  %v3758_v50 = vld [vmem:[%s3885_s13] ss:$0 sm:$0xff] }
 0x2c6   : > { %v1855_v4 = vadd.f32 %v3564_v20, %v1816_v3  ;;  %v1886_v44 = vmax.f32 %v1854_v38, 0.0  ;;  %v1820_v17 = vadd.f32 %v3551_v63, %v3570_v11  ;;  %v3941_v47 = vmax.f32 %v3331_v33, 0.0 }
 0x2c7   : > { %v3676_v7 = vsel %vm771_vm0, %v1884_v10, %v3940_v46  ;;  %v1856_v57 = vadd.f32 %v3564_v20, %v1817_v9  ;;  %v1857_v49 = vadd.f32 %v3564_v20, %v1818_v6  ;;  %v1858_v32 = vadd.f32 %v3564_v20, %v1819_v41 }
 0x2c8   : > { %v1917_v15 = vsel %vm771_vm0, %v1885_v29, %v3941_v47  ;;  %v1887_v30 = vmax.f32 %v1855_v4, 0.0  ;;  %v3943_v0 = vmax.f32 %v3942_v34, 0.0  ;;  %v1859_v12 = vadd.f32 %v3564_v20, %v1820_v17 }
 0x2c9   : > { %v1940_v61 = vpack.c.bf16 %v1917_v15, %v3676_v7  ;;  %v1888_v63 = vmax.f32 %v1856_v57, 0.0  ;;  %v1889_v48 = vmax.f32 %v1857_v49, 0.0  ;;  %v1890_v33 = vmax.f32 %v1858_v32, 0.0 }
 0x2ca   : > { %v1918_v35 = vsel %vm771_vm0, %v1886_v44, %v3943_v0  ;;  %v1821_v39 = vadd.f32 %v3549_v2, %v3559_v25  ;;  %v3944_v5 = vmax.f32 %v3327_v28, 0.0  ;;  %v1891_v31 = vmax.f32 %v1859_v12, 0.0  ;;  %2901 = vmatmul.mubr.bf16.gmra.mrb[12].mxu1 %v1937_v55  ;;  %v3954_v44 = vld [vmem:[#allocation8_spill] sm:$0xff] }
 0x2cb   : > { %v1822_v36 = vadd.f32 %v3549_v2, %v3570_v11  ;;  %v1823_v8 = vadd.f32 %v3553_v51, %v3559_v25  ;;  %v3946_v59 = vmax.f32 %v3945_v53, 0.0  ;;  %v3947_v52 = vmax.f32 %v3367_v24, 0.0  ;;  %2904 = vmatprep.mubr.bf16.mxu1 %v1938_v1 }
 0x2cc   : > { %v1919_v22 = vsel %vm771_vm0, %v1887_v30, %v3944_v5  ;;  %v3949_v28 = vmax.f32 %v3948_v19, 0.0  ;;  %v3950_v37 = vmax.f32 %v3363_v16, 0.0  ;;  %v1860_v42 = vadd.f32 %v3564_v20, %v1821_v39 }
 0x2cd   : > { %v1941_v13 = vpack.c.bf16 %v1919_v22, %v1918_v35  ;;  %v1920_v27 = vsel %vm771_vm0, %v1888_v63, %v3946_v59  ;;  %v1921_v43 = vsel %vm771_vm0, %v1889_v48, %v3947_v52  ;;  %v1861_v45 = vadd.f32 %v3564_v20, %v1822_v36  ;;  %v3957_v63 = vld [vmem:[#allocation10_spill] sm:$0xff] }
 0x2ce   : > { %v1922_v62 = vsel %vm771_vm0, %v1890_v33, %v3949_v28  ;;  %v1942_v60 = vpack.c.bf16 %v1921_v43, %v1920_v27  ;;  %v1923_v2 = vsel %vm771_vm0, %v1891_v31, %v3950_v37  ;;  %v1824_v24 = vadd.f32 %v3553_v51, %v3570_v11 }
 0x2cf   : > { %v1943_v56 = vpack.c.bf16 %v1923_v2, %v1922_v62  ;;  %v1862_v10 = vadd.f32 %v3564_v20, %v1823_v8  ;;  %v1825_v3 = vadd.f32 %v3555_v14, %v3559_v25  ;;  %v1892_v38 = vmax.f32 %v1860_v42, 0.0 }
 0x2d0   : > { %v1893_v29 = vmax.f32 %v1861_v45, 0.0  ;;  %v1826_v16 = vadd.f32 %v3555_v14, %v3570_v11  ;;  %v1827_v9 = vadd.f32 %v3557_v23, %v3559_v25  ;;  %v1863_v55 = vadd.f32 %v3564_v20, %v1824_v24 }
 0x2d1   : > { %v1894_v6 = vmax.f32 %v1862_v10, 0.0  ;;  %v1864_v41 = vadd.f32 %v3564_v20, %v1825_v3  ;;  %v1828_v51 = vadd.f32 %v3557_v23, %v3570_v11  ;;  %v3952_v46 = vmax.f32 %v3951_v54, 0.0 }
 0x2d2   : > { %v3953_v7 = vmax.f32 %v3399_v21, 0.0  ;;  %v1865_v14 = vadd.f32 %v3564_v20, %v1826_v16  ;;  %v1866_v25 = vadd.f32 %v3564_v20, %v1827_v9  ;;  %v1008_v17 = vmax.f32 %v3954_v44, 0.0  ;;  %v3955_v21 = vld [vmem:[#allocation6_spill] sm:$0xff]  ;;  %2905 = vmatmul.mubr.bf16.gmra.mrb[16].mxu1 %v1939_v26 }
 0x2d3   : > { %v1924_v1 = vsel %vm771_vm0, %v1892_v38, %v3952_v46  ;;  %v1895_v15 = vmax.f32 %v1863_v55, 0.0  ;;  %v1896_v57 = vmax.f32 %v1864_v41, 0.0  ;;  %v1010_v49 = vmax.f32 %v3421_v18, 0.0  ;;  %2908 = vmatprep.mubr.bf16.mxu1 %v1940_v61 }
 0x2d4   : > { %v1925_v4 = vsel %vm771_vm0, %v1893_v29, %v3953_v7  ;;  %v1897_v23 = vmax.f32 %v1865_v14, 0.0  ;;  %v1867_v11 = vadd.f32 %v3564_v20, %v1828_v51  ;;  %v1898_v32 = vmax.f32 %v1866_v25, 0.0 }
 0x2d5   : > { %v1944_v47 = vpack.c.bf16 %v1925_v4, %v1924_v1  ;;  %v1012_v30 = vmax.f32 %v3417_v58, 0.0  ;;  %v3956_v34 = vmax.f32 %v3955_v21, 0.0  ;;  %v1927_v35 = vsel %vm771_vm0, %v1895_v15, %v1008_v17  ;;  %v3959_v58 = vld [vmem:[#allocation9_spill] sm:$0xff] }
 0x2d6   : > { %v3958_v48 = vmax.f32 %v3957_v63, 0.0  ;;  %v1929_v39 = vsel %vm771_vm0, %v1897_v23, %v1010_v49  ;;  %v1899_v18 = vmax.f32 %v1867_v11, 0.0  ;;  %v3960_v5 = vmax.f32 %v3959_v58, 0.0 }
 0x2d7   : > { %v1926_v0 = vsel %vm771_vm0, %v1894_v6, %v3956_v34 }
 0x2d8   : > { %v1945_v12 = vpack.c.bf16 %v1927_v35, %v1926_v0  ;;  %v1928_v33 = vsel %vm771_vm0, %v1896_v57, %v3958_v48  ;;  %v1930_v22 = vsel %vm771_vm0, %v1898_v32, %v3960_v5  ;;  %v1931_v31 = vsel %vm771_vm0, %v1899_v18, %v1012_v30 }
 0x2d9   : > { %v1946_v20 = vpack.c.bf16 %v1929_v39, %v1928_v33  ;;  %v1947_v36 = vpack.c.bf16 %v1931_v31, %v1930_v22 }
 0x2da   : > { %2909 = vmatmul.mubr.bf16.gmra.mrb[20].mxu1 %v1941_v13 }
 0x2db   : > { %2912 = vmatprep.mubr.bf16.mxu1 %v1942_v60 }
 0x2e2   : > { %2913 = vmatmul.mubr.bf16.gmra.mrb[24].mxu1 %v1943_v56 }
 0x2e3   : > { %2916 = vmatprep.mubr.bf16.mxu1 %v1944_v47 }
 0x2ea   : > { %2917 = vmatmul.mubr.bf16.gmra.mrb[28].mxu1 %v1945_v12 }
 0x2eb   : > { %2920 = vmatprep.mubr.bf16.mxu1 %v1946_v20 }
 0x2f2   : > { %2921 = vmatmul.mubr.bf16.gmra.mrb[32].mxu1 %v1947_v36 }
 0x38d   : > { %v2894_v40 = vpop.f32.mrb[4].mxu1 }
 0x38e   : > { %v2062_v26 = vadd.f32 %v2894_v40, %v3758_v50  ;;  %v2053_v61 = vpop.f32.mrb[5].mxu1 }
 0x38f   : > { %v2054_v8 = vadd.f32 %v3758_v50, %v2053_v61  ;;  %v2895_v53 = vpop.f32.mrb[6].mxu1 }
 0x390   : > { %v2182_v13 = vmax.f32 %v2062_v26, 0.0  ;;  %v2065_v59 = vadd.f32 %v2895_v53, %v3758_v50  ;;  %v2056_v27 = vpop.f32.mrb[7].mxu1 }
 0x391   : > { %v2180_v52 = vmax.f32 %v2054_v8, 0.0  ;;  %v2057_v43 = vadd.f32 %v3758_v50, %v2056_v27 }
 0x392   : > { %v2682_v19 = vpack.c.bf16 %v2182_v13, %v2182_v13  ;;  %v2183_v28 = vmax.f32 %v2065_v59, 0.0 }
 0x393   : > { %v2680_v62 = vpack.c.bf16 %v2180_v52, %v2180_v52  ;;  %v2181_v60 = vmax.f32 %v2057_v43, 0.0 }
 0x394   : > { %2342 = vst.msk [vmem:[%s3768_s24 + $0x8] sm:$0xf] %vm1458_vm9, %v2682_v19  ;;  %v2683_v37 = vpack.c.bf16 %v2183_v28, %v2183_v28 }
 0x395   : > { %2340 = vst.msk [vmem:[%s3768_s24] sm:$0xf] %vm1458_vm9, %v2680_v62  ;;  %v2681_v2 = vpack.c.bf16 %v2181_v60, %v2181_v60  ;;  %v2898_v42 = vpop.f32.mrb[8].mxu1 }
 0x396   : > { %2343 = vst.msk [vmem:[%s3768_s24 + $0xc] sm:$0xf] %vm1458_vm9, %v2683_v37  ;;  %v2078_v45 = vadd.f32 %v2898_v42, %v3758_v50  ;;  %v2069_v56 = vpop.f32.mrb[9].mxu1 }
 0x397   : > { %2341 = vst.msk [vmem:[%s3768_s24 + $0x4] sm:$0xf] %vm1458_vm9, %v2681_v2  ;;  %v2070_v24 = vadd.f32 %v3758_v50, %v2069_v56  ;;  %v2899_v10 = vpop.f32.mrb[10].mxu1 }
 0x398   : > { %v2186_v3 = vmax.f32 %v2078_v45, 0.0  ;;  %v2081_v38 = vadd.f32 %v2899_v10, %v3758_v50  ;;  %v2072_v29 = vpop.f32.mrb[11].mxu1 }
 0x399   : > { %v2184_v16 = vmax.f32 %v2070_v24, 0.0  ;;  %v2073_v9 = vadd.f32 %v3758_v50, %v2072_v29 }
 0x39a   : > { %v2686_v55 = vpack.c.bf16 %v2186_v3, %v2186_v3  ;;  %v2187_v6 = vmax.f32 %v2081_v38, 0.0 }
 0x39b   : > { %v2684_v41 = vpack.c.bf16 %v2184_v16, %v2184_v16  ;;  %v2185_v51 = vmax.f32 %v2073_v9, 0.0 }
 0x39c   : > { %2346 = vst.msk [vmem:[%s3768_s24 + $0x18] sm:$0xf] %vm1458_vm9, %v2686_v55  ;;  %v2687_v54 = vpack.c.bf16 %v2187_v6, %v2187_v6 }
 0x39d   : > { %2344 = vst.msk [vmem:[%s3768_s24 + $0x10] sm:$0xf] %vm1458_vm9, %v2684_v41  ;;  %v2685_v46 = vpack.c.bf16 %v2185_v51, %v2185_v51  ;;  %v2902_v1 = vpop.f32.mrb[12].mxu1 }
 0x39e   : > { %2347 = vst.msk [vmem:[%s3768_s24 + $0x1c] sm:$0xf] %vm1458_vm9, %v2687_v54  ;;  %v2094_v7 = vadd.f32 %v2902_v1, %v3758_v50  ;;  %v2085_v4 = vpop.f32.mrb[13].mxu1 }
 0x39f   : > { %2345 = vst.msk [vmem:[%s3768_s24 + $0x14] sm:$0xf] %vm1458_vm9, %v2685_v46  ;;  %v2086_v14 = vadd.f32 %v3758_v50, %v2085_v4  ;;  %v2903_v25 = vpop.f32.mrb[14].mxu1 }
 0x3a0   : > { %v2190_v44 = vmax.f32 %v2094_v7, 0.0  ;;  %v2097_v17 = vadd.f32 %v2903_v25, %v3758_v50  ;;  %v2088_v47 = vpop.f32.mrb[15].mxu1 }
 0x3a1   : > { %v2188_v15 = vmax.f32 %v2086_v14, 0.0  ;;  %v2089_v57 = vadd.f32 %v3758_v50, %v2088_v47 }
 0x3a2   : > { %v2690_v49 = vpack.c.bf16 %v2190_v44, %v2190_v44  ;;  %v2191_v23 = vmax.f32 %v2097_v17, 0.0 }
 0x3a3   : > { %v2688_v11 = vpack.c.bf16 %v2188_v15, %v2188_v15  ;;  %v2189_v32 = vmax.f32 %v2089_v57, 0.0 }
 0x3a4   : > { %2350 = vst.msk [vmem:[%s3768_s24 + $0x28] sm:$0xf] %vm1458_vm9, %v2690_v49  ;;  %v2691_v30 = vpack.c.bf16 %v2191_v23, %v2191_v23 }
 0x3a5   : > { %2348 = vst.msk [vmem:[%s3768_s24 + $0x20] sm:$0xf] %vm1458_vm9, %v2688_v11  ;;  %v2689_v21 = vpack.c.bf16 %v2189_v32, %v2189_v32  ;;  %v2906_v34 = vpop.f32.mrb[16].mxu1 }
 0x3a6   : > { %2351 = vst.msk [vmem:[%s3768_s24 + $0x2c] sm:$0xf] %vm1458_vm9, %v2691_v30  ;;  %v2110_v0 = vadd.f32 %v2906_v34, %v3758_v50  ;;  %v2101_v35 = vpop.f32.mrb[17].mxu1 }
 0x3a7   : > { %2349 = vst.msk [vmem:[%s3768_s24 + $0x24] sm:$0xf] %vm1458_vm9, %v2689_v21  ;;  %v2102_v12 = vadd.f32 %v3758_v50, %v2101_v35  ;;  %v2907_v63 = vpop.f32.mrb[18].mxu1 }
 0x3a8   : > { %v2194_v48 = vmax.f32 %v2110_v0, 0.0  ;;  %v2113_v33 = vadd.f32 %v2907_v63, %v3758_v50  ;;  %v2104_v39 = vpop.f32.mrb[19].mxu1 }
 0x3a9   : > { %v2192_v18 = vmax.f32 %v2102_v12, 0.0  ;;  %v2105_v20 = vadd.f32 %v3758_v50, %v2104_v39 }
 0x3aa   : > { %v2694_v58 = vpack.c.bf16 %v2194_v48, %v2194_v48  ;;  %v2195_v5 = vmax.f32 %v2113_v33, 0.0 }
 0x3ab   : > { %v2692_v22 = vpack.c.bf16 %v2192_v18, %v2192_v18  ;;  %v2193_v31 = vmax.f32 %v2105_v20, 0.0 }
 0x3ac   : > { %2354 = vst.msk [vmem:[%s3768_s24 + $0x38] sm:$0xf] %vm1458_vm9, %v2694_v58  ;;  %v2695_v36 = vpack.c.bf16 %v2195_v5, %v2195_v5 }
 0x3ad   : > { %2352 = vst.msk [vmem:[%s3768_s24 + $0x30] sm:$0xf] %vm1458_vm9, %v2692_v22  ;;  %v2693_v40 = vpack.c.bf16 %v2193_v31, %v2193_v31  ;;  %v2910_v26 = vpop.f32.mrb[20].mxu1 }
 0x3ae   : > { %2355 = vst.msk [vmem:[%s3768_s24 + $0x3c] sm:$0xf] %vm1458_vm9, %v2695_v36  ;;  %v2126_v61 = vadd.f32 %v2910_v26, %v3758_v50  ;;  %v2117_v8 = vpop.f32.mrb[21].mxu1 }
 0x3af   : > { %2353 = vst.msk [vmem:[%s3768_s24 + $0x34] sm:$0xf] %vm1458_vm9, %v2693_v40  ;;  %v2118_v53 = vadd.f32 %v3758_v50, %v2117_v8  ;;  %v2911_v13 = vpop.f32.mrb[22].mxu1 }
 0x3b0   : > { %v2198_v59 = vmax.f32 %v2126_v61, 0.0  ;;  %v2129_v27 = vadd.f32 %v2911_v13, %v3758_v50  ;;  %v2120_v52 = vpop.f32.mrb[23].mxu1 }
 0x3b1   : > { %v2196_v43 = vmax.f32 %v2118_v53, 0.0  ;;  %v2121_v19 = vadd.f32 %v3758_v50, %v2120_v52 }
 0x3b2   : > { %v2698_v28 = vpack.c.bf16 %v2198_v59, %v2198_v59  ;;  %v2199_v62 = vmax.f32 %v2129_v27, 0.0 }
 0x3b3   : > { %v2696_v60 = vpack.c.bf16 %v2196_v43, %v2196_v43  ;;  %v2197_v37 = vmax.f32 %v2121_v19, 0.0 }
 0x3b4   : > { %2358 = vst.msk [vmem:[%s3768_s24 + $0x48] sm:$0xf] %vm1458_vm9, %v2698_v28  ;;  %v2699_v2 = vpack.c.bf16 %v2199_v62, %v2199_v62 }
 0x3b5   : > { %2356 = vst.msk [vmem:[%s3768_s24 + $0x40] sm:$0xf] %vm1458_vm9, %v2696_v60  ;;  %v2697_v42 = vpack.c.bf16 %v2197_v37, %v2197_v37  ;;  %v2914_v45 = vpop.f32.mrb[24].mxu1 }
 0x3b6   : > { %2359 = vst.msk [vmem:[%s3768_s24 + $0x4c] sm:$0xf] %vm1458_vm9, %v2699_v2  ;;  %v2142_v56 = vadd.f32 %v2914_v45, %v3758_v50  ;;  %v2133_v24 = vpop.f32.mrb[25].mxu1 }
 0x3b7   : > { %2357 = vst.msk [vmem:[%s3768_s24 + $0x44] sm:$0xf] %vm1458_vm9, %v2697_v42  ;;  %v2134_v10 = vadd.f32 %v3758_v50, %v2133_v24  ;;  %v2915_v3 = vpop.f32.mrb[26].mxu1 }
 0x3b8   : > { %v2202_v38 = vmax.f32 %v2142_v56, 0.0  ;;  %v2145_v29 = vadd.f32 %v2915_v3, %v3758_v50  ;;  %v2136_v16 = vpop.f32.mrb[27].mxu1 }
 0x3b9   : > { %v2200_v9 = vmax.f32 %v2134_v10, 0.0  ;;  %v2137_v55 = vadd.f32 %v3758_v50, %v2136_v16 }
 0x3ba   : > { %v2702_v6 = vpack.c.bf16 %v2202_v38, %v2202_v38  ;;  %v2203_v41 = vmax.f32 %v2145_v29, 0.0 }
 0x3bb   : > { %v2700_v51 = vpack.c.bf16 %v2200_v9, %v2200_v9  ;;  %v2201_v54 = vmax.f32 %v2137_v55, 0.0 }
 0x3bc   : > { %2362 = vst.msk [vmem:[%s3768_s24 + $0x58] sm:$0xf] %vm1458_vm9, %v2702_v6  ;;  %v2703_v46 = vpack.c.bf16 %v2203_v41, %v2203_v41 }
 0x3bd   : > { %2360 = vst.msk [vmem:[%s3768_s24 + $0x50] sm:$0xf] %vm1458_vm9, %v2700_v51  ;;  %v2701_v1 = vpack.c.bf16 %v2201_v54, %v2201_v54  ;;  %v2918_v7 = vpop.f32.mrb[28].mxu1 }
 0x3be   : > { %2363 = vst.msk [vmem:[%s3768_s24 + $0x5c] sm:$0xf] %vm1458_vm9, %v2703_v46  ;;  %v2158_v4 = vadd.f32 %v2918_v7, %v3758_v50  ;;  %v2149_v14 = vpop.f32.mrb[29].mxu1 }
 0x3bf   : > { %2361 = vst.msk [vmem:[%s3768_s24 + $0x54] sm:$0xf] %vm1458_vm9, %v2701_v1  ;;  %v2150_v25 = vadd.f32 %v3758_v50, %v2149_v14  ;;  %v2919_v44 = vpop.f32.mrb[30].mxu1 }
 0x3c0   : > { %v2206_v17 = vmax.f32 %v2158_v4, 0.0  ;;  %v2161_v47 = vadd.f32 %v2919_v44, %v3758_v50  ;;  %v2152_v15 = vpop.f32.mrb[31].mxu1 }
 0x3c1   : > { %v2204_v57 = vmax.f32 %v2150_v25, 0.0  ;;  %v2153_v49 = vadd.f32 %v3758_v50, %v2152_v15 }
 0x3c2   : > { %v2706_v23 = vpack.c.bf16 %v2206_v17, %v2206_v17  ;;  %v2207_v11 = vmax.f32 %v2161_v47, 0.0 }
 0x3c3   : > { %v2704_v32 = vpack.c.bf16 %v2204_v57, %v2204_v57  ;;  %v2205_v30 = vmax.f32 %v2153_v49, 0.0 }
 0x3c4   : > { %2366 = vst.msk [vmem:[%s3768_s24 + $0x68] sm:$0xf] %vm1458_vm9, %v2706_v23  ;;  %v2707_v21 = vpack.c.bf16 %v2207_v11, %v2207_v11 }
 0x3c5   : > { %2364 = vst.msk [vmem:[%s3768_s24 + $0x60] sm:$0xf] %vm1458_vm9, %v2704_v32  ;;  %v2705_v34 = vpack.c.bf16 %v2205_v30, %v2205_v30  ;;  %v2922_v0 = vpop.f32.mrb[32].mxu1 }
 0x3c6   : > { %2367 = vst.msk [vmem:[%s3768_s24 + $0x6c] sm:$0xf] %vm1458_vm9, %v2707_v21  ;;  %v2174_v35 = vadd.f32 %v2922_v0, %v3758_v50  ;;  %v2165_v12 = vpop.f32.mrb[33].mxu1 }
 0x3c7   : > { %2365 = vst.msk [vmem:[%s3768_s24 + $0x64] sm:$0xf] %vm1458_vm9, %v2705_v34  ;;  %v2166_v63 = vadd.f32 %v3758_v50, %v2165_v12  ;;  %v2923_v48 = vpop.f32.mrb[34].mxu1 }
 0x3c8   : > { %v2210_v33 = vmax.f32 %v2174_v35, 0.0  ;;  %v2177_v39 = vadd.f32 %v2923_v48, %v3758_v50  ;;  %v2168_v18 = vpop.f32.mrb[35].mxu1 }
 0x3c9   : > { %v2208_v20 = vmax.f32 %v2166_v63, 0.0  ;;  %v2169_v58 = vadd.f32 %v3758_v50, %v2168_v18 }
 0x3ca   : > { %v2710_v5 = vpack.c.bf16 %v2210_v33, %v2210_v33  ;;  %v2211_v22 = vmax.f32 %v2177_v39, 0.0 }
 0x3cb   : > { %v2708_v31 = vpack.c.bf16 %v2208_v20, %v2208_v20  ;;  %v2209_v36 = vmax.f32 %v2169_v58, 0.0 }
 0x3cc   : > { %2370 = vst.msk [vmem:[%s3768_s24 + $0x78] sm:$0xf] %vm1458_vm9, %v2710_v5  ;;  %v2711_v40 = vpack.c.bf16 %v2211_v22, %v2211_v22 }
 0x3cd   : > { %2368 = vst.msk [vmem:[%s3768_s24 + $0x70] sm:$0xf] %vm1458_vm9, %v2708_v31  ;;  %v2709_v26 = vpack.c.bf16 %v2209_v36, %v2209_v36 }
 0x3ce   : > { %2371 = vst.msk [vmem:[%s3768_s24 + $0x7c] sm:$0xf] %vm1458_vm9, %v2711_v40 }
 0x3cf   : > { %2369 = vst.msk [vmem:[%s3768_s24 + $0x74] sm:$0xf] %vm1458_vm9, %v2709_v26 }
 0x3d0 PF: > { %s26_s20 = sadd.s32 1, %s3029_s20   ;;  %s3961_s18 = smov %s3025_s19 }
 0x3d1   : > { %p23_p5 = scmp.ge.s32.totalorder %s26_s20, 4   ;;  %s3962_s19 = smov %s3964_s21 }
 0x3d3   :  { %25 = sbr.rel (!%p23_p5) target bundleno = 2 (0x2), region = 124 }

// kernel: weave_enc_forward.5
= control target key start
LH: loop header
LB: loop body
LE: loop exit
PB: predicated region body
PF: predicated region fallthrough
CT: control target
= control target key end

     0   :  { %s2307_s29 = smov 0   ;;  %s2309_s30 = smov 0   ;;  %s2625_s0 = inlined_call_operand.vmem [shape: bf16[2,16,64], index: 0, kind: input, shape index: {}]   ;;  %s2626_s1 = inlined_call_operand.vmem [shape: bf16[2,16,16,64], index: 1, kind: input, shape index: {}]   ;;  %s2627_s2 = inlined_call_operand.vmem [shape: bf16[64,64], index: 2, kind: input, shape index: {}]   ;;  %s2628_s3 = inlined_call_operand.vmem [shape: f32[1,64], index: 3, kind: input, shape index: {}]   ;;  %s2629_s4 = inlined_call_operand.vmem [shape: bf16[64,64], index: 4, kind: input, shape index: {}]   ;;  %s2630_s5 = inlined_call_operand.vmem [shape: f32[1,64], index: 5, kind: input, shape index: {}]   ;;  %s2631_s6 = inlined_call_operand.vmem [shape: bf16[128,64], index: 6, kind: input, shape index: {}]   ;;  %s2632_s7 = inlined_call_operand.vmem [shape: f32[1,64], index: 7, kind: input, shape index: {}]   ;;  %s2633_s8 = inlined_call_operand.vmem [shape: bf16[64,128], index: 8, kind: input, shape index: {}]   ;;  %s2634_s9 = inlined_call_operand.vmem [shape: f32[1,128], index: 9, kind: input, shape index: {}]   ;;  %s2635_s10 = inlined_call_operand.vmem [shape: bf16[128,128], index: 10, kind: input, shape index: {}]   ;;  %s2636_s11 = inlined_call_operand.vmem [shape: f32[1,128], index: 11, kind: input, shape index: {}]   ;;  %s2637_s12 = inlined_call_operand.vmem [shape: bf16[128,256], index: 12, kind: input, shape index: {}]   ;;  %s2638_s13 = inlined_call_operand.vmem [shape: f32[1,256], index: 13, kind: input, shape index: {}]   ;;  %s2639_s14 = inlined_call_operand.vmem [shape: f32[2,16,256], index: 14, kind: output, shape index: {}]  }
   0x1   :  { %s2311_s15 = smov 0  }
   0x2 LB: > { %s36_s16 = sadd.s32 1, %s2222_s30  ;;  %p1854_p0 = scmp.ge.s32.totalorder %s2226_s15, 1  ;;  %s2226_s15 = sphi %s2311_s15, %s24_s15   ;;  %s2222_s30 = sphi %s2309_s30, %s2641_s30   ;;  %s2218_s29 = sphi %s2307_s29, %s2640_s29  }
   0x3   : > { %p38_p1 = scmp.ge.s32.totalorder %s36_s16, 2  ;;  %p451_p2 = scmp.lt.s32.totalorder %s2226_s15, 3 }
   0x5   : > { %s2643_s16 = smov (%p38_p1, %s36_s16), 0  ;;  %p452_p3 = pnand %p1854_p0, %p451_p2 }
   0x6   : > { %v2135_v0 = vld [vmem:[%s2629_s4] sm:$0xff] (!%p452_p3)   ;;  %p517_p4 = scmp.lt.s32.totalorder (!%p452_p3), %s2218_s29, 1  ;;  %v2136_v1 = vld [vmem:[%s2629_s4 + $0x8] sm:$0xff] (!%p452_p3)   ;;  %vm700_vm0 = vcmask (!%p452_p3), 523264   ;;  %v2137_v2 = vld [vmem:[%s2629_s4 + $0x10] sm:$0xff] (!%p452_p3)   ;;  %v2228_v3 = vmov (!%p452_p3), 0.0  }
   0x7   : > { %455 = sbr.rel (%p452_p3) target bundleno = 1311 (0x51f), region = 76  ;;  %1998 = vmatprep.subr.bf16.mxu0 (!%p452_p3), %v2135_v0  ;;  %2038 = vmatprep.subr.bf16.mxu1 (!%p452_p3), %v2228_v3  ;;  %v2155_v4 = vld [vmem:[%s2627_s2] sm:$0xff] (!%p452_p3)   ;;  %v2156_v5 = vld [vmem:[%s2627_s2 + $0x8] sm:$0xff] (!%p452_p3)   ;;  %vm2229_vm1 = vmmov (!%p452_p3), 0   ;;  %v2138_v7 = vld [vmem:[%s2629_s4 + $0x18] sm:$0xff] (!%p452_p3)   ;;  %vm1235_vm2 = vcmask (!%p452_p3), 1041409  }
   0x8   : > { %1999 = vmatpush3.bf16.msra.mxu0 (!%p452_p3), %v2135_v0  ;;  %2039 = vmatpush3.bf16.msra.mxu1 (!%p452_p3), %v2155_v4  ;;  %v2157_v11 = vld [vmem:[%s2627_s2 + $0x10] sm:$0xff] (!%p452_p3)   ;;  %v2158_v13 = vld [vmem:[%s2627_s2 + $0x18] sm:$0xff] (!%p452_p3)   ;;  %v2160_v26 = vld [vmem:[%s2631_s6] sm:$0xff] (!%p452_p3)   ;;  %vm1237_vm3 = vcmask (!%p452_p3), 1042434   ;;  %vm1239_vm4 = vcmask (!%p452_p3), 1043459   ;;  %vm1241_vm5 = vcmask (!%p452_p3), 1044484  }
   0x9   : > { %2000 = vmatprep.subr.bf16.mxu0 (!%p452_p3), %v2136_v1  ;;  %2046 = vmatprep.mubr.msk.bf16.mxu1 (!%p452_p3), %vm2229_vm1, %v2228_v3  ;;  %v2161_v27 = vld [vmem:[%s2631_s6 + $0x8] sm:$0xff] (!%p452_p3)   ;;  %v2162_v28 = vld [vmem:[%s2631_s6 + $0x10] sm:$0xff] (!%p452_p3)   ;;  %v2163_v29 = vld [vmem:[%s2631_s6 + $0x18] sm:$0xff] (!%p452_p3)   ;;  %vm1243_vm6 = vcmask (!%p452_p3), 1045509   ;;  %vm1245_vm7 = vcmask (!%p452_p3), 1046534   ;;  %vm1247_vm8 = vcmask (!%p452_p3), 1047559  }
   0xa   : > { %2040 = vmatprep.subr.bf16.mxu1 (!%p452_p3), %v2228_v3  ;;  %v2164_v30 = vld [vmem:[%s2631_s6 + $0x20] sm:$0xff] (!%p452_p3)   ;;  %v2165_v31 = vld [vmem:[%s2631_s6 + $0x28] sm:$0xff] (!%p452_p3)   ;;  %v2166_v32 = vld [vmem:[%s2631_s6 + $0x30] sm:$0xff] (!%p452_p3)  }
   0xb   : > { %v2437_v33 = vld [vmem:[%s2630_s5] ss:$0 sm:$0xff] (!%p452_p3) }
   0xc   : > { %2001 = vmatpush3.bf16.msra.mxu0 (!%p452_p3), %v2136_v1  ;;  %2041 = vmatpush3.bf16.msra.mxu1 (!%p452_p3), %v2156_v5 }
   0xd   : > { %2002 = vmatprep.subr.bf16.mxu0 (!%p452_p3), %v2137_v2  ;;  %2042 = vmatprep.subr.bf16.mxu1 (!%p452_p3), %v2228_v3 }
   0xe   : > { %s2645_s29 = smov (!%p517_p4, %s2218_s29), 1 }
   0xf   : > { %s1948_s23 = sshll.u32 %s2645_s29, 7  ;;  %s1947_s21 = sshll.u32 %s2645_s29, 3 }
  0x10   : > { %s2344_s28 = scalar_lea.vmem %s2626_s1, %s1948_s23  ;;  %2003 = vmatpush3.bf16.msra.mxu0 %v2137_v2  ;;  %s524_s26 = scalar_lea.vmem %s2625_s0, %s1947_s21  ;;  %2043 = vmatpush3.bf16.msra.mxu1 %v2157_v11 }
  0x11   : > { %v2139_v6 = vld [vmem:[%s2344_s28] sm:$0xff]   ;;  %2004 = vmatprep.subr.bf16.mxu0 %v2138_v7  ;;  %v2140_v8 = vld [vmem:[%s2344_s28 + $0x8] sm:$0xff]   ;;  %v2141_v9 = vld [vmem:[%s2344_s28 + $0x10] sm:$0xff]   ;;  %2044 = vmatprep.subr.bf16.mxu1 %v2228_v3  ;;  %s1949_s19 = sshll.u32 %s2645_s29, 5 }
  0x12   : > { %2006 = vmatprep.mubr.msk.bf16.mxu0 %vm700_vm0, %v2139_v6  ;;  %v2142_v10 = vld [vmem:[%s2344_s28 + $0x18] sm:$0xff]   ;;  %v2143_v12 = vld [vmem:[%s2344_s28 + $0x20] sm:$0xff]   ;;  %v2144_v15 = vld [vmem:[%s2344_s28 + $0x28] sm:$0xff]   ;;  %s546_s22 = scalar_lea.vmem %s2639_s14, %s1949_s19 }
  0x13   : > { %v2159_v14 = vld [vmem:[%s524_s26] sm:$0xff]   ;;  %v2145_v16 = vld [vmem:[%s2344_s28 + $0x30] sm:$0xff]   ;;  %v2146_v17 = vld [vmem:[%s2344_s28 + $0x38] sm:$0xff]  }
  0x14   : > { %2005 = vmatpush3.bf16.msra.mxu0 %v2138_v7  ;;  %2045 = vmatpush3.bf16.msra.mxu1 %v2158_v13  ;;  %v2147_v18 = vld [vmem:[%s2344_s28 + $0x40] sm:$0xff]   ;;  %v2148_v19 = vld [vmem:[%s2344_s28 + $0x48] sm:$0xff]   ;;  %v2149_v20 = vld [vmem:[%s2344_s28 + $0x50] sm:$0xff]  }
  0x15   : > { %2082 = vmatprep.subr.bf16.mxu0 %v2228_v3  ;;  %2050 = vmatprep.subr.bf16.mxu1 %v2228_v3  ;;  %v2150_v21 = vld [vmem:[%s2344_s28 + $0x58] sm:$0xff]   ;;  %v2151_v22 = vld [vmem:[%s2344_s28 + $0x60] sm:$0xff]   ;;  %v2152_v23 = vld [vmem:[%s2344_s28 + $0x68] sm:$0xff]  }
  0x16   : > { %v2153_v24 = vld [vmem:[%s2344_s28 + $0x70] sm:$0xff]   ;;  %v2154_v25 = vld [vmem:[%s2344_s28 + $0x78] sm:$0xff]   ;;  %s2230_s28 = smov 64  }
  0x17   : > { %2007 = vmatmul.mubr.msk.bf16.vlgmr.msra.gmra.mrb[0].mxu0 %vm700_vm0, %v2140_v8  ;;  %2047 = vmatmul.mubr.msk.bf16.vlgmr.msra.gmra.mrb[0].mxu1 %vm700_vm0, %v2159_v14 }
  0x18   : > { %2010 = vmatprep.mubr.msk.bf16.mxu0 %vm700_vm0, %v2141_v9  ;;  %2066 = vmatprep.mubr.msk.bf16.mxu1 %vm2229_vm1, %v2228_v3 }
  0x19   : > { %2051 = vmatpush3.bf16.msra.mxu1 %v2160_v26 }
  0x1a   : > { %2052 = vmatprep.subr.bf16.mxu1 %v2228_v3 }
  0x1d   : > { %2053 = vmatpush3.bf16.msra.mxu1 %v2161_v27 }
  0x1e   : > { %2054 = vmatprep.subr.bf16.mxu1 %v2228_v3 }
  0x1f   : > { %2011 = vmatmul.mubr.msk.bf16.gmra.mrb[4].mxu0 %vm700_vm0, %v2142_v10 }
  0x20   : > { %2014 = vmatprep.mubr.msk.bf16.mxu0 %vm700_vm0, %v2143_v12 }
  0x21   : > { %2055 = vmatpush3.bf16.msra.mxu1 %v2162_v28 }
  0x22   : > { %2056 = vmatprep.subr.bf16.mxu1 %v2228_v3 }
  0x25   : > { %2057 = vmatpush3.bf16.msra.mxu1 %v2163_v29 }
  0x26   : > { %2058 = vmatprep.subr.bf16.mxu1 %v2228_v3 }
  0x27   : > { %2015 = vmatmul.mubr.msk.bf16.gmra.mrb[8].mxu0 %vm700_vm0, %v2144_v15 }
  0x28   : > { %2018 = vmatprep.mubr.msk.bf16.mxu0 %vm700_vm0, %v2145_v16 }
  0x29   : > { %2059 = vmatpush3.bf16.msra.mxu1 %v2164_v30 }
  0x2a   : > { %2060 = vmatprep.subr.bf16.mxu1 %v2228_v3 }
  0x2d   : > { %2061 = vmatpush3.bf16.msra.mxu1 %v2165_v31 }
  0x2e   : > { %2062 = vmatprep.subr.bf16.mxu1 %v2228_v3 }
  0x2f   : > { %2019 = vmatmul.mubr.msk.bf16.gmra.mrb[12].mxu0 %vm700_vm0, %v2146_v17 }
  0x30   : > { %2022 = vmatprep.mubr.msk.bf16.mxu0 %vm700_vm0, %v2147_v18 }
  0x31   : > { %2063 = vmatpush3.bf16.msra.mxu1 %v2166_v32 }
  0x32   : > { %2064 = vmatprep.subr.bf16.mxu1 %v2228_v3 }
  0x37   : > { %2023 = vmatmul.mubr.msk.bf16.gmra.mrb[16].mxu0 %vm700_vm0, %v2148_v19 }
  0x38   : > { %2026 = vmatprep.mubr.msk.bf16.mxu0 %vm700_vm0, %v2149_v20 }
  0x3f   : > { %2027 = vmatmul.mubr.msk.bf16.gmra.mrb[20].mxu0 %vm700_vm0, %v2150_v21 }
  0x40   : > { %2030 = vmatprep.mubr.msk.bf16.mxu0 %vm700_vm0, %v2151_v22 }
  0x47   : > { %2031 = vmatmul.mubr.msk.bf16.gmra.mrb[24].mxu0 %vm700_vm0, %v2152_v23 }
  0x48   : > { %2034 = vmatprep.mubr.msk.bf16.mxu0 %vm700_vm0, %v2153_v24 }
  0x4f   : > { %2035 = vmatmul.mubr.msk.bf16.gmra.mrb[28].mxu0 %vm700_vm0, %v2154_v25 }
  0x50   : > { %2098 = vmatprep.mubr.msk.bf16.mxu0 %vm2229_vm1, %v2228_v3 }
  0xea   : > { %v2008_v34 = vpop.f32.mrb[0].mxu0  ;;  %v2446_v61 = vpop.f32.mrb[0].mxu1 }
  0xeb   : > { %v792_v35 = vadd.f32 %v2008_v34, %v2437_v33  ;;  %v783_v36 = vpop.f32.mrb[1].mxu0  ;;  %v2048_v1 = vpop.f32.mrb[1].mxu1 }
  0xec   : > { %v784_v37 = vadd.f32 %v2437_v33, %v783_v36  ;;  %v2009_v38 = vpop.f32.mrb[2].mxu0  ;;  %v2449_v5 = vpop.f32.mrb[2].mxu1 }
  0xed   : > { %v912_v39 = vmax.f32 %v792_v35, 0.0  ;;  %v786_v40 = vpop.f32.mrb[3].mxu0  ;;  %v2049_v9 = vpop.f32.mrb[3].mxu1 }
  0xee   : > { %v910_v41 = vmax.f32 %v784_v37, 0.0 }
  0xef   : > { %v992_v42 = vsel %vm700_vm0, %v912_v39, 0.0 }
  0xf0   : > { %v995_v43 = vrot.slane %v992_v42, 4  ;;  %v983_v44 = vsel %vm700_vm0, %v910_v41, 0.0 }
  0xf1   : > { %v986_v45 = vrot.slane %v983_v44, 4 }
  0xf2   : > { %v996_v46 = vadd.f32 %v995_v43, %v992_v42  ;;  %v2012_v47 = vpop.f32.mrb[4].mxu0 }
  0xf3   : > { %v987_v48 = vadd.f32 %v986_v45, %v983_v44  ;;  %v808_v49 = vadd.f32 %v2012_v47, %v2437_v33  ;;  %v799_v50 = vpop.f32.mrb[5].mxu0 }
  0xf4   : > { %v997_v51 = vrot.slane %v996_v46, 2  ;;  %v800_v52 = vadd.f32 %v2437_v33, %v799_v50  ;;  %v2013_v53 = vpop.f32.mrb[6].mxu0 }
  0xf5   : > { %v988_v54 = vrot.slane %v987_v48, 2  ;;  %v916_v55 = vmax.f32 %v808_v49, 0.0  ;;  %v802_v56 = vpop.f32.mrb[7].mxu0 }
  0xf6   : > { %v998_v57 = vadd.f32 %v997_v51, %v996_v46  ;;  %v914_v58 = vmax.f32 %v800_v52, 0.0 }
  0xf7   : > { %v989_v59 = vadd.f32 %v988_v54, %v987_v48  ;;  %v1010_v60 = vsel %vm700_vm0, %v916_v55, 0.0 }
  0xf8   : > { %v999_v62 = vrot.slane %v998_v57, 1  ;;  %v1013_v63 = vrot.slane %v1010_v60, 4  ;;  %v1001_v0 = vsel %vm700_vm0, %v914_v58, 0.0 }
  0xf9   : > { %v990_v2 = vrot.slane %v989_v59, 1  ;;  %v1004_v4 = vrot.slane %v1001_v0, 4 }
  0xfa   : > { %v1000_v6 = vadd.f32 %v999_v62, %v998_v57  ;;  %v1014_v7 = vadd.f32 %v1013_v63, %v1010_v60  ;;  %v2016_v8 = vpop.f32.mrb[8].mxu0 }
  0xfb   : > { %v991_v10 = vadd.f32 %v990_v2, %v989_v59  ;;  %v1005_v11 = vadd.f32 %v1004_v4, %v1001_v0  ;;  %v824_v12 = vadd.f32 %v2016_v8, %v2437_v33  ;;  %v815_v13 = vpop.f32.mrb[9].mxu0 }
  0xfc   : > { %v1015_v14 = vrot.slane %v1014_v7, 2  ;;  %v816_v15 = vadd.f32 %v2437_v33, %v815_v13  ;;  %v2017_v16 = vpop.f32.mrb[10].mxu0 }
  0xfd   : > { %v1236_v17 = vsel %vm1235_vm2, %v1000_v6, %v991_v10  ;;  %v1006_v18 = vrot.slane %v1005_v11, 2  ;;  %v920_v19 = vmax.f32 %v824_v12, 0.0  ;;  %v818_v20 = vpop.f32.mrb[11].mxu0 }
  0xfe   : > { %v1016_v21 = vadd.f32 %v1015_v14, %v1014_v7  ;;  %v918_v22 = vmax.f32 %v816_v15, 0.0 }
  0xff   : > { %v1007_v23 = vadd.f32 %v1006_v18, %v1005_v11  ;;  %v1028_v24 = vsel %vm700_vm0, %v920_v19, 0.0 }
 0x100   : > { %v1017_v25 = vrot.slane %v1016_v21, 1  ;;  %v1031_v26 = vrot.slane %v1028_v24, 4  ;;  %v1019_v27 = vsel %vm700_vm0, %v918_v22, 0.0 }
 0x101   : > { %v1008_v28 = vrot.slane %v1007_v23, 1  ;;  %v1022_v29 = vrot.slane %v1019_v27, 4 }
 0x102   : > { %v1032_v30 = vadd.f32 %v1031_v26, %v1028_v24  ;;  %v2020_v31 = vpop.f32.mrb[12].mxu0  ;;  %v1018_v37 = vadd.f32 %v1017_v25, %v1016_v21 }
 0x103   : > { %v1009_v32 = vadd.f32 %v1008_v28, %v1007_v23  ;;  %v1023_v34 = vadd.f32 %v1022_v29, %v1019_v27  ;;  %v840_v35 = vadd.f32 %v2020_v31, %v2437_v33  ;;  %v831_v36 = vpop.f32.mrb[13].mxu0 }
 0x104   : > { %v1033_v38 = vrot.slane %v1032_v30, 2  ;;  %v832_v39 = vadd.f32 %v2437_v33, %v831_v36  ;;  %v2021_v40 = vpop.f32.mrb[14].mxu0 }
 0x105   : > { %v1238_v41 = vsel %vm1237_vm3, %v1009_v32, %v1236_v17  ;;  %v1024_v42 = vrot.slane %v1023_v34, 2  ;;  %v924_v43 = vmax.f32 %v840_v35, 0.0  ;;  %v834_v44 = vpop.f32.mrb[15].mxu0 }
 0x106   : > { %v1034_v45 = vadd.f32 %v1033_v38, %v1032_v30  ;;  %v922_v46 = vmax.f32 %v832_v39, 0.0  ;;  %v1240_v47 = vsel %vm1239_vm4, %v1018_v37, %v1238_v41 }
 0x107   : > { %v1025_v48 = vadd.f32 %v1024_v42, %v1023_v34  ;;  %v1046_v49 = vsel %vm700_vm0, %v924_v43, 0.0 }
 0x108   : > { %v1035_v50 = vrot.slane %v1034_v45, 1  ;;  %v1049_v51 = vrot.slane %v1046_v49, 4  ;;  %v1037_v52 = vsel %vm700_vm0, %v922_v46, 0.0 }
 0x109   : > { %v1026_v53 = vrot.slane %v1025_v48, 1  ;;  %v1040_v54 = vrot.slane %v1037_v52, 4 }
 0x10a   : > { %v1050_v55 = vadd.f32 %v1049_v51, %v1046_v49  ;;  %v2024_v56 = vpop.f32.mrb[16].mxu0  ;;  %v1036_v62 = vadd.f32 %v1035_v50, %v1034_v45 }
 0x10b   : > { %v1027_v57 = vadd.f32 %v1026_v53, %v1025_v48  ;;  %v1041_v58 = vadd.f32 %v1040_v54, %v1037_v52  ;;  %v856_v59 = vadd.f32 %v2024_v56, %v2437_v33  ;;  %v847_v60 = vpop.f32.mrb[17].mxu0 }
 0x10c   : > { %v1051_v63 = vrot.slane %v1050_v55, 2  ;;  %v848_v0 = vadd.f32 %v2437_v33, %v847_v60  ;;  %v2025_v1 = vpop.f32.mrb[18].mxu0 }
 0x10d   : > { %v1042_v2 = vrot.slane %v1041_v58, 2  ;;  %v928_v4 = vmax.f32 %v856_v59, 0.0  ;;  %v850_v6 = vpop.f32.mrb[19].mxu0  ;;  %v1242_v7 = vsel %vm1241_vm5, %v1027_v57, %v1240_v47 }
 0x10e   : > { %v1052_v8 = vadd.f32 %v1051_v63, %v1050_v55  ;;  %v926_v9 = vmax.f32 %v848_v0, 0.0  ;;  %v1244_v10 = vsel %vm1243_vm6, %v1036_v62, %v1242_v7 }
 0x10f   : > { %v1043_v11 = vadd.f32 %v1042_v2, %v1041_v58  ;;  %v1064_v12 = vsel %vm700_vm0, %v928_v4, 0.0 }
 0x110   : > { %v1053_v13 = vrot.slane %v1052_v8, 1  ;;  %v1067_v14 = vrot.slane %v1064_v12, 4  ;;  %v1055_v15 = vsel %vm700_vm0, %v926_v9, 0.0 }
 0x111   : > { %v1044_v16 = vrot.slane %v1043_v11, 1  ;;  %v1058_v17 = vrot.slane %v1055_v15, 4 }
 0x112   : > { %v1068_v18 = vadd.f32 %v1067_v14, %v1064_v12  ;;  %v2028_v19 = vpop.f32.mrb[20].mxu0  ;;  %v1054_v27 = vadd.f32 %v1053_v13, %v1052_v8 }
 0x113   : > { %v1045_v20 = vadd.f32 %v1044_v16, %v1043_v11  ;;  %v1059_v21 = vadd.f32 %v1058_v17, %v1055_v15  ;;  %v872_v22 = vadd.f32 %v2028_v19, %v2437_v33  ;;  %v863_v23 = vpop.f32.mrb[21].mxu0 }
 0x114   : > { %v1069_v24 = vrot.slane %v1068_v18, 2  ;;  %v864_v25 = vadd.f32 %v2437_v33, %v863_v23  ;;  %v2029_v26 = vpop.f32.mrb[22].mxu0 }
 0x115   : > { %v1060_v28 = vrot.slane %v1059_v21, 2  ;;  %v932_v29 = vmax.f32 %v872_v22, 0.0  ;;  %v866_v30 = vpop.f32.mrb[23].mxu0  ;;  %v1246_v31 = vsel %vm1245_vm7, %v1045_v20, %v1244_v10 }
 0x116   : > { %v1070_v32 = vadd.f32 %v1069_v24, %v1068_v18  ;;  %v930_v34 = vmax.f32 %v864_v25, 0.0  ;;  %v2472_v35 = vsel %vm1247_vm8, %v1054_v27, %v1246_v31 }
 0x117   : > { %v1061_v36 = vadd.f32 %v1060_v28, %v1059_v21  ;;  %v1082_v37 = vsel %vm700_vm0, %v932_v29, 0.0 }
 0x118   : > { %v1071_v38 = vrot.slane %v1070_v32, 1  ;;  %v1085_v39 = vrot.slane %v1082_v37, 4  ;;  %v1073_v40 = vsel %vm700_vm0, %v930_v34, 0.0  ;;  %v2167_v34 = vld [vmem:[%s2631_s6 + $0x38] sm:$0xff]  }
 0x119   : > { %v1062_v41 = vrot.slane %v1061_v36, 1  ;;  %v1076_v42 = vrot.slane %v1073_v40, 4  ;;  %2065 = vmatpush3.bf16.msra.mxu1 %v2167_v34 }
 0x11a   : > { %v1072_v43 = vadd.f32 %v1071_v38, %v1070_v32  ;;  %v1086_v44 = vadd.f32 %v1085_v39, %v1082_v37  ;;  %v2032_v45 = vpop.f32.mrb[24].mxu0  ;;  %2070 = vmatprep.subr.bf16.mxu1 %v2228_v3 }
 0x11b   : > { %v1063_v46 = vadd.f32 %v1062_v41, %v1061_v36  ;;  %v1077_v47 = vadd.f32 %v1076_v42, %v1073_v40  ;;  %v888_v48 = vadd.f32 %v2032_v45, %v2437_v33  ;;  %v879_v49 = vpop.f32.mrb[25].mxu0 }
 0x11c   : > { %v1087_v50 = vrot.slane %v1086_v44, 2  ;;  %v880_v51 = vadd.f32 %v2437_v33, %v879_v49  ;;  %v2033_v52 = vpop.f32.mrb[26].mxu0 }
 0x11d   : > { %v1249_v53 = vsel %vm1235_vm2, %v1072_v43, %v1063_v46  ;;  %v1078_v54 = vrot.slane %v1077_v47, 2  ;;  %v936_v55 = vmax.f32 %v888_v48, 0.0  ;;  %v882_v56 = vpop.f32.mrb[27].mxu0  ;;  %v1898_v48 = vld [vmem:[%s2628_s3] ss:$0 sm:$0xff] }
 0x11e   : > { %v1088_v57 = vadd.f32 %v1087_v50, %v1086_v44  ;;  %v934_v58 = vmax.f32 %v880_v51, 0.0  ;;  %v1211_v49 = vadd.f32 %v1898_v48, %v2446_v61  ;;  %v1214_v50 = vadd.f32 %v1898_v48, %v2449_v5  ;;  %v2169_v61 = vld [vmem:[%s2633_s8 + $0x8] sm:$0xff]   ;;  %v2170_v5 = vld [vmem:[%s2633_s8 + $0x10] sm:$0xff]  }
 0x11f   : > { %v1079_v59 = vadd.f32 %v1078_v54, %v1077_v47  ;;  %v1100_v60 = vsel %vm700_vm0, %v936_v55, 0.0 }
 0x120   : > { %v1089_v62 = vrot.slane %v1088_v57, 1  ;;  %v1103_v63 = vrot.slane %v1100_v60, 4  ;;  %v1091_v0 = vsel %vm700_vm0, %v934_v58, 0.0  ;;  %v1217_v52 = vmax.f32 %v1211_v49, 0.0 }
 0x121   : > { %v1080_v1 = vrot.slane %v1079_v59, 1  ;;  %v1094_v2 = vrot.slane %v1091_v0, 4 }
 0x122   : > { %v1104_v4 = vadd.f32 %v1103_v63, %v1100_v60  ;;  %v2036_v6 = vpop.f32.mrb[28].mxu0  ;;  %v1090_v11 = vadd.f32 %v1089_v62, %v1088_v57  ;;  %v2172_v60 = vld [vmem:[%s2635_s10] sm:$0xff]   ;;  %v2173_v62 = vld [vmem:[%s2635_s10 + $0x8] sm:$0xff]   ;;  %v2174_v63 = vld [vmem:[%s2635_s10 + $0x10] sm:$0xff]  }
 0x123   : > { %v1081_v7 = vadd.f32 %v1080_v1, %v1079_v59  ;;  %v1095_v8 = vadd.f32 %v1094_v2, %v1091_v0  ;;  %v904_v9 = vadd.f32 %v2036_v6, %v2437_v33  ;;  %v895_v10 = vpop.f32.mrb[29].mxu0  ;;  %v2171_v59 = vld [vmem:[%s2633_s8 + $0x18] sm:$0xff]   ;;  %2083 = vmatpush3.bf16.msra.mxu0 %v2172_v60  ;;  %v2176_v1 = vld [vmem:[%s2635_s10 + $0x20] sm:$0xff]   ;;  %v2177_v2 = vld [vmem:[%s2635_s10 + $0x28] sm:$0xff]  }
 0x124   : > { %v1105_v12 = vrot.slane %v1104_v4, 2  ;;  %v896_v13 = vadd.f32 %v2437_v33, %v895_v10  ;;  %v2037_v14 = vpop.f32.mrb[30].mxu0  ;;  %2084 = vmatprep.subr.bf16.mxu0 %v2228_v3  ;;  %v2175_v0 = vld [vmem:[%s2635_s10 + $0x18] sm:$0xff]   ;;  %v1905_v6 = vld [vmem:[%s2632_s7] ss:$0 sm:$0xff] }
 0x125   : > { %v1250_v15 = vsel %vm1237_vm3, %v1081_v7, %v1249_v53  ;;  %v1096_v16 = vrot.slane %v1095_v8, 2  ;;  %v940_v17 = vmax.f32 %v904_v9, 0.0  ;;  %v898_v18 = vpop.f32.mrb[31].mxu0  ;;  %v1218_v53 = vmax.f32 %v1214_v50, 0.0 }
 0x126   : > { %v1106_v19 = vadd.f32 %v1105_v12, %v1104_v4  ;;  %v938_v20 = vmax.f32 %v896_v13, 0.0  ;;  %v1251_v21 = vsel %vm1239_vm4, %v1090_v11, %v1250_v15  ;;  %v2178_v4 = vld [vmem:[%s2635_s10 + $0x30] sm:$0xff]  }
 0x127   : > { %v1097_v22 = vadd.f32 %v1096_v16, %v1095_v8  ;;  %v1118_v23 = vsel %vm700_vm0, %v940_v17, 0.0  ;;  %2085 = vmatpush3.bf16.msra.mxu0 %v2173_v62  ;;  %v2179_v16 = vld [vmem:[%s2635_s10 + $0x38] sm:$0xff]   ;;  %v2182_v17 = vld [vmem:[%s2637_s12 + $0x4] ss:$8 sps:$4 sm:$0xff]  }
 0x128   : > { %v1107_v24 = vrot.slane %v1106_v19, 1  ;;  %v1121_v25 = vrot.slane %v1118_v23, 4  ;;  %v1109_v26 = vsel %vm700_vm0, %v938_v20, 0.0  ;;  %2086 = vmatprep.subr.bf16.mxu0 %v2228_v3  ;;  %v2185_v18 = vld [vmem:[%s2637_s12 + $0x14] ss:$8 sps:$4 sm:$0xff]  }
 0x129   : > { %v1098_v27 = vrot.slane %v1097_v22, 1  ;;  %v1112_v28 = vrot.slane %v1109_v26, 4  ;;  %v2188_v20 = vld [vmem:[%s2637_s12 + $0x24] ss:$8 sps:$4 sm:$0xff]  }
 0x12a   : > { %v1122_v33 = vadd.f32 %v1121_v25, %v1118_v23  ;;  %v1108_v31 = vadd.f32 %v1107_v24, %v1106_v19  ;;  %v2183_v19 = vld [vmem:[%s2637_s12 + $0x10] ss:$8 sps:$4 sm:$0xff]   ;;  %v2194_v24 = vld [vmem:[%s2637_s12 + $0x44] ss:$8 sps:$4 sm:$0xff]   ;;  %v2192_v25 = vld [vmem:[%s2637_s12 + $0x40] ss:$8 sps:$4 sm:$0xff]  }
 0x12b   : > { %v1099_v29 = vadd.f32 %v1098_v27, %v1097_v22  ;;  %v1113_v30 = vadd.f32 %v1112_v28, %v1109_v26  ;;  %2087 = vmatpush3.bf16.msra.mxu0 %v2174_v63  ;;  %v2191_v22 = vld [vmem:[%s2637_s12 + $0x34] ss:$8 sps:$4 sm:$0xff]   ;;  %v2189_v23 = vld [vmem:[%s2637_s12 + $0x30] ss:$8 sps:$4 sm:$0xff]   ;;  %v1914_v28 = vld [vmem:[%s2634_s9] ss:$0 sm:$0xff] }
 0x12c   : > { %v1123_v32 = vrot.slane %v1122_v33, 2  ;;  %2088 = vmatprep.subr.bf16.mxu0 %v2228_v3  ;;  %v2197_v26 = vld [vmem:[%s2637_s12 + $0x54] ss:$8 sps:$4 sm:$0xff]   ;;  %v2195_v27 = vld [vmem:[%s2637_s12 + $0x50] ss:$8 sps:$4 sm:$0xff]  }
 0x12d   : > { %v1114_v36 = vrot.slane %v1113_v30, 2  ;;  %v1252_v37 = vsel %vm1241_vm5, %v1099_v29, %v1251_v21  ;;  %v2186_v21 = vld [vmem:[%s2637_s12 + $0x20] ss:$8 sps:$4 sm:$0xff]  }
 0x12e   : > { %v1124_v38 = vadd.f32 %v1123_v32, %v1122_v33  ;;  %v1253_v39 = vsel %vm1243_vm6, %v1108_v31, %v1252_v37 }
 0x12f   : > { %v1115_v40 = vadd.f32 %v1114_v36, %v1113_v30  ;;  %2089 = vmatpush3.bf16.msra.mxu0 %v2175_v0 }
 0x130   : > { %v1125_v41 = vrot.slane %v1124_v38, 1  ;;  %2090 = vmatprep.subr.bf16.mxu0 %v2228_v3 }
 0x131   : > { %v1116_v42 = vrot.slane %v1115_v40, 1 }
 0x132   : > { %v1126_v44 = vadd.f32 %v1125_v41, %v1124_v38  ;;  %v2203_v41 = vld [vmem:[%s2637_s12 + $0x74] ss:$8 sps:$4 sm:$0xff]  }
 0x133   : > { %v1117_v43 = vadd.f32 %v1116_v42, %v1115_v40  ;;  %2091 = vmatpush3.bf16.msra.mxu0 %v2176_v1  ;;  %v2198_v40 = vld [vmem:[%s2637_s12 + $0x60] ss:$8 sps:$4 sm:$0xff]   ;;  %v2201_v42 = vld [vmem:[%s2637_s12 + $0x70] ss:$8 sps:$4 sm:$0xff]  }
 0x134   : > { %2092 = vmatprep.subr.bf16.mxu0 %v2228_v3 }
 0x135   : > { %v1254_v45 = vsel %vm1245_vm7, %v1117_v43, %v1253_v39  ;;  %v2200_v39 = vld [vmem:[%s2637_s12 + $0x64] ss:$8 sps:$4 sm:$0xff]   ;;  %v2231_v43 = vmov 0  }
 0x136   : > { %v1255_v46 = vsel %vm1247_vm8, %v1126_v44, %v1254_v45  ;;  %v1920_v44 = vld [vmem:[%s2636_s11] ss:$0 sm:$0xff] }
 0x137   : > { %v2130_v47 = vpack.i.bf16 %v1255_v46, %v2472_v35  ;;  %v2168_v35 = vld [vmem:[%s2633_s8] sm:$0xff]   ;;  %2093 = vmatpush3.bf16.msra.mxu0 %v2177_v2 }
 0x138   : > { %2094 = vmatprep.subr.bf16.mxu0 %v2228_v3 }
 0x139   : > { %2131 = vrot.lane.b32.xlu0 %v2130_v47, %s2230_s28 }
 0x13b   : > { %2095 = vmatpush3.bf16.msra.mxu0 %v2178_v4 }
 0x13c   : > { %2096 = vmatprep.subr.bf16.mxu0 %v2228_v3 }
 0x13f   : > { %2097 = vmatpush3.bf16.msra.mxu0 %v2179_v16 }
 0x1ab   : > { %v2132_v51 = vpop.permute.xlu0 %2131 }
 0x1ac   : > { %v2134_v54 = vunpack.i.h.bf16 %v2132_v51  ;;  %v2133_v55 = vunpack.i.l.bf16 %v2132_v51 }
 0x1ae   : > { %v1262_v56 = vsel %vm700_vm0, %v1217_v52, %v2133_v55  ;;  %v1263_v57 = vsel %vm700_vm0, %v1218_v53, %v2134_v54  ;;  %v1599_v54 = vlaneseq }
 0x1af   : > { %v1264_v58 = vpack.c.bf16 %v1263_v57, %v1262_v56  ;;  %v1597_v57 = vld [vmem:[%s2638_s13] sm:$0x3] }
 0x1b0   : > { %v1600_v55 = vshrl.u32 %v1599_v54, 7 }
 0x1b1   : > { %2067 = vmatmul.mubr.bf16.vlgmr.msra.gmra.mrb[4].mxu1 %v1264_v58 }
 0x1b2   : > { %2071 = vmatpush3.bf16.msra.mxu1 %v2168_v35  ;;  %2078 = vmatprep.mubr.msk.bf16.mxu1 %vm2229_vm1, %v2228_v3  ;;  %v1601_v56 = vsub.s32 0, %v1600_v55  ;;  %v1605_v35 = vsub.s32 1, %v1600_v55 }
 0x1b3   : > { %2072 = vmatprep.subr.bf16.mxu1 %v2228_v3 }
 0x1b4   : > { %v1602_v58 = vrot.slane %v1597_v57, %v1601_v56 }
 0x1b6   : > { %2073 = vmatpush3.bf16.msra.mxu1 %v2169_v61  ;;  %v1606_v61 = vrot.slane %v1597_v57, %v1605_v35 }
 0x1b7   : > { %2074 = vmatprep.subr.bf16.mxu1 %v2228_v3 }
 0x1ba   : > { %2075 = vmatpush3.bf16.msra.mxu1 %v2170_v5 }
 0x1bb   : > { %2076 = vmatprep.subr.bf16.mxu1 %v2228_v3  ;;  %v2180_v3 = vld [vmem:[%s2637_s12] ss:$8 sps:$4 sm:$0xff]  }
 0x1be   : > { %2077 = vmatpush3.bf16.msra.mxu1 %v2171_v59 }
 0x1bf   : > { %1689 = vmatprep.subr.bf16.mxu1 %v2182_v17 }
 0x284   : > { %v1370_v7 = vpop.f32.mrb[4].mxu1 }
 0x285   : > { %v1371_v8 = vadd.f32 %v1905_v6, %v1370_v7  ;;  %v2068_v9 = vpop.f32.mrb[5].mxu1 }
 0x286   : > { %v1373_v10 = vpop.f32.mrb[6].mxu1 }
 0x287   : > { %v1374_v11 = vadd.f32 %v1905_v6, %v1373_v10  ;;  %v2069_v12 = vpop.f32.mrb[7].mxu1  ;;  %v1377_v13 = vmax.f32 %v1371_v8, 0.0 }
 0x289   : > { %v1378_v14 = vmax.f32 %v1374_v11, 0.0 }
 0x28b   : > { %v1379_v15 = vpack.c.bf16 %v1378_v14, %v1377_v13 }
 0x28d   : > { %2079 = vmatmul.mubr.msk.bf16.vlgmr.msra.gmra.mrb[8].mxu1 %vm700_vm0, %v1379_v15 }
 0x28e   : > { %1690 = vmatpush1.bf16.msra.mxu1 %v2180_v3  ;;  %1721 = vmatprep.mubr.bf16.mxu1 %v2231_v43 }
 0x28f   : > { %1691 = vmatprep.subr.bf16.mxu1 %v2185_v18 }
 0x292   : > { %1692 = vmatpush1.bf16.msra.mxu1 %v2183_v19 }
 0x293   : > { %1693 = vmatprep.subr.bf16.mxu1 %v2188_v20 }
 0x296   : > { %1694 = vmatpush1.bf16.msra.mxu1 %v2186_v21 }
 0x297   : > { %1695 = vmatprep.subr.bf16.mxu1 %v2191_v22 }
 0x29a   : > { %1696 = vmatpush1.bf16.msra.mxu1 %v2189_v23 }
 0x29b   : > { %1697 = vmatprep.subr.bf16.mxu1 %v2194_v24 }
 0x29e   : > { %1698 = vmatpush1.bf16.msra.mxu1 %v2192_v25 }
 0x29f   : > { %1699 = vmatprep.subr.bf16.mxu1 %v2197_v26 }
 0x2a2   : > { %1700 = vmatpush1.bf16.msra.mxu1 %v2195_v27 }
 0x2a3   : > { %1701 = vmatprep.subr.bf16.mxu1 %v2200_v39 }
 0x2a6   : > { %1702 = vmatpush1.bf16.msra.mxu1 %v2198_v40 }
 0x2a7   : > { %1703 = vmatprep.subr.bf16.mxu1 %v2203_v41 }
 0x2aa   : > { %1704 = vmatpush1.bf16.msra.mxu1 %v2201_v42 }
 0x360   : > { %v1456_v33 = vpop.f32.mrb[8].mxu1 }
 0x361   : > { %v1457_v29 = vadd.f32 %v1914_v28, %v1456_v33  ;;  %v2080_v30 = vpop.f32.mrb[9].mxu1 }
 0x362   : > { %v1459_v31 = vpop.f32.mrb[10].mxu1 }
 0x363   : > { %v1460_v32 = vadd.f32 %v1914_v28, %v1459_v31  ;;  %v2081_v34 = vpop.f32.mrb[11].mxu1  ;;  %v1463_v36 = vmax.f32 %v1457_v29, 0.0 }
 0x365   : > { %v1464_v37 = vmax.f32 %v1460_v32, 0.0 }
 0x367   : > { %v1465_v38 = vpack.c.bf16 %v1464_v37, %v1463_v36 }
 0x369   : > { %2099 = vmatmul.mubr.bf16.vlgmr.msra.gmra.mrb[32].mxu0 %v1465_v38 }
 0x43c   : > { %v1571_v45 = vpop.f32.mrb[32].mxu0 }
 0x43d   : > { %v1572_v46 = vadd.f32 %v1920_v44, %v1571_v45  ;;  %v2100_v47 = vpop.f32.mrb[33].mxu0 }
 0x43e   : > { %v1574_v48 = vpop.f32.mrb[34].mxu0 }
 0x43f   : > { %v1575_v49 = vadd.f32 %v1920_v44, %v1574_v48  ;;  %v2101_v50 = vpop.f32.mrb[35].mxu0  ;;  %v1578_v51 = vmax.f32 %v1572_v46, 0.0 }
 0x441   : > { %v1579_v52 = vmax.f32 %v1575_v49, 0.0 }
 0x443   : > { %v1580_v53 = vpack.c.bf16 %v1579_v52, %v1578_v51 }
 0x445   : > { %1722 = vmatmul.mubr.bf16.vlgmr.msra.gmra.mrb[12].mxu1 %v1580_v53 }
 0x518   : > { %v1723_v5 = vpop.f32.mrb[12].mxu1 }
 0x519   : > { %v1724_v59 = vadd.f32 %v1723_v5, %v1602_v58  ;;  %v1725_v60 = vpop.f32.mrb[13].mxu1 }
 0x51a   : > { %v1726_v62 = vadd.f32 %v1725_v60, %v1606_v61  ;;  %v1727_v63 = vpop.f32.mrb[14].mxu1 }
 0x51b   : > { %1732 = vst [vmem:[%s546_s22] sm:$0xff] %v1724_v59  ;;  %v1728_v0 = vadd.f32 %v1727_v63, %v1602_v58  ;;  %v1729_v1 = vpop.f32.mrb[15].mxu1 }
 0x51c   : > { %1733 = vst [vmem:[%s546_s22 + $0x8] sm:$0xff] %v1726_v62  ;;  %v1730_v2 = vadd.f32 %v1729_v1, %v1606_v61 }
 0x51d   : > { %1734 = vst [vmem:[%s546_s22 + $0x10] sm:$0xff] %v1728_v0 }
 0x51e   : > { %1735 = vst [vmem:[%s546_s22 + $0x18] sm:$0xff] %v1730_v2 }
 0x51f PF: > { %s24_s15 = sadd.s32 1, %s2226_s15   ;;  %s2640_s29 = smov %s2222_s30 }
 0x520   : > { %p21_p5 = scmp.ge.s32.totalorder %s24_s15, 4   ;;  %s2641_s30 = smov %s2643_s16 }
 0x522   :  { %23 = sbr.rel (!%p21_p5) target bundleno = 2 (0x2), region = 109 }

</bundles_post_ra>
